<compile_context>
chip_gen: v5e
topology: v5e:2x2
jax: 0.10.0
libtpu: 0.0.40
codegen_flags: <defaults>
</compile_context>

<pallas_src>
import functools
import math

import jax
import jax.numpy as jnp
from jax.experimental import pallas as pl
from jax.experimental.pallas import tpu as pltpu


VMEM_LIMIT = 32 * 1024 * 1024  # safe on all generations (v7x: 64 MiB/TC physical)


def _round_up(v, m):
    return ((v + m - 1) // m) * m


def _pick_tile(v):
    """Largest tile (multiple of 128) that divides v; otherwise use the full extent."""
    if v > 512 and v % 128 == 0:
        for c in (512, 384, 256):
            if v % c == 0:
                return c
        return 128
    return v


# ----------------------------------------------------------------------------- numerics
def _sigmoid(x):
    # numerically stable logistic (exp argument is always <= 0)
    z = jnp.exp(-jnp.abs(x))
    return jnp.where(x >= 0, 1.0 / (1.0 + z), z / (1.0 + z))


def _act(x, act):
    if act == "none":
        return x
    if act == "relu":
        return jnp.maximum(x, 0.0)
    if act == "silu":
        return x * _sigmoid(x)
    if act == "sigmoid":
        return _sigmoid(x)
    raise ValueError(act)


# ----------------------------------------------------------------------------- Pallas kernels
def _mm_kernel(*refs, act, has_res):
    # Tiled matmul with K-axis accumulation; bias + activation (+ residual) fused at the end.
    # A and W tiles arrive already in bf16; accumulation is f32 in VMEM scratch; the store is
    # cast to the (bf16 / f32) output dtype.
    if has_res:
        a_ref, w_ref, b_ref, r_ref, o_ref, acc_ref = refs
    else:
        a_ref, w_ref, b_ref, o_ref, acc_ref = refs
        r_ref = None

    @pl.when(pl.program_id(2) == 0)
    def _():
        acc_ref[...] = jnp.zeros_like(acc_ref)

    acc_ref[...] += jnp.dot(a_ref[...], w_ref[...], preferred_element_type=jnp.float32)

    @pl.when(pl.program_id(2) == pl.num_programs(2) - 1)
    def _():
        y = _act(acc_ref[...] + b_ref[...], act)
        if r_ref is not None:
            y = y + r_ref[...].astype(jnp.float32)
        o_ref[...] = y.astype(o_ref.dtype)


def _halo_conv_kernel(x_ref, w_ref, b_ref, o_ref, *, ksize, th, ow, act):
    # Dense stride-1 "same" conv: the full padded image per batch element is resident in VMEM
    # (block index constant along the row-block axis); the halo window for this row block is
    # sliced in-kernel and the KH*KW tap matmuls are accumulated in f32.
    cin = x_ref.shape[-1]
    cout = o_ref.shape[-1]
    r0 = pl.multiple_of(pl.program_id(1) * th, th)
    acc = jnp.zeros((th * ow, cout), jnp.float32)
    for kh in range(ksize):
        for kw in range(ksize):
            win = x_ref[0, pl.ds(r0 + kh, th), kw:kw + ow, :].reshape(th * ow, cin)
            acc = acc + jnp.dot(win, w_ref[kh * ksize + kw],
                                preferred_element_type=jnp.float32)
    y = _act(acc + b_ref[...], act)
    o_ref[0] = y.reshape(th, ow, cout).astype(o_ref.dtype)


def _halo_dw_kernel(x_ref, w_ref, scale_ref, shift_ref, o_ref, *, ksize, th, ow, act):
    # Depthwise stride-1 "same" conv on one in-VMEM halo row-block (VPU multiply-accumulate).
    c = x_ref.shape[-1]
    r0 = pl.multiple_of(pl.program_id(1) * th, th)
    acc = jnp.zeros((th, ow, c), jnp.float32)
    for kh in range(ksize):
        for kw in range(ksize):
            win = x_ref[0, pl.ds(r0 + kh, th), kw:kw + ow, :].astype(jnp.float32)
            acc = acc + win * w_ref[kh * ksize + kw]
    y = _act(acc * scale_ref[...] + shift_ref[...], act)
    o_ref[0] = y.astype(o_ref.dtype)


def _dw_stack_kernel(t_ref, w_ref, scale_ref, shift_ref, o_ref, *, act):
    # Strided depthwise conv from a pre-built (bf16) tap stack; M-tiled by the grid.
    acc = t_ref[0].astype(jnp.float32) * w_ref[0]
    for t in range(1, t_ref.shape[0]):
        acc = acc + t_ref[t].astype(jnp.float32) * w_ref[t]
    o_ref[...] = _act(acc * scale_ref[...] + shift_ref[...], act).astype(o_ref.dtype)


def _chan_gate_kernel(x_ref, g_ref, o_ref):
    # SE gate apply (fallback for N > 1): out = x * g  (g per batch & channel)
    o_ref[...] = (x_ref[...].astype(jnp.float32) * g_ref[...]).astype(o_ref.dtype)


def _scse_gate_kernel(x_ref, cg_ref, sw_ref, sb_ref, o_ref):
    # SCSE: out = x * cSE + x * sSE, spatial gate computed in-kernel, bf16 in/out.
    x = x_ref[...].astype(jnp.float32)
    sg = _sigmoid(jnp.sum(x * sw_ref[...], axis=-1, keepdims=True) + sb_ref[...])
    o_ref[...] = (x * cg_ref[...] + x * sg).astype(o_ref.dtype)


# ----------------------------------------------------------------------------- Pallas wrappers
@functools.partial(jax.jit, static_argnames=("act", "out_dtype"))
def matmul_bias_act(a, w, b, act, residual=None, out_dtype=jnp.bfloat16):
    M, K = a.shape
    _, N = w.shape
    TM = _round_up(M, 8) if M <= 512 else 512
    Mp = _round_up(M, TM)
    TK = _pick_tile(K)
    TN = _pick_tile(N)
    a_p = a.astype(jnp.bfloat16)                 # bf16 DMA for the A operand
    if Mp != M:
        a_p = jnp.pad(a_p, ((0, Mp - M), (0, 0)))
    has_res = residual is not None

    inputs = [a_p, w.astype(jnp.bfloat16), b.reshape(1, N).astype(jnp.float32)]
    in_specs = [
        pl.BlockSpec((TM, TK), lambda i, j, k: (i, k)),
        pl.BlockSpec((TK, TN), lambda i, j, k: (k, j)),
        pl.BlockSpec((1, TN), lambda i, j, k: (0, j)),
    ]
    if has_res:
        r = residual if Mp == M else jnp.pad(residual, ((0, Mp - M), (0, 0)))
        inputs.append(r)
        in_specs.append(pl.BlockSpec((TM, TN), lambda i, j, k: (i, j)))

    out = pl.pallas_call(
        functools.partial(_mm_kernel, act=act, has_res=has_res),
        out_shape=jax.ShapeDtypeStruct((Mp, N), out_dtype),
        grid=(Mp // TM, N // TN, K // TK),
        in_specs=in_specs,
        out_specs=pl.BlockSpec((TM, TN), lambda i, j, k: (i, j)),
        scratch_shapes=[pltpu.VMEM((TM, TN), jnp.float32)],
        compiler_params=pltpu.CompilerParams(
            dimension_semantics=("parallel", "parallel", "arbitrary"),
            vmem_limit_bytes=VMEM_LIMIT),
    )(*inputs)
    return out[:M] if Mp != M else out


@functools.partial(jax.jit, static_argnames=("ksize", "act", "out_dtype"))
def conv_same_s1(x, w, b, ksize, act, out_dtype=jnp.bfloat16):
    # dense KxK stride-1 "same" conv; no HBM halo-stack: full padded image resident in VMEM,
    # row blocks sliced in-kernel.
    N, H, W, C = x.shape
    cout = w.shape[-1]
    pad = ksize // 2
    th = min(H, 8)
    ohp = _round_up(H, th)
    nb = ohp // th
    xp = jnp.pad(x.astype(jnp.bfloat16),
                 ((0, 0), (pad, pad + ohp - H), (pad, pad), (0, 0)))
    Hp = ohp + 2 * pad
    Wp = W + 2 * pad
    wf = w.reshape(ksize * ksize, C, cout).astype(jnp.bfloat16)
    out = pl.pallas_call(
        functools.partial(_halo_conv_kernel, ksize=ksize, th=th, ow=W, act=act),
        out_shape=jax.ShapeDtypeStruct((N, ohp, W, cout), out_dtype),
        grid=(N, nb),
        in_specs=[
            pl.BlockSpec((1, Hp, Wp, C), lambda n, i: (n, 0, 0, 0)),
            pl.BlockSpec((ksize * ksize, C, cout), lambda n, i: (0, 0, 0)),
            pl.BlockSpec((1, cout), lambda n, i: (0, 0)),
        ],
        out_specs=pl.BlockSpec((1, th, W, cout), lambda n, i: (n, i, 0, 0)),
        compiler_params=pltpu.CompilerParams(
            dimension_semantics=("parallel", "parallel"), vmem_limit_bytes=VMEM_LIMIT),
    )(xp, wf, b.reshape(1, cout).astype(jnp.float32))
    return out[:, :H] if ohp != H else out


@functools.partial(jax.jit, static_argnames=("ksize", "act", "out_dtype"))
def depthwise_same_s1(x, w, scale, shift, ksize, act, out_dtype=jnp.bfloat16):
    N, H, W, C = x.shape
    pad = ksize // 2
    th = min(H, 8)
    ohp = _round_up(H, th)
    nb = ohp // th
    xp = jnp.pad(x.astype(jnp.bfloat16),
                 ((0, 0), (pad, pad + ohp - H), (pad, pad), (0, 0)))
    Hp = ohp + 2 * pad
    Wp = W + 2 * pad
    out = pl.pallas_call(
        functools.partial(_halo_dw_kernel, ksize=ksize, th=th, ow=W, act=act),
        out_shape=jax.ShapeDtypeStruct((N, ohp, W, C), out_dtype),
        grid=(N, nb),
        in_specs=[
            pl.BlockSpec((1, Hp, Wp, C), lambda n, i: (n, 0, 0, 0)),
            pl.BlockSpec((ksize * ksize, 1, C), lambda n, i: (0, 0, 0)),
            pl.BlockSpec((1, C), lambda n, i: (0, 0)),
            pl.BlockSpec((1, C), lambda n, i: (0, 0)),
        ],
        out_specs=pl.BlockSpec((1, th, W, C), lambda n, i: (n, i, 0, 0)),
        compiler_params=pltpu.CompilerParams(
            dimension_semantics=("parallel", "parallel"), vmem_limit_bytes=VMEM_LIMIT),
    )(xp, w.reshape(ksize * ksize, 1, C).astype(jnp.float32),
      scale.reshape(1, C).astype(jnp.float32), shift.reshape(1, C).astype(jnp.float32))
    return out[:, :H] if ohp != H else out


@functools.partial(jax.jit, static_argnames=("stride", "padding", "act", "out_dtype"))
def depthwise_strided(x, w, scale, shift, stride, padding, act, out_dtype=jnp.bfloat16):
    # strided depthwise conv via a bf16 tap stack (only used for the 4 tiny stride-2 layers).
    N, H, W, C = x.shape
    KH, KW, _ = w.shape
    xp = jnp.pad(x.astype(jnp.bfloat16),
                 ((0, 0), (padding, padding), (padding, padding), (0, 0)))
    OH = (H + 2 * padding - KH) // stride + 1
    OW = (W + 2 * padding - KW) // stride + 1
    M = N * OH * OW
    T = KH * KW
    taps = [xp[:, kh:kh + stride * OH:stride, kw:kw + stride * OW:stride, :].reshape(M, C)
            for kh in range(KH) for kw in range(KW)]
    tstack = jnp.stack(taps, axis=0)                         # (T, M, C) bf16
    TM = min(256, _round_up(M, 8))
    Mp = _round_up(M, TM)
    if Mp != M:
        tstack = jnp.pad(tstack, ((0, 0), (0, Mp - M), (0, 0)))
    out = pl.pallas_call(
        functools.partial(_dw_stack_kernel, act=act),
        out_shape=jax.ShapeDtypeStruct((Mp, C), out_dtype),
        grid=(Mp // TM,),
        in_specs=[
            pl.BlockSpec((T, TM, C), lambda i: (0, i, 0)),
            pl.BlockSpec((T, 1, C), lambda i: (0, 0, 0)),
            pl.BlockSpec((1, C), lambda i: (0, 0)),
            pl.BlockSpec((1, C), lambda i: (0, 0)),
        ],
        out_specs=pl.BlockSpec((TM, C), lambda i: (i, 0)),
        compiler_params=pltpu.CompilerParams(
            dimension_semantics=("parallel",), vmem_limit_bytes=VMEM_LIMIT),
    )(tstack, w.reshape(T, 1, C).astype(jnp.float32),
      scale.reshape(1, C).astype(jnp.float32), shift.reshape(1, C).astype(jnp.float32))
    return out[:M].reshape(N, OH, OW, C)


@functools.partial(jax.jit, static_argnames=("stride", "padding", "act", "out_dtype"))
def conv2d_im2col(x, w, b, stride, padding, act, out_dtype=jnp.bfloat16):
    # only used for the strided stem conv (small channel count)
    N, H, W, C = x.shape
    KH, KW, _, cout = w.shape
    xp = jnp.pad(x.astype(jnp.bfloat16),
                 ((0, 0), (padding, padding), (padding, padding), (0, 0)))
    OH = (H + 2 * padding - KH) // stride + 1
    OW = (W + 2 * padding - KW) // stride + 1
    taps = [xp[:, kh:kh + stride * OH:stride, kw:kw + stride * OW:stride, :]
            for kh in range(KH) for kw in range(KW)]
    patches = jnp.stack(taps, axis=3)                        # (N, OH, OW, KH*KW, C)
    a = patches.reshape(N * OH * OW, KH * KW * C)
    out = matmul_bias_act(a, w.reshape(KH * KW * C, cout), b, act, out_dtype=out_dtype)
    return out.reshape(N, OH, OW, cout)


def conv1x1(x, w, b, act, residual=None, out_dtype=jnp.bfloat16):
    N, H, W, C = x.shape
    cout = w.shape[-1]
    a = x.reshape(N * H * W, C)
    r = residual.reshape(N * H * W, cout) if residual is not None else None
    out = matmul_bias_act(a, w.reshape(C, cout), b, act, r, out_dtype=out_dtype)
    return out.reshape(N, H, W, cout)


def conv2d(x, w, b, stride, padding, act, residual=None, out_dtype=jnp.bfloat16):
    KH, KW = int(w.shape[0]), int(w.shape[1])
    if KH == 1 and KW == 1 and stride == 1 and padding == 0:
        return conv1x1(x, w, b, act, residual, out_dtype=out_dtype)
    assert residual is None
    if stride == 1 and KH == KW and padding == KH // 2:
        return conv_same_s1(x, w, b, KH, act, out_dtype=out_dtype)
    return conv2d_im2col(x, w, b, stride, padding, act, out_dtype=out_dtype)


def depthwise_conv(x, w, scale, shift, stride, padding, act):
    k = int(w.shape[0])
    if stride == 1 and padding == k // 2:
        return depthwise_same_s1(x, w, scale, shift, k, act)
    return depthwise_strided(x, w, scale, shift, stride, padding, act)


@jax.jit
def _se_gate(x, w1, b1, w2, b2):
    # MBConv squeeze-excitation gate: global pool + tiny FCs (SiLU / sigmoid) in f32.
    pooled = jnp.mean(x.astype(jnp.float32), axis=(1, 2))    # (N, C)
    h = pooled @ w1 + b1
    h = h * _sigmoid(h)
    return _sigmoid(h @ w2 + b2)                             # (N, C)


@jax.jit
def se_gate_apply(x, g):
    # Fallback (N > 1): per-channel gating as a tiled, parallel kernel (bf16 in/out).
    N, H, W, C = x.shape
    hw = H * W
    thw = min(1024, _round_up(hw, 8))
    hwp = _round_up(hw, thw)
    xf = x.reshape(N, hw, C)
    if hwp != hw:
        xf = jnp.pad(xf, ((0, 0), (0, hwp - hw), (0, 0)))
    out = pl.pallas_call(
        _chan_gate_kernel,
        out_shape=jax.ShapeDtypeStruct((N, hwp, C), x.dtype),
        grid=(N, hwp // thw),
        in_specs=[
            pl.BlockSpec((1, thw, C), lambda n, i: (n, i, 0)),
            pl.BlockSpec((1, 1, C), lambda n, i: (n, 0, 0)),
        ],
        out_specs=pl.BlockSpec((1, thw, C), lambda n, i: (n, i, 0)),
        compiler_params=pltpu.CompilerParams(
            dimension_semantics=("parallel", "parallel"), vmem_limit_bytes=VMEM_LIMIT),
    )(xf, g.reshape(N, 1, C).astype(jnp.float32))
    return out[:, :hw].reshape(N, H, W, C)


def se_project(x, se, proj_w, proj_b, residual):
    # SE gate + MBConv projection 1x1 conv.  For N == 1 the per-channel gate is folded into
    # the projection weights (removes a full HBM gate pass over the activation).
    N, H, W, C = x.shape
    cout = proj_w.shape[-1]
    g = _se_gate(x, se["w1"], se["b1"], se["w2"], se["b2"])  # (N, C)
    if N == 1:
        wg = (g[0][:, None] * proj_w.reshape(C, cout).astype(jnp.float32)).astype(jnp.bfloat16)
        return conv1x1(x, wg.reshape(1, 1, C, cout), proj_b, "none", residual)
    xg = se_gate_apply(x, g)
    return conv1x1(xg, proj_w, proj_b, "none", residual)


@jax.jit
def scse_apply(x, cw1, cb1, cw2, cb2, sw, sb):
    # SCSE: channel gate (pool + tiny FCs) in JAX, spatial gate + combine in a tiled kernel.
    N, H, W, C = x.shape
    pooled = jnp.mean(x.astype(jnp.float32), axis=(1, 2))
    h = jnp.maximum(pooled @ cw1 + cb1, 0.0)
    cg = _sigmoid(h @ cw2 + cb2)                             # (N, C)
    hw = H * W
    thw = min(1024, _round_up(hw, 8))
    hwp = _round_up(hw, thw)
    xf = x.reshape(N, hw, C)
    if hwp != hw:
        xf = jnp.pad(xf, ((0, 0), (0, hwp - hw), (0, 0)))
    out = pl.pallas_call(
        _scse_gate_kernel,
        out_shape=jax.ShapeDtypeStruct((N, hwp, C), x.dtype),
        grid=(N, hwp // thw),
        in_specs=[
            pl.BlockSpec((1, thw, C), lambda n, i: (n, i, 0)),
            pl.BlockSpec((1, 1, C), lambda n, i: (n, 0, 0)),
            pl.BlockSpec((1, 1, C), lambda n, i: (0, 0, 0)),
            pl.BlockSpec((1, 1, 1), lambda n, i: (0, 0, 0)),
        ],
        out_specs=pl.BlockSpec((1, thw, C), lambda n, i: (n, i, 0)),
        compiler_params=pltpu.CompilerParams(
            dimension_semantics=("parallel", "parallel"), vmem_limit_bytes=VMEM_LIMIT),
    )(xf, cg.reshape(N, 1, C), sw.reshape(1, 1, C).astype(jnp.float32),
      jnp.reshape(sb, (1, 1, 1)).astype(jnp.float32))
    return out[:, :hw].reshape(N, H, W, C)


def upsample2x(x):  # nearest-neighbour, matches F.interpolate(scale_factor=2, mode="nearest")
    return jnp.repeat(jnp.repeat(x, 2, axis=1), 2, axis=2)


# ----------------------------------------------------------------------------- model config
ENC_CH = (15, 32, 24, 40, 112, 320)
DEC_CH = (256, 128, 64, 32, 16)

# EfficientNet-B0 MBConv configs: (in_c, out_c, expand_ratio, kernel, stride)
CFG_E2 = [(32, 16, 1, 3, 1), (16, 24, 6, 3, 2), (24, 24, 6, 3, 1)]            # features[1:3]
CFG_E3 = [(24, 40, 6, 5, 2), (40, 40, 6, 5, 1)]                               # features[3]
CFG_E4 = [(40, 80, 6, 3, 2), (80, 80, 6, 3, 1), (80, 80, 6, 3, 1),            # features[4:6]
          (80, 112, 6, 5, 1), (112, 112, 6, 5, 1), (112, 112, 6, 5, 1)]
CFG_E5 = [(112, 192, 6, 5, 2), (192, 192, 6, 5, 1), (192, 192, 6, 5, 1),      # features[6:8]
          (192, 192, 6, 5, 1), (192, 320, 6, 3, 1)]


def build_decoder_specs(encoder_channels, decoder_channels):
    # mirrors smp.UnetPlusPlusDecoder channel bookkeeping
    enc = list(encoder_channels[1:])[::-1]
    in_channels = [enc[0]] + list(decoder_channels[:-1])
    skip_channels = list(enc[1:]) + [0]
    out_channels = list(decoder_channels)
    specs = {}
    for layer_idx in range(len(in_channels) - 1):
        for depth_idx in range(layer_idx + 1):
            if depth_idx == 0:
                in_ch = in_channels[layer_idx]
                skip_ch = skip_channels[layer_idx] * (layer_idx + 1)
                out_ch = out_channels[layer_idx]
            else:
                out_ch = skip_channels[layer_idx]
                skip_ch = skip_channels[layer_idx] * (layer_idx + 1 - depth_idx)
                in_ch = skip_channels[layer_idx - 1]
            specs[f"x_{depth_idx}_{layer_idx}"] = (in_ch, skip_ch, out_ch)
    specs[f"x_0_{len(in_channels) - 1}"] = (in_channels[-1], 0, out_channels[-1])
    return specs, len(in_channels) - 1


DEC_SPECS, DEC_DEPTH = build_decoder_specs(ENC_CH, DEC_CH)


# ----------------------------------------------------------------------------- parameter init
class KeyGen:
    def __init__(self, seed):
        self.key = jax.random.PRNGKey(seed)

    def __call__(self):
        self.key, sub = jax.random.split(self.key)
        return sub


def _rand(kg, shape, fan_in, dtype=jnp.float32):
    w = jax.random.normal(kg(), shape, jnp.float32) * (1.0 / math.sqrt(max(fan_in, 1)))
    return w.astype(dtype)


def init_conv_bn(kg, kh, kw, cin, cout):
    # conv (bias=False) + BN folded (default running stats -> identity, beta=0); bf16 weights
    return {"w": _rand(kg, (kh, kw, cin, cout), kh * kw * cin, jnp.bfloat16),
            "b": jnp.zeros((cout,), jnp.float32)}


def init_conv(kg, kh, kw, cin, cout):
    return {"w": _rand(kg, (kh, kw, cin, cout), kh * kw * cin, jnp.bfloat16),
            "b": jax.random.normal(kg(), (cout,), jnp.float32) * 0.01}


def init_mbconv(kg, cfg):
    in_c, out_c, expand, k, _ = cfg
    exp_c = in_c * expand
    p = {}
    if expand != 1:
        p["expand"] = init_conv_bn(kg, 1, 1, in_c, exp_c)
    p["dw_w"] = _rand(kg, (k, k, exp_c), k * k)
    p["dw_scale"] = jnp.ones((exp_c,), jnp.float32)   # folded BN
    p["dw_shift"] = jnp.zeros((exp_c,), jnp.float32)
    sq = max(1, in_c // 4)
    p["se"] = {"w1": _rand(kg, (exp_c, sq), exp_c),
               "b1": jax.random.normal(kg(), (sq,), jnp.float32) * 0.01,
               "w2": _rand(kg, (sq, exp_c), sq),
               "b2": jax.random.normal(kg(), (exp_c,), jnp.float32) * 0.01}
    p["project"] = init_conv_bn(kg, 1, 1, exp_c, out_c)
    return p


def init_scse(kg, c):
    r = max(1, c // 16)
    return {"cw1": _rand(kg, (c, r), c),
            "cb1": jax.random.normal(kg(), (r,), jnp.float32) * 0.01,
            "cw2": _rand(kg, (r, c), r),
            "cb2": jax.random.normal(kg(), (c,), jnp.float32) * 0.01,
            "sw": _rand(kg, (c,), c),
            "sb": jax.random.normal(kg(), (), jnp.float32) * 0.01}


def init_decoder_block(kg, in_c, skip_c, out_c):
    p = {}
    if skip_c > 0:
        p["att1"] = init_scse(kg, in_c + skip_c)
    p["conv1"] = init_conv_bn(kg, 3, 3, in_c + skip_c, out_c)
    p["conv2"] = init_conv_bn(kg, 3, 3, out_c, out_c)
    p["att2"] = init_scse(kg, out_c)
    return p


def init_params(seed, in_c):
    kg = KeyGen(seed)
    return {"conv_e1": init_conv_bn(kg, 3, 3, in_c, 32),
            "e2": [init_mbconv(kg, c) for c in CFG_E2],
            "e3": [init_mbconv(kg, c) for c in CFG_E3],
            "e4": [init_mbconv(kg, c) for c in CFG_E4],
            "e5": [init_mbconv(kg, c) for c in CFG_E5],
            "decoder": {name: init_decoder_block(kg, *chs) for name, chs in DEC_SPECS.items()},
            "hm_out": {"c1": init_conv(kg, 3, 3, 16, 16),
                       "c2": init_conv(kg, 1, 1, 16, 1)}}


# ----------------------------------------------------------------------------- forward pass
def apply_mbconv(x, p, cfg):
    in_c, out_c, expand, k, stride = cfg
    h = x
    if expand != 1:
        h = conv2d(h, p["expand"]["w"], p["expand"]["b"], 1, 0, "silu")
    h = depthwise_conv(h, p["dw_w"], p["dw_scale"], p["dw_shift"], stride, k // 2, "silu")
    res = x if (stride == 1 and in_c == out_c) else None     # stochastic depth = id at eval
    h = se_project(h, p["se"], p["project"]["w"], p["project"]["b"], res)
    return h


def apply_decoder_block(x, skip, p):
    x = upsample2x(x)
    if skip is not None:
        x = jnp.concatenate([x, skip], axis=-1)
        a = p["att1"]
        x = scse_apply(x, a["cw1"], a["cb1"], a["cw2"], a["cb2"], a["sw"], a["sb"])
    x = conv2d(x, p["conv1"]["w"], p["conv1"]["b"], 1, 1, "relu")
    x = conv2d(x, p["conv2"]["w"], p["conv2"]["b"], 1, 1, "relu")
    a = p["att2"]
    x = scse_apply(x, a["cw1"], a["cb1"], a["cw2"], a["cb2"], a["sw"], a["sb"])
    return x


def apply_decoder(feats, dp):
    # mirrors smp.UnetPlusPlusDecoder.forward
    features = list(feats[1:])[::-1]           # drop e0, reverse: [e5, e4, e3, e2, e1]
    depth = DEC_DEPTH
    dense = {}
    for layer_idx in range(depth):
        for depth_idx in range(depth - layer_idx):
            if layer_idx == 0:
                dense[f"x_{depth_idx}_{depth_idx}"] = apply_decoder_block(
                    features[depth_idx], features[depth_idx + 1],
                    dp[f"x_{depth_idx}_{depth_idx}"])
            else:
                dli = depth_idx + layer_idx
                cat = [dense[f"x_{i}_{dli}"] for i in range(depth_idx + 1, dli + 1)]
                cat = jnp.concatenate(cat + [features[dli + 1]], axis=-1)
                dense[f"x_{depth_idx}_{dli}"] = apply_decoder_block(
                    dense[f"x_{depth_idx}_{dli - 1}"], cat, dp[f"x_{depth_idx}_{dli}"])
    dense[f"x_0_{depth}"] = apply_decoder_block(dense[f"x_0_{depth - 1}"], None, dp[f"x_0_{depth}"])
    return dense[f"x_0_{depth}"]


def forward(params, x_nchw):
    x = jnp.transpose(x_nchw, (0, 2, 3, 1)).astype(jnp.bfloat16)   # NCHW -> NHWC bf16
    e0 = x
    e1 = conv2d(x, params["conv_e1"]["w"], params["conv_e1"]["b"], 2, 1, "silu")
    h = e1
    for p, cfg in zip(params["e2"], CFG_E2):
        h = apply_mbconv(h, p, cfg)
    e2 = h
    for p, cfg in zip(params["e3"], CFG_E3):
        h = apply_mbconv(h, p, cfg)
    e3 = h
    for p, cfg in zip(params["e4"], CFG_E4):
        h = apply_mbconv(h, p, cfg)
    e4 = h
    for p, cfg in zip(params["e5"], CFG_E5):
        h = apply_mbconv(h, p, cfg)
    e5 = h
    d = apply_decoder((e0, e1, e2, e3, e4, e5), params["decoder"])
    out = conv2d(d, params["hm_out"]["c1"]["w"], params["hm_out"]["c1"]["b"], 1, 1, "silu")
    out = conv2d(out, params["hm_out"]["c2"]["w"], params["hm_out"]["c2"]["b"], 1, 0,
                 "sigmoid", out_dtype=jnp.float32)                 # final head stays f32
    return jnp.transpose(out, (0, 3, 1, 2)).astype(jnp.float32)    # NHWC -> NCHW


# ----------------------------------------------------------------------------- main
if __name__ == "__main__":
    B, IN_C, H, W = 1, 15, 64, 64     # in_c = 15 (decoder encoder_channels[0]); H, W % 32 == 0
    params = init_params(seed=0, in_c=IN_C)
    x = jax.random.normal(jax.random.PRNGKey(0), (B, IN_C, H, W), jnp.float32)

    out = forward(params, x)
    out = jax.block_until_ready(out)

    assert out.shape == (B, 1, H, W), out.shape
    assert bool(jnp.all(jnp.isfinite(out)))
    assert bool(jnp.all((out >= 0.0) & (out <= 1.0)))
    print("KERNEL_OK")
</pallas_src>

<mosaic_0001>
module attributes {stable_mosaic.version = 11 : i64} {
  func.func @_mm_kernel(%arg0: i32, %arg1: i32, %arg2: i32, %arg3: memref<512x135xbf16, #tpu.memory_space<vmem>>, %arg4: memref<135x32xbf16, #tpu.memory_space<vmem>>, %arg5: memref<1x32xf32, #tpu.memory_space<vmem>>, %arg6: memref<512x32xbf16, #tpu.memory_space<vmem>>, %arg7: memref<512x32xf32, #tpu.memory_space<vmem>>) attributes {dimension_semantics = [#tpu.dimension_semantics<parallel>, #tpu.dimension_semantics<parallel>, #tpu.dimension_semantics<arbitrary>], iteration_bounds = array<i64: 2, 1, 1>, scalar_prefetch = 0 : i64, scratch_operands = 1 : i64, tpu.core_type = #tpu.core_type<tc>, window_params = [{transform_indices = @transform_0, window_bounds = array<i64: 512, 135>}, {transform_indices = @transform_1, window_bounds = array<i64: 135, 32>}, {transform_indices = @transform_2, window_bounds = array<i64: 1, 32>}, {transform_indices = @transform_3, window_bounds = array<i64: 512, 32>}]} {
    %c0_i32 = arith.constant 0 : i32
    %0 = arith.cmpi eq, %arg2, %c0_i32 : i32
    %1 = arith.extui %0 : i1 to i32
    %c0_i32_0 = arith.constant 0 : i32
    %2 = arith.cmpi ne, %1, %c0_i32_0 : i32
    scf.if %2 {
      %cst_10 = arith.constant 0.000000e+00 : f32
      %12 = vector.broadcast %cst_10 : f32 to vector<512x32xf32>
      %c0_11 = arith.constant 0 : index
      %c0_12 = arith.constant 0 : index
      %13 = vector.load %arg7[%c0_11, %c0_12] : memref<512x32xf32, #tpu.memory_space<vmem>>, vector<512x32xf32>
      tpu.vector_store %arg7[%c0_11, %c0_12], %12 {strides = array<i32>} : memref<512x32xf32, #tpu.memory_space<vmem>>, vector<512x32xf32>,
    } else {
    }
    %c0 = arith.constant 0 : index
    %c0_1 = arith.constant 0 : index
    %3 = vector.load %arg7[%c0, %c0_1] : memref<512x32xf32, #tpu.memory_space<vmem>>, vector<512x32xf32>
    %c0_2 = arith.constant 0 : index
    %c0_3 = arith.constant 0 : index
    %4 = vector.load %arg3[%c0_2, %c0_3] : memref<512x135xbf16, #tpu.memory_space<vmem>>, vector<512x135xbf16>
    %c0_4 = arith.constant 0 : index
    %c0_5 = arith.constant 0 : index
    %5 = vector.load %arg4[%c0_4, %c0_5] : memref<135x32xbf16, #tpu.memory_space<vmem>>, vector<135x32xbf16>
    %cst = arith.constant dense<0.000000e+00> : vector<512x32xf32>
    %6 = tpu.matmul %4, %5, %cst {dimension_numbers = #tpu.dot_dimension_numbers<[1], [0], [0], [1], [0, 0, 1, 1], [], []>} : vector<512x135xbf16>, vector<135x32xbf16>, vector<512x32xf32> -> vector<512x32xf32>
    %7 = arith.addf %3, %6 : vector<512x32xf32>
    %c0_6 = arith.constant 0 : index
    %c0_7 = arith.constant 0 : index
    %8 = vector.load %arg7[%c0_6, %c0_7] : memref<512x32xf32, #tpu.memory_space<vmem>>, vector<512x32xf32>
    tpu.vector_store %arg7[%c0_6, %c0_7], %7 {strides = array<i32>} : memref<512x32xf32, #tpu.memory_space<vmem>>, vector<512x32xf32>,
    %c0_i32_8 = arith.constant 0 : i32
    %9 = arith.cmpi eq, %arg2, %c0_i32_8 : i32
    %10 = arith.extui %9 : i1 to i32
    %c0_i32_9 = arith.constant 0 : i32
    %11 = arith.cmpi ne, %10, %c0_i32_9 : i32
    scf.if %11 {
      %c0_10 = arith.constant 0 : index
      %c0_11 = arith.constant 0 : index
      %12 = vector.load %arg7[%c0_10, %c0_11] : memref<512x32xf32, #tpu.memory_space<vmem>>, vector<512x32xf32>
      %c0_12 = arith.constant 0 : index
      %c0_13 = arith.constant 0 : index
      %13 = vector.load %arg5[%c0_12, %c0_13] : memref<1x32xf32, #tpu.memory_space<vmem>>, vector<1x32xf32>
      %14 = vector.broadcast %13 : vector<1x32xf32> to vector<512x32xf32>
      %15 = arith.addf %12, %14 : vector<512x32xf32>
      %16 = math.absf %15 : vector<512x32xf32>
      %cst_14 = arith.constant 0.000000e+00 : f32
      %17 = vector.broadcast %cst_14 : f32 to vector<512x32xf32>
      %18 = arith.subf %17, %16 : vector<512x32xf32>
      %19 = math.exp %18 : vector<512x32xf32>
      %cst_15 = arith.constant 0.000000e+00 : f32
      %20 = vector.broadcast %cst_15 : f32 to vector<512x32xf32>
      %21 = arith.cmpf oge, %15, %20 : vector<512x32xf32>
      %cst_16 = arith.constant 1.000000e+00 : f32
      %22 = vector.broadcast %cst_16 : f32 to vector<512x32xf32>
      %23 = arith.addf %22, %19 : vector<512x32xf32>
      %cst_17 = arith.constant 1.000000e+00 : f32
      %24 = vector.broadcast %cst_17 : f32 to vector<512x32xf32>
      %25 = arith.divf %24, %23 : vector<512x32xf32>
      %cst_18 = arith.constant 1.000000e+00 : f32
      %26 = vector.broadcast %cst_18 : f32 to vector<512x32xf32>
      %27 = arith.addf %26, %19 : vector<512x32xf32>
      %28 = arith.divf %19, %27 : vector<512x32xf32>
      %29 = arith.select %21, %25, %28 : vector<512x32xi1>, vector<512x32xf32>
      %30 = arith.mulf %15, %29 : vector<512x32xf32>
      %31 = arith.truncf %30 : vector<512x32xf32> to vector<512x32xbf16>
      %c0_19 = arith.constant 0 : index
      %c0_20 = arith.constant 0 : index
      %32 = vector.load %arg6[%c0_19, %c0_20] : memref<512x32xbf16, #tpu.memory_space<vmem>>, vector<512x32xbf16>
      tpu.vector_store %arg6[%c0_19, %c0_20], %31 {strides = array<i32>} : memref<512x32xbf16, #tpu.memory_space<vmem>>, vector<512x32xbf16>,
    } else {
    }
    return
  }
  func.func @transform_0(%arg0: i32, %arg1: i32, %arg2: i32) -> (i32, i32) {
    %c0_i32 = arith.constant 0 : i32
    return %arg0, %arg2 : i32, i32
  }
  func.func @transform_1(%arg0: i32, %arg1: i32, %arg2: i32) -> (i32, i32) {
    %c0_i32 = arith.constant 0 : i32
    return %arg2, %arg1 : i32, i32
  }
  func.func @transform_2(%arg0: i32, %arg1: i32, %arg2: i32) -> (i32, i32) {
    %c0_i32 = arith.constant 0 : i32
    %c0_i32_0 = arith.constant 0 : i32
    return %c0_i32, %arg1 : i32, i32
  }
  func.func @transform_3(%arg0: i32, %arg1: i32, %arg2: i32) -> (i32, i32) {
    %c0_i32 = arith.constant 0 : i32
    return %arg0, %arg1 : i32, i32
  }
}

</mosaic_0001>

<bundles_post_ra>
// kernel: matmul_bias_act.1
= control target key start
LH: loop header
LB: loop body
LE: loop exit
PB: predicated region body
PF: predicated region fallthrough
CT: control target
= control target key end

     0   :  { %s4055_s12 = smov 0   ;;  %s4057_s13 = smov 0   ;;  %s6510_s0 = inlined_call_operand.vmem [shape: bf16[1024,135], index: 0, kind: input, shape index: {}]   ;;  %s6511_s1 = inlined_call_operand.vmem [shape: bf16[135,32], index: 1, kind: input, shape index: {}]   ;;  %s6512_s2 = inlined_call_operand.vmem [shape: f32[1,32], index: 2, kind: input, shape index: {}]   ;;  %s6513_s3 = inlined_call_operand.vmem [shape: bf16[1024,32], index: 3, kind: output, shape index: {}]  }
   0x1   :  { %s4059_s14 = smov 0  }
   0x2 LB: > { %s32_s15 = sadd.s32 1, %s4027_s13  ;;  %p3312_p0 = scmp.ge.s32.totalorder %s4031_s14, 1  ;;  %s4031_s14 = sphi %s4059_s14, %s13_s14   ;;  %s4027_s13 = sphi %s4057_s13, %s6735_s13   ;;  %s4023_s12 = sphi %s4055_s12, %s6734_s12  }
   0x3   : > { %p34_p1 = scmp.ge.s32.totalorder %s32_s15, 2  ;;  %p191_p2 = scmp.lt.s32.totalorder %s4031_s14, 3 }
   0x5   : > { %s6737_s15 = smov (%p34_p1, %s32_s15), 0  ;;  %p192_p3 = pnand %p3312_p0, %p191_p2 }
   0x6   : > { %s3313_s20 = sshll.u32 (!%p192_p3), %s4023_s12, 6 }
   0x7   : > { %195 = sbr.rel (%p192_p3) target bundleno = 661 (0x295), region = 32  ;;  %p236_p4 = scmp.lt.s32.totalorder (!%p192_p3), %s3313_s20, 127 }
   0xc   : > { %v3712_v0 = vld [vmem:[%s6511_s1 + $0x38] sm:$0xff]  ;;  %v481_v1 = vld [vmem:[%s6511_s1 + $0x40] sm:$0xf]  ;;  %vm918_vm0 = vcmask 1042432   ;;  %vm919_vm1 = vcmask 1043456   ;;  %v3711_v3 = vld [vmem:[%s6511_s1 + $0x30] sm:$0xff] }
   0xd   : > { %v803_v2 = vunpack.c.l.b16 %v481_v1  ;;  %925 = vmatpush.bf16.msra.mxu0 %v3712_v0  ;;  %3713 = vmatpush.bf16.msra.mxu2 %v3712_v0  ;;  %v4033_v4 = vmov 65535   ;;  %s6739_s20 = smov (!%p236_p4, %s3313_s20), 127  ;;  %v3710_v9 = vld [vmem:[%s6511_s1 + $0x28] sm:$0xff]  ;;  %vm6515_vm2 = vcmask 56320   ;;  %v3709_v13 = vld [vmem:[%s6511_s1 + $0x20] sm:$0xff]  ;;  %v3708_v17 = vld [vmem:[%s6511_s1 + $0x18] sm:$0xff] }
   0xe   : > { %v920_v5 = vsel %vm918_vm0, 4294967295, %v4033_v4  ;;  %s3640_s23 = sshll.u32 %s6739_s20, 3  ;;  %v3707_v18 = vld [vmem:[%s6511_s1 + $0x10] sm:$0xff]  ;;  %v3706_v21 = vld [vmem:[%s6511_s1 + $0x8] sm:$0xff]  ;;  %v3705_v25 = vld [vmem:[%s6511_s1] sm:$0xff]  ;;  %vm6514_vm3 = vcmask 261120  }
   0xf   : > { %v812_v6 = vpack.c.b16 %v803_v2, %v803_v2  ;;  %v921_v7 = vsel %vm919_vm1, %v920_v5, 0  ;;  %s4091_s28 = scalar_lea.vmem %s6510_s0, %s3640_s23  ;;  %s3317_s17 = sshll.u32 %s6739_s20, 2  ;;  %vm6516_vm9 = vcmask 257024  }
  0x10   : > { %v3641_v10 = vld [vmem:[%s4091_s28 + $0x4] sm:$0xf]  ;;  %v3322_v11 = vld [vmem:[%s4091_s28 + $0x8] sm:$0xf0]  ;;  %v3675_v14 = vld [vmem:[%s4091_s28 + $0x114] sm:$0xf]  ;;  %s4431_s20 = scalar_lea.vmem %s6513_s3, %s3317_s17 }
  0x11   : > { %v923_v8 = vand.u32 %v921_v7, %v812_v6  ;;  %926 = vmatpush.bf16.msra.mxu0 %v3711_v3  ;;  %3714 = vmatpush.bf16.msra.mxu2 %v3711_v3  ;;  %v3325_v12 = vor.u32 %v3641_v10, %v3322_v11  ;;  %v3458_v15 = vld [vmem:[%s4091_s28 + $0x118] sm:$0xf0]  ;;  %v3643_v19 = vld [vmem:[%s4091_s28 + $0x14] sm:$0xf]  ;;  %v3677_v23 = vld [vmem:[%s4091_s28 + $0x124] sm:$0xf] }
  0x12   : > { %v3461_v16 = vor.u32 %v3675_v14, %v3458_v15  ;;  %v3330_v20 = vld [vmem:[%s4091_s28 + $0x18] sm:$0xf0]  ;;  %v3466_v24 = vld [vmem:[%s4091_s28 + $0x128] sm:$0xf0]  ;;  %v3320_v26 = vld [vmem:[%s4091_s28] sm:$0xf] }
  0x13   : > { %1101 = vmatpush.bf16.msra.mxu1 %v923_v8  ;;  %3721 = vmatpush.bf16.msra.mxu3 %v923_v8  ;;  %v3333_v22 = vor.u32 %v3643_v19, %v3330_v20  ;;  %v3642_v27 = vld [vmem:[%s4091_s28 + $0x4] sm:$0xf0]  ;;  %v3448_v28 = vld [vmem:[%s4091_s28 + $0x100] sm:$0xf]  ;;  %v3469_v30 = vor.u32 %v3677_v23, %v3466_v24  ;;  %v3645_v33 = vld [vmem:[%s4091_s28 + $0x24] sm:$0xf] }
  0x14   : > { %v3674_v29 = vld [vmem:[%s4091_s28 + $0x104] sm:$0xf0]  ;;  %v3321_v31 = vor.u32 %v3642_v27, %v3320_v26  ;;  %v3338_v34 = vld [vmem:[%s4091_s28 + $0x28] sm:$0xf0]  ;;  %v3679_v36 = vld [vmem:[%s4091_s28 + $0x134] sm:$0xf] }
  0x15   : > { %927 = vmatpush.bf16.msra.mxu0 %v3710_v9  ;;  %3715 = vmatpush.bf16.msra.mxu2 %v3710_v9  ;;  %v3449_v32 = vor.u32 %v3674_v29, %v3448_v28  ;;  %v3341_v35 = vor.u32 %v3645_v33, %v3338_v34  ;;  %v3474_v37 = vld [vmem:[%s4091_s28 + $0x138] sm:$0xf0]  ;;  %v3328_v38 = vld [vmem:[%s4091_s28 + $0x10] sm:$0xf]  ;;  %v3644_v39 = vld [vmem:[%s4091_s28 + $0x14] sm:$0xf0] }
  0x16   : > { %3606 = vmatmul.msk.bf16.vlgmr.msra.gmra.mxu1 %vm6515_vm2, %v3325_v12  ;;  %3623 = vmatmul.msk.bf16.vlgmr.msra.gmra.mxu3 %vm6515_vm2, %v3461_v16  ;;  %v3456_v40 = vld [vmem:[%s4091_s28 + $0x110] sm:$0xf]  ;;  %v3676_v41 = vld [vmem:[%s4091_s28 + $0x114] sm:$0xf0]  ;;  %v3477_v42 = vor.u32 %v3679_v36, %v3474_v37  ;;  %v3329_v43 = vor.u32 %v3644_v39, %v3328_v38  ;;  %v3647_v45 = vld [vmem:[%s4091_s28 + $0x34] sm:$0xf] }
  0x17   : > { %v3457_v44 = vor.u32 %v3676_v41, %v3456_v40  ;;  %v3346_v46 = vld [vmem:[%s4091_s28 + $0x38] sm:$0xf0]  ;;  %v3681_v48 = vld [vmem:[%s4091_s28 + $0x144] sm:$0xf]  ;;  %v3482_v49 = vld [vmem:[%s4091_s28 + $0x148] sm:$0xf0] }
  0x18   : > { %v3349_v47 = vor.u32 %v3647_v45, %v3346_v46  ;;  %v3336_v50 = vld [vmem:[%s4091_s28 + $0x20] sm:$0xf]  ;;  %v3646_v51 = vld [vmem:[%s4091_s28 + $0x24] sm:$0xf0]  ;;  %v3485_v54 = vor.u32 %v3681_v48, %v3482_v49  ;;  %v3649_v57 = vld [vmem:[%s4091_s28 + $0x44] sm:$0xf] }
  0x19   : > { %928 = vmatpush.bf16.msra.mxu0 %v3709_v13  ;;  %3716 = vmatpush.bf16.msra.mxu2 %v3709_v13  ;;  %v3464_v52 = vld [vmem:[%s4091_s28 + $0x120] sm:$0xf]  ;;  %v3678_v53 = vld [vmem:[%s4091_s28 + $0x124] sm:$0xf0]  ;;  %v3337_v55 = vor.u32 %v3646_v51, %v3336_v50  ;;  %v3354_v58 = vld [vmem:[%s4091_s28 + $0x48] sm:$0xf0] }
  0x1a   : > { %v3465_v56 = vor.u32 %v3678_v53, %v3464_v52  ;;  %v3357_v59 = vor.u32 %v3649_v57, %v3354_v58  ;;  %v3683_v60 = vld [vmem:[%s4091_s28 + $0x154] sm:$0xf]  ;;  %v3490_v61 = vld [vmem:[%s4091_s28 + $0x158] sm:$0xf0]  ;;  %v3344_v62 = vld [vmem:[%s4091_s28 + $0x30] sm:$0xf] }
  0x1b   : > { %v3648_v63 = vld [vmem:[%s4091_s28 + $0x34] sm:$0xf0]  ;;  %v3472_v0 = vld [vmem:[%s4091_s28 + $0x130] sm:$0xf]  ;;  %v3493_v2 = vor.u32 %v3683_v60, %v3490_v61  ;;  %v3651_v5 = vld [vmem:[%s4091_s28 + $0x54] sm:$0xf] }
  0x1c   : > { %v3680_v1 = vld [vmem:[%s4091_s28 + $0x134] sm:$0xf0]  ;;  %v3345_v3 = vor.u32 %v3648_v63, %v3344_v62  ;;  %v3362_v6 = vld [vmem:[%s4091_s28 + $0x58] sm:$0xf0]  ;;  %v3685_v8 = vld [vmem:[%s4091_s28 + $0x164] sm:$0xf] }
  0x1d   : > { %929 = vmatpush.bf16.msra.mxu0 %v3708_v17  ;;  %3717 = vmatpush.bf16.msra.mxu2 %v3708_v17  ;;  %v3473_v4 = vor.u32 %v3680_v1, %v3472_v0  ;;  %v3365_v7 = vor.u32 %v3651_v5, %v3362_v6  ;;  %v3498_v9 = vld [vmem:[%s4091_s28 + $0x168] sm:$0xf0]  ;;  %v3352_v10 = vld [vmem:[%s4091_s28 + $0x40] sm:$0xf]  ;;  %v3650_v11 = vld [vmem:[%s4091_s28 + $0x44] sm:$0xf0] }
  0x1e   : > { %v3480_v12 = vld [vmem:[%s4091_s28 + $0x140] sm:$0xf]  ;;  %v3682_v13 = vld [vmem:[%s4091_s28 + $0x144] sm:$0xf0]  ;;  %v3501_v14 = vor.u32 %v3685_v8, %v3498_v9  ;;  %v3353_v15 = vor.u32 %v3650_v11, %v3352_v10  ;;  %v3653_v17 = vld [vmem:[%s4091_s28 + $0x64] sm:$0xf] }
  0x1f   : > { %v3481_v16 = vor.u32 %v3682_v13, %v3480_v12  ;;  %v3687_v20 = vld [vmem:[%s4091_s28 + $0x174] sm:$0xf]  ;;  %v3652_v23 = vld [vmem:[%s4091_s28 + $0x54] sm:$0xf0]  ;;  %v3488_v24 = vld [vmem:[%s4091_s28 + $0x150] sm:$0xf] }
  0x20   : > { %v3655_v29 = vld [vmem:[%s4091_s28 + $0x74] sm:$0xf]  ;;  %v3514_v33 = vld [vmem:[%s4091_s28 + $0x188] sm:$0xf0]  ;;  %v3368_v34 = vld [vmem:[%s4091_s28 + $0x60] sm:$0xf] }
  0x21   : > { %930 = vmatpush.bf16.msra.mxu0 %v3707_v18  ;;  %3718 = vmatpush.bf16.msra.mxu2 %v3707_v18  ;;  %v3370_v18 = vld [vmem:[%s4091_s28 + $0x68] sm:$0xf0]  ;;  %v3496_v36 = vld [vmem:[%s4091_s28 + $0x160] sm:$0xf]  ;;  %v3686_v37 = vld [vmem:[%s4091_s28 + $0x164] sm:$0xf0] }
  0x22   : > { %v3373_v19 = vor.u32 %v3653_v17, %v3370_v18  ;;  %v4034_v38 = vmov 0.0   ;;  %v3497_v41 = vor.u32 %v3686_v37, %v3496_v36  ;;  %v3376_v45 = vld [vmem:[%s4091_s28 + $0x70] sm:$0xf]  ;;  %v3656_v46 = vld [vmem:[%s4091_s28 + $0x74] sm:$0xf0] }
  0x23   : > { %273 = vst.msk [vmem:[#allocation2] sm:$0xff] %vm6514_vm3, %v4034_v38  ;;  %v3688_v48 = vld [vmem:[%s4091_s28 + $0x174] sm:$0xf0]  ;;  %v3377_v49 = vor.u32 %v3656_v46, %v3376_v45  ;;  %v3659_v52 = vld [vmem:[%s4091_s28 + $0x94] sm:$0xf] }
  0x24   : > { %274 = vst.msk [vmem:[#allocation2 + $0x8] sm:$0xff] %vm6514_vm3, %v4034_v38  ;;  %v3394_v53 = vld [vmem:[%s4091_s28 + $0x98] sm:$0xf0]  ;;  %v3384_v58 = vld [vmem:[%s4091_s28 + $0x80] sm:$0xf] }
  0x25   : > { %931 = vmatpush.bf16.msra.mxu0 %v3706_v21  ;;  %3719 = vmatpush.bf16.msra.mxu2 %v3706_v21  ;;  %v3506_v21 = vld [vmem:[%s4091_s28 + $0x178] sm:$0xf0]  ;;  %275 = vst.msk [vmem:[#allocation2 + $0x10] sm:$0xff] %vm6514_vm3, %v4034_v38  ;;  %v3512_v60 = vld [vmem:[%s4091_s28 + $0x180] sm:$0xf] }
  0x26   : > { %3607 = vmatmul.msk.bf16.gmra.mxu1 %vm6515_vm2, %v3333_v22  ;;  %3624 = vmatmul.msk.bf16.gmra.mxu3 %vm6515_vm2, %v3469_v30  ;;  %v3360_v22 = vld [vmem:[%s4091_s28 + $0x50] sm:$0xf]  ;;  %v3509_v26 = vor.u32 %v3687_v20, %v3506_v21  ;;  %v3378_v30 = vld [vmem:[%s4091_s28 + $0x78] sm:$0xf0]  ;;  %276 = vst.msk [vmem:[#allocation2 + $0x18] sm:$0xff] %vm6514_vm3, %v4034_v38 }
  0x27   : > { %v3361_v27 = vor.u32 %v3652_v23, %v3360_v22  ;;  %277 = vst.msk [vmem:[#allocation2 + $0x20] sm:$0xff] %vm6514_vm3, %v4034_v38  ;;  %v3690_v61 = vld [vmem:[%s4091_s28 + $0x184] sm:$0xf0]  ;;  %v3661_v6 = vld [vmem:[%s4091_s28 + $0xa4] sm:$0xf] }
  0x28   : > { %278 = vst.msk [vmem:[#allocation2 + $0x28] sm:$0xff] %vm6514_vm3, %v4034_v38  ;;  %v3513_v0 = vor.u32 %v3690_v61, %v3512_v60  ;;  %v3693_v9 = vld [vmem:[%s4091_s28 + $0x1a4] sm:$0xf]  ;;  %v3530_v10 = vld [vmem:[%s4091_s28 + $0x1a8] sm:$0xf0] }
  0x29   : > { %932 = vmatpush.bf16.msra.mxu0 %v3705_v25  ;;  %3720 = vmatpush.bf16.msra.mxu2 %v3705_v25  ;;  %v3684_v25 = vld [vmem:[%s4091_s28 + $0x154] sm:$0xf0]  ;;  %279 = vst.msk [vmem:[#allocation2 + $0x30] sm:$0xff] %vm6514_vm3, %v4034_v38  ;;  %v4299_v12 = vld [vmem:[%s6512_s2] ss:$0 sm:$0xff] }
  0x2a   : > { %v3489_v28 = vor.u32 %v3684_v25, %v3488_v24  ;;  %280 = vst.msk [vmem:[#allocation2 + $0x38] sm:$0xff] %vm6514_vm3, %v4034_v38  ;;  %v337_v1 = vld [vmem:[#allocation2] sm:$0xff]  ;;  %v3520_v18 = vld [vmem:[%s4091_s28 + $0x190] sm:$0xf] }
  0x2b   : > { %281 = vst.msk [vmem:[#allocation2 + $0x40] sm:$0xff] %vm6514_vm3, %v4034_v38 }
  0x2c   : > { %933 = vmatmul.bf16.vlgmr.msra.gmra.mxu0 %v3321_v31  ;;  %1013 = vmatmul.bf16.vlgmr.msra.gmra.mxu2 %v3449_v32  ;;  %v3381_v31 = vor.u32 %v3655_v29, %v3378_v30  ;;  %v3689_v32 = vld [vmem:[%s4091_s28 + $0x184] sm:$0xf]  ;;  %282 = vst.msk [vmem:[#allocation2 + $0x48] sm:$0xff] %vm6514_vm3, %v4034_v38  ;;  %v339_v36 = vld [vmem:[#allocation2 + $0x10] sm:$0xff] }
  0x2d   : > { %v3517_v39 = vor.u32 %v3689_v32, %v3514_v33  ;;  %283 = vst.msk [vmem:[#allocation2 + $0x50] sm:$0xff] %vm6514_vm3, %v4034_v38 }
  0x2e   : > { %284 = vst.msk [vmem:[#allocation2 + $0x58] sm:$0xff] %vm6514_vm3, %v4034_v38  ;;  %v341_v60 = vld [vmem:[#allocation2 + $0x20] sm:$0xff] }
  0x2f   : > { %285 = vst.msk [vmem:[#allocation2 + $0x60] sm:$0xff] %vm6514_vm3, %v4034_v38 }
  0x30   : > { %286 = vst.msk [vmem:[#allocation2 + $0x68] sm:$0xff] %vm6514_vm3, %v4034_v38 }
  0x31   : > { %287 = vst.msk [vmem:[#allocation2 + $0x70] sm:$0xff] %vm6514_vm3, %v4034_v38 }
  0x32   : > { %288 = vst.msk [vmem:[#allocation2 + $0x78] sm:$0xff] %vm6514_vm3, %v4034_v38 }
  0x33   : > { %289 = vst.msk [vmem:[#allocation2 + $0x80] sm:$0xff] %vm6514_vm3, %v4034_v38 }
  0x34   : > { %290 = vst.msk [vmem:[#allocation2 + $0x88] sm:$0xff] %vm6514_vm3, %v4034_v38 }
  0x35   : > { %291 = vst.msk [vmem:[#allocation2 + $0x90] sm:$0xff] %vm6514_vm3, %v4034_v38 }
  0x36   : > { %3608 = vmatmul.msk.bf16.gmra.mxu1 %vm6515_vm2, %v3341_v35  ;;  %3625 = vmatmul.msk.bf16.gmra.mxu3 %vm6515_vm2, %v3477_v42  ;;  %v3654_v35 = vld [vmem:[%s4091_s28 + $0x64] sm:$0xf0]  ;;  %v3657_v42 = vld [vmem:[%s4091_s28 + $0x84] sm:$0xf]  ;;  %292 = vst.msk [vmem:[#allocation2 + $0x98] sm:$0xff] %vm6514_vm3, %v4034_v38 }
  0x37   : > { %v3369_v40 = vor.u32 %v3654_v35, %v3368_v34  ;;  %293 = vst.msk [vmem:[#allocation2 + $0xa0] sm:$0xff] %vm6514_vm3, %v4034_v38  ;;  %v3663_v34 = vld [vmem:[%s4091_s28 + $0xb4] sm:$0xf]  ;;  %v3410_v35 = vld [vmem:[%s4091_s28 + $0xb8] sm:$0xf0] }
  0x38   : > { %294 = vst.msk [vmem:[#allocation2 + $0xa8] sm:$0xff] %vm6514_vm3, %v4034_v38 }
  0x39   : > { %295 = vst.msk [vmem:[#allocation2 + $0xb0] sm:$0xff] %vm6514_vm3, %v4034_v38 }
  0x3a   : > { %296 = vst.msk [vmem:[#allocation2 + $0xb8] sm:$0xff] %vm6514_vm3, %v4034_v38 }
  0x3b   : > { %297 = vst.msk [vmem:[#allocation2 + $0xc0] sm:$0xff] %vm6514_vm3, %v4034_v38 }
  0x3c   : > { %938 = vmatmul.bf16.gmra.mxu0 %v3329_v43  ;;  %1018 = vmatmul.bf16.gmra.mxu2 %v3457_v44  ;;  %v3386_v43 = vld [vmem:[%s4091_s28 + $0x88] sm:$0xf0]  ;;  %298 = vst.msk [vmem:[#allocation2 + $0xc8] sm:$0xff] %vm6514_vm3, %v4034_v38 }
  0x3d   : > { %v3389_v44 = vor.u32 %v3657_v42, %v3386_v43  ;;  %299 = vst.msk [vmem:[#allocation2 + $0xd0] sm:$0xff] %vm6514_vm3, %v4034_v38  ;;  %v340_v42 = vld [vmem:[#allocation2 + $0x18] sm:$0xff] }
  0x3e   : > { %300 = vst.msk [vmem:[#allocation2 + $0xd8] sm:$0xff] %vm6514_vm3, %v4034_v38 }
  0x3f   : > { %301 = vst.msk [vmem:[#allocation2 + $0xe0] sm:$0xff] %vm6514_vm3, %v4034_v38 }
  0x40   : > { %302 = vst.msk [vmem:[#allocation2 + $0xe8] sm:$0xff] %vm6514_vm3, %v4034_v38 }
  0x41   : > { %303 = vst.msk [vmem:[#allocation2 + $0xf0] sm:$0xff] %vm6514_vm3, %v4034_v38 }
  0x42   : > { %304 = vst.msk [vmem:[#allocation2 + $0xf8] sm:$0xff] %vm6514_vm3, %v4034_v38 }
  0x43   : > { %305 = vst.msk [vmem:[#allocation2 + $0x100] sm:$0xff] %vm6514_vm3, %v4034_v38 }
  0x44   : > { %306 = vst.msk [vmem:[#allocation2 + $0x108] sm:$0xff] %vm6514_vm3, %v4034_v38 }
  0x45   : > { %307 = vst.msk [vmem:[#allocation2 + $0x110] sm:$0xff] %vm6514_vm3, %v4034_v38 }
  0x46   : > { %3609 = vmatmul.msk.bf16.gmra.mxu1 %vm6515_vm2, %v3349_v47  ;;  %3626 = vmatmul.msk.bf16.gmra.mxu3 %vm6515_vm2, %v3485_v54  ;;  %v3504_v47 = vld [vmem:[%s4091_s28 + $0x170] sm:$0xf]  ;;  %v3691_v54 = vld [vmem:[%s4091_s28 + $0x194] sm:$0xf]  ;;  %308 = vst.msk [vmem:[#allocation2 + $0x118] sm:$0xff] %vm6514_vm3, %v4034_v38 }
  0x47   : > { %v3505_v50 = vor.u32 %v3688_v48, %v3504_v47  ;;  %309 = vst.msk [vmem:[#allocation2 + $0x120] sm:$0xff] %vm6514_vm3, %v4034_v38 }
  0x48   : > { %310 = vst.msk [vmem:[#allocation2 + $0x128] sm:$0xff] %vm6514_vm3, %v4034_v38 }
  0x49   : > { %311 = vst.msk [vmem:[#allocation2 + $0x130] sm:$0xff] %vm6514_vm3, %v4034_v38 }
  0x4a   : > { %312 = vst.msk [vmem:[#allocation2 + $0x138] sm:$0xff] %vm6514_vm3, %v4034_v38 }
  0x4b   : > { %313 = vst.msk [vmem:[#allocation2 + $0x140] sm:$0xff] %vm6514_vm3, %v4034_v38 }
  0x4c   : > { %943 = vmatmul.bf16.gmra.mxu0 %v3337_v55  ;;  %1023 = vmatmul.bf16.gmra.mxu2 %v3465_v56  ;;  %v3522_v55 = vld [vmem:[%s4091_s28 + $0x198] sm:$0xf0]  ;;  %v3397_v56 = vor.u32 %v3659_v52, %v3394_v53  ;;  %314 = vst.msk [vmem:[#allocation2 + $0x148] sm:$0xff] %vm6514_vm3, %v4034_v38  ;;  %v3528_v53 = vld [vmem:[%s4091_s28 + $0x1a0] sm:$0xf] }
  0x4d   : > { %v3525_v57 = vor.u32 %v3691_v54, %v3522_v55  ;;  %315 = vst.msk [vmem:[#allocation2 + $0x150] sm:$0xff] %vm6514_vm3, %v4034_v38  ;;  %v3694_v54 = vld [vmem:[%s4091_s28 + $0x1a4] sm:$0xf0] }
  0x4e   : > { %316 = vst.msk [vmem:[#allocation2 + $0x158] sm:$0xff] %vm6514_vm3, %v4034_v38 }
  0x4f   : > { %317 = vst.msk [vmem:[#allocation2 + $0x160] sm:$0xff] %vm6514_vm3, %v4034_v38 }
  0x50   : > { %318 = vst.msk [vmem:[#allocation2 + $0x168] sm:$0xff] %vm6514_vm3, %v4034_v38 }
  0x51   : > { %319 = vst.msk [vmem:[#allocation2 + $0x170] sm:$0xff] %vm6514_vm3, %v4034_v38 }
  0x52   : > { %320 = vst.msk [vmem:[#allocation2 + $0x178] sm:$0xff] %vm6514_vm3, %v4034_v38 }
  0x53   : > { %321 = vst.msk [vmem:[#allocation2 + $0x180] sm:$0xff] %vm6514_vm3, %v4034_v38 }
  0x54   : > { %322 = vst.msk [vmem:[#allocation2 + $0x188] sm:$0xff] %vm6514_vm3, %v4034_v38 }
  0x55   : > { %323 = vst.msk [vmem:[#allocation2 + $0x190] sm:$0xff] %vm6514_vm3, %v4034_v38 }
  0x56   : > { %3610 = vmatmul.msk.bf16.gmra.mxu1 %vm6515_vm2, %v3357_v59  ;;  %3627 = vmatmul.msk.bf16.gmra.mxu3 %vm6515_vm2, %v3493_v2  ;;  %v3658_v59 = vld [vmem:[%s4091_s28 + $0x84] sm:$0xf0]  ;;  %324 = vst.msk [vmem:[#allocation2 + $0x198] sm:$0xff] %vm6514_vm3, %v4034_v38 }
  0x57   : > { %v3385_v63 = vor.u32 %v3658_v59, %v3384_v58  ;;  %325 = vst.msk [vmem:[#allocation2 + $0x1a0] sm:$0xff] %vm6514_vm3, %v4034_v38  ;;  %v3529_v59 = vor.u32 %v3694_v54, %v3528_v53 }
  0x58   : > { %326 = vst.msk [vmem:[#allocation2 + $0x1a8] sm:$0xff] %vm6514_vm3, %v4034_v38 }
  0x59   : > { %327 = vst.msk [vmem:[#allocation2 + $0x1b0] sm:$0xff] %vm6514_vm3, %v4034_v38 }
  0x5a   : > { %328 = vst.msk [vmem:[#allocation2 + $0x1b8] sm:$0xff] %vm6514_vm3, %v4034_v38 }
  0x5b   : > { %329 = vst.msk [vmem:[#allocation2 + $0x1c0] sm:$0xff] %vm6514_vm3, %v4034_v38 }
  0x5c   : > { %948 = vmatmul.bf16.gmra.mxu0 %v3345_v3  ;;  %1028 = vmatmul.bf16.gmra.mxu2 %v3473_v4  ;;  %330 = vst.msk [vmem:[#allocation2 + $0x1c8] sm:$0xff] %vm6514_vm3, %v4034_v38 }
  0x5d   : > { %331 = vst.msk [vmem:[#allocation2 + $0x1d0] sm:$0xff] %vm6514_vm3, %v4034_v38 }
  0x5e   : > { %332 = vst.msk [vmem:[#allocation2 + $0x1d8] sm:$0xff] %vm6514_vm3, %v4034_v38 }
  0x5f   : > { %333 = vst.msk [vmem:[#allocation2 + $0x1e0] sm:$0xff] %vm6514_vm3, %v4034_v38 }
  0x60   : > { %334 = vst.msk [vmem:[#allocation2 + $0x1e8] sm:$0xff] %vm6514_vm3, %v4034_v38 }
  0x61   : > { %335 = vst.msk [vmem:[#allocation2 + $0x1f0] sm:$0xff] %vm6514_vm3, %v4034_v38 }
  0x62   : > { %336 = vst.msk [vmem:[#allocation2 + $0x1f8] sm:$0xff] %vm6514_vm3, %v4034_v38 }
  0x66   : > { %3611 = vmatmul.msk.bf16.gmra.mxu1 %vm6515_vm2, %v3365_v7  ;;  %3628 = vmatmul.msk.bf16.gmra.mxu3 %vm6515_vm2, %v3501_v14  ;;  %v3402_v7 = vld [vmem:[%s4091_s28 + $0xa8] sm:$0xf0]  ;;  %v3533_v14 = vor.u32 %v3693_v9, %v3530_v10 }
  0x67   : > { %v3405_v13 = vor.u32 %v3661_v6, %v3402_v7 }
  0x6c   : > { %953 = vmatmul.bf16.gmra.mxu0 %v3353_v15  ;;  %1033 = vmatmul.bf16.gmra.mxu2 %v3481_v16  ;;  %v3392_v15 = vld [vmem:[%s4091_s28 + $0x90] sm:$0xf]  ;;  %v3660_v16 = vld [vmem:[%s4091_s28 + $0x94] sm:$0xf0] }
  0x6d   : > { %v3393_v23 = vor.u32 %v3660_v16, %v3392_v15 }
  0x76   : > { %3612 = vmatmul.msk.bf16.gmra.mxu1 %vm6515_vm2, %v3373_v19  ;;  %3629 = vmatmul.msk.bf16.gmra.mxu3 %vm6515_vm2, %v3509_v26  ;;  %v3692_v19 = vld [vmem:[%s4091_s28 + $0x194] sm:$0xf0] }
  0x77   : > { %v3521_v24 = vor.u32 %v3692_v19, %v3520_v18 }
  0x7c   : > { %958 = vmatmul.bf16.gmra.mxu0 %v3361_v27  ;;  %1038 = vmatmul.bf16.gmra.mxu2 %v3489_v28 }
  0x86   : > { %3613 = vmatmul.msk.bf16.gmra.mxu1 %vm6515_vm2, %v3381_v31  ;;  %3630 = vmatmul.msk.bf16.gmra.mxu3 %vm6515_vm2, %v3517_v39  ;;  %v338_v31 = vld [vmem:[#allocation2 + $0x8] sm:$0xff]  ;;  %v371_v39 = vld [vmem:[#allocation2 + $0x110] sm:$0xff] }
  0x8c   : > { %963 = vmatmul.bf16.gmra.mxu0 %v3369_v40  ;;  %1043 = vmatmul.bf16.gmra.mxu2 %v3497_v41 }
  0x93   : > { %v1103_v51 = vpop.f32.mrf.mxu1 }
  0x96   : > { %3614 = vmatmul.msk.bf16.gmra.mxu1 %vm6515_vm2, %v3389_v44  ;;  %3631 = vmatmul.msk.bf16.gmra.mxu3 %vm6515_vm2, %v3525_v57  ;;  %v3413_v44 = vor.u32 %v3663_v34, %v3410_v35 }
  0x99   : > { %v1188_v27 = vpop.f32.mrf.mxu3 }
  0x9b   : > { %v1105_v62 = vpop.f32.mrf.mxu1 }
  0x9c   : > { %968 = vmatmul.bf16.gmra.mxu0 %v3377_v49  ;;  %1048 = vmatmul.bf16.gmra.mxu2 %v3505_v50  ;;  %v3400_v49 = vld [vmem:[%s4091_s28 + $0xa0] sm:$0xf]  ;;  %v3662_v50 = vld [vmem:[%s4091_s28 + $0xa4] sm:$0xf0] }
  0x9d   : > { %v3401_v38 = vor.u32 %v3662_v50, %v3400_v49 }
  0xa1   : > { %v1190_v48 = vpop.f32.mrf.mxu3 }
  0xa3   : > { %v1108_v11 = vpop.f32.mrf.mxu1 }
  0xa6   : > { %3615 = vmatmul.msk.bf16.gmra.mxu1 %vm6515_vm2, %v3397_v56  ;;  %3632 = vmatmul.msk.bf16.gmra.mxu3 %vm6515_vm2, %v3533_v14  ;;  %v372_v56 = vld [vmem:[#allocation2 + $0x118] sm:$0xff] }
  0xa9   : > { %v934_v2 = vpop.f32.mrf.mxu0  ;;  %v1193_v10 = vpop.f32.mrf.mxu3 }
  0xaa   : > { %v1104_v3 = vadd.f32 %v1103_v51, %v934_v2 }
  0xab   : > { %v1110_v29 = vpop.f32.mrf.mxu1 }
  0xac   : > { %v1263_v4 = vadd.f32 %v1104_v3, %v337_v1  ;;  %973 = vmatmul.bf16.gmra.mxu0 %v3385_v63  ;;  %1053 = vmatmul.bf16.gmra.mxu2 %v3513_v0  ;;  %v3695_v0 = vld [vmem:[%s4091_s28 + $0x1b4] sm:$0xf]  ;;  %v3538_v1 = vld [vmem:[%s4091_s28 + $0x1b8] sm:$0xf0] }
  0xad   : > { %v3541_v2 = vor.u32 %v3695_v0, %v3538_v1  ;;  %v3536_v0 = vld [vmem:[%s4091_s28 + $0x1b0] sm:$0xf]  ;;  %v3696_v1 = vld [vmem:[%s4091_s28 + $0x1b4] sm:$0xf0] }
  0xae   : > { %1328 = vst.msk [vmem:[#allocation2] sm:$0xff] %vm6514_vm3, %v1263_v4 }
  0xaf   : > { %v4286_v5 = vpop.f32.mrf.mxu2 }
  0xb1   : > { %v936_v8 = vpop.f32.mrf.mxu0 }
  0xb2   : > { %v1106_v30 = vadd.f32 %v1105_v62, %v936_v8 }
  0xb3   : > { %v1113_v55 = vpop.f32.mrf.mxu1 }
  0xb4   : > { %v1264_v41 = vadd.f32 %v1106_v30, %v338_v31 }
  0xb5   : > { %v1395_v17 = vld [vmem:[#allocation2] sm:$0xff] }
  0xb6   : > { %v4315_v20 = vadd.f32 %v4299_v12, %v1395_v17  ;;  %3616 = vmatmul.msk.bf16.gmra.mxu1 %vm6515_vm2, %v3405_v13  ;;  %1329 = vst.msk [vmem:[#allocation2 + $0x8] sm:$0xff] %vm6514_vm3, %v1264_v41  ;;  %3633 = vmatmul.msk.bf16.gmra.mxu3 %vm6515_vm2, %v3541_v2  ;;  %v3418_v13 = vld [vmem:[%s4091_s28 + $0xc8] sm:$0xf0] }
  0xb7   : > { %v4322_v21 = vpop.f32.mrf.mxu2 }
  0xb8   : > { %v1527_v22 = vand.u32 2147483647, %v4315_v20  ;;  %vm1783_vm8 = vcmp.ge.f32.partialorder %v4315_v20, 0.0 }
  0xb9   : > { %v939_v25 = vpop.f32.mrf.mxu0 }
  0xba   : > { %v1591_v26 = vsub.f32 0.0, %v1527_v22  ;;  %v1109_v32 = vadd.f32 %v1108_v11, %v939_v25  ;;  %v3665_v11 = vld [vmem:[%s4091_s28 + $0xc4] sm:$0xf] }
  0xbb   : > { %v3421_v31 = vor.u32 %v3665_v11, %v3418_v13  ;;  %v343_v11 = vld [vmem:[#allocation2 + $0x30] sm:$0xff] }
  0xbc   : > { %v1655_v28 = vmul.f32 1.442695, %v1591_v26  ;;  %978 = vmatmul.bf16.gmra.mxu0 %v3393_v23  ;;  %1058 = vmatmul.bf16.gmra.mxu2 %v3521_v24  ;;  %v1265_v45 = vadd.f32 %v1109_v32, %v339_v36  ;;  %v1115_v23 = vpop.f32.mrf.mxu1  ;;  %v373_v26 = vld [vmem:[#allocation2 + $0x120] sm:$0xff] }
  0xbd   : > { %v1396_v6 = vld [vmem:[#allocation2 + $0x8] sm:$0xff] }
  0xbe   : > { %3749 = vpow2.f32 %v1655_v28  ;;  %1330 = vst.msk [vmem:[#allocation2 + $0x10] sm:$0xff] %vm6514_vm3, %v1265_v45  ;;  %v4376_v8 = vadd.f32 %v4299_v12, %v1396_v6  ;;  %v342_v45 = vld [vmem:[#allocation2 + $0x28] sm:$0xff] }
  0xbf   : > { %v1019_v33 = vpop.f32.mrf.mxu2 }
  0xc0   : > { %v1189_v37 = vadd.f32 %v1188_v27, %v1019_v33  ;;  %v1528_v22 = vand.u32 2147483647, %v4376_v8  ;;  %vm1784_vm15 = vcmp.ge.f32.partialorder %v4376_v8, 0.0 }
  0xc1   : > { %v941_v40 = vpop.f32.mrf.mxu0 }
  0xc2   : > { %v1111_v43 = vadd.f32 %v1110_v29, %v941_v40  ;;  %v1297_v47 = vadd.f32 %v1189_v37, %v371_v39  ;;  %v1592_v33 = vsub.f32 0.0, %v1528_v22 }
  0xc4   : > { %v4351_v46 = vpop.eup %3749  ;;  %v1266_v52 = vadd.f32 %v1111_v43, %v340_v42  ;;  %1362 = vst.msk [vmem:[#allocation2 + $0x110] sm:$0xff] %vm6514_vm3, %v1297_v47  ;;  %v1657_v42 = vmul.f32 1.442695, %v1592_v33  ;;  %v3408_v47 = vld [vmem:[%s4091_s28 + $0xb0] sm:$0xf] }
  0xc5   : > { %v4358_v51 = vadd.f32 1.0, %v4351_v46  ;;  %v1397_v9 = vld [vmem:[#allocation2 + $0x10] sm:$0xff] }
  0xc6   : > { %3617 = vmatmul.msk.bf16.gmra.mxu1 %vm6515_vm2, %v3413_v44  ;;  %1331 = vst.msk [vmem:[#allocation2 + $0x18] sm:$0xff] %vm6514_vm3, %v1266_v52  ;;  %v4384_v15 = vadd.f32 %v4299_v12, %v1397_v9  ;;  %v1118_v9 = vpop.f32.mrf.mxu1 }
  0xc7   : > { %3751 = vrcp.f32 %v4358_v51  ;;  %v1021_v57 = vpop.f32.mrf.mxu2  ;;  %vm1916_vm4 = vweird.f32 %v4358_v51  ;;  %v1920_v14 = vand.u32 2147483647, %v4358_v51  ;;  %v1922_v19 = vand.u32 2147483648, %v4358_v51 }
  0xc8   : > { %v1191_v58 = vadd.f32 %v1190_v48, %v1021_v57  ;;  %v1529_v27 = vand.u32 2147483647, %v4384_v15  ;;  %3753 = vpow2.f32 %v1657_v42  ;;  %v3664_v57 = vld [vmem:[%s4091_s28 + $0xb4] sm:$0xf0] }
  0xc9   : > { %v944_v61 = vpop.f32.mrf.mxu0  ;;  %vm4396_vm6 = vcmp.eq.f32.partialorder %v1920_v14, 8.507059e+37  ;;  %v1923_v48 = vor.u32 1.1754944e-38, %v1922_v19  ;;  %v3409_v6 = vor.u32 %v3664_v57, %v3408_v47 }
  0xca   : > { %v1298_v62 = vadd.f32 %v1191_v58, %v372_v56  ;;  %v1114_v63 = vadd.f32 %v1113_v55, %v944_v61  ;;  %v1593_v36 = vsub.f32 0.0, %v1529_v27 }
  0xcb   : > { %v1429_v16 = vld [vmem:[#allocation2 + $0x110] sm:$0xff] }
  0xcc   : > { %1363 = vst.msk [vmem:[#allocation2 + $0x118] sm:$0xff] %vm6514_vm3, %v1298_v62  ;;  %v1267_v3 = vadd.f32 %v1114_v63, %v341_v60  ;;  %983 = vmatmul.bf16.gmra.mxu0 %v3401_v38  ;;  %1063 = vmatmul.bf16.gmra.mxu2 %v3529_v59  ;;  %v4389_v24 = vadd.f32 %v4299_v12, %v1429_v16  ;;  %v1659_v49 = vmul.f32 1.442695, %v1593_v36  ;;  %v1195_v62 = vpop.f32.mrf.mxu3  ;;  %v374_v63 = vld [vmem:[#allocation2 + $0x128] sm:$0xff] }
  0xcd   : > { %v3752_v4 = vpop.eup %3751  ;;  %v1398_v25 = vld [vmem:[#allocation2 + $0x18] sm:$0xff] }
  0xce   : > { %v1912_v7 = vmul.f32 %v3752_v4, %v4358_v51  ;;  %1332 = vst.msk [vmem:[#allocation2 + $0x20] sm:$0xff] %vm6514_vm3, %v1267_v3  ;;  %v4393_v28 = vadd.f32 %v4299_v12, %v1398_v25  ;;  %vm1917_vm5 = vweird.f32 %v3752_v4  ;;  %v1561_v34 = vand.u32 2147483647, %v4389_v24 }
  0xcf   : > { %v1024_v17 = vpop.f32.mrf.mxu2  ;;  %vm1918_vm7 = vmor %vm1916_vm4, %vm1917_vm5  ;;  %3755 = vpow2.f32 %v1659_v49 }
  0xd0   : > { %v1913_v18 = vsub.f32 1.0, %v1912_v7  ;;  %v1194_v29 = vadd.f32 %v1193_v10, %v1024_v17  ;;  %v1530_v37 = vand.u32 2147483647, %v4393_v28  ;;  %v1625_v43 = vsub.f32 0.0, %v1561_v34 }
  0xd1   : > { %v946_v30 = vpop.f32.mrf.mxu0  ;;  %v3537_v17 = vor.u32 %v3696_v1, %v3536_v0 }
  0xd2   : > { %v1914_v32 = vmul.f32 %v3752_v4, %v1913_v18  ;;  %v1299_v40 = vadd.f32 %v1194_v29, %v373_v26  ;;  %v1594_v50 = vsub.f32 0.0, %v1530_v37  ;;  %v1116_v53 = vadd.f32 %v1115_v23, %v946_v30  ;;  %v4426_v18 = vpop.eup %3753 }
  0xd3   : > { %v1430_v39 = vld [vmem:[#allocation2 + $0x118] sm:$0xff]  ;;  %v1723_v55 = vmul.f32 1.442695, %v1625_v43  ;;  %v4436_v25 = vadd.f32 1.0, %v4426_v18 }
  0xd4   : > { %v1915_v41 = vadd.f32 %v3752_v4, %v1914_v32  ;;  %v4402_v44 = vadd.f32 %v4299_v12, %v1430_v39  ;;  %1364 = vst.msk [vmem:[#allocation2 + $0x120] sm:$0xff] %vm6514_vm3, %v1299_v40  ;;  %v1661_v58 = vmul.f32 1.442695, %v1594_v50  ;;  %v1268_v2 = vadd.f32 %v1116_v53, %v342_v45 }
  0xd5   : > { %v1399_v52 = vld [vmem:[#allocation2 + $0x20] sm:$0xff]  ;;  %3757 = vpow2.f32 %v1723_v55  ;;  %v4433_v23 = vpop.eup %3755  ;;  %v1935_v36 = vand.u32 2147483647, %v4436_v25  ;;  %v1937_v37 = vand.u32 2147483648, %v4436_v25  ;;  %vm1931_vm10 = vweird.f32 %v4436_v25 }
  0xd6   : > { %v1919_v54 = vsel %vm1918_vm7, %v3752_v4, %v1915_v41  ;;  %v1562_v56 = vand.u32 2147483647, %v4402_v44  ;;  %3618 = vmatmul.msk.bf16.gmra.mxu1 %vm6515_vm2, %v3421_v31  ;;  %v4416_v61 = vadd.f32 %v4299_v12, %v1399_v52  ;;  %3759 = vpow2.f32 %v1661_v58  ;;  %1333 = vst.msk [vmem:[#allocation2 + $0x28] sm:$0xff] %vm6514_vm3, %v1268_v2 }
  0xd7   : > { %v1924_v51 = vsel %vm4396_vm6, %v1923_v48, %v1919_v54  ;;  %v1026_v38 = vpop.f32.mrf.mxu2  ;;  %v4442_v29 = vadd.f32 1.0, %v4433_v23  ;;  %vm4482_vm12 = vcmp.eq.f32.partialorder %v1935_v36, 8.507059e+37  ;;  %v1938_v52 = vor.u32 1.1754944e-38, %v1937_v37 }
  0xd8   : > { %v2871_v59 = vmul.f32 %v4351_v46, %v1924_v51  ;;  %v1626_v60 = vsub.f32 0.0, %v1562_v56  ;;  %v1196_v3 = vadd.f32 %v1195_v62, %v1026_v38  ;;  %v1531_v10 = vand.u32 2147483647, %v4416_v61 }
  0xd9   : > { %v949_v4 = vpop.f32.mrf.mxu0  ;;  %v1950_v39 = vand.u32 2147483647, %v4442_v29  ;;  %v1952_v41 = vand.u32 2147483648, %v4442_v29  ;;  %vm1946_vm11 = vweird.f32 %v4442_v29  ;;  %vm1817_vm2 = vcmp.ge.f32.partialorder %v4389_v24, 0.0 }
  0xda   : > { %v2935_v7 = vsel %vm1783_vm8, %v1924_v51, %v2871_v59  ;;  %v1725_v46 = vmul.f32 1.442695, %v1626_v60  ;;  %v1300_v14 = vadd.f32 %v1196_v3, %v374_v63  ;;  %v1119_v16 = vadd.f32 %v1118_v9, %v949_v4  ;;  %v4512_v3 = vpop.f32.mrf.mxu3 }
  0xdb   : > { %v2999_v13 = vmul.f32 %v2935_v7, %v4315_v20  ;;  %v1595_v19 = vsub.f32 0.0, %v1531_v10  ;;  %v1431_v22 = vld [vmem:[#allocation2 + $0x120] sm:$0xff]  ;;  %v4439_v27 = vpop.eup %3757  ;;  %vm4489_vm13 = vcmp.eq.f32.partialorder %v1950_v39, 8.507059e+37  ;;  %v1953_v59 = vor.u32 1.1754944e-38, %v1952_v41 }
  0xdc   : > { %3761 = vpow2.f32 %v1725_v46  ;;  %988 = vmatmul.bf16.gmra.mxu0 %v3409_v6  ;;  %1365 = vst.msk [vmem:[#allocation2 + $0x128] sm:$0xff] %vm6514_vm3, %v1300_v14  ;;  %v1269_v26 = vadd.f32 %v1119_v16, %v343_v11  ;;  %1068 = vmatmul.bf16.gmra.mxu2 %v3537_v17  ;;  %v4444_v31 = vpop.eup %3759  ;;  %v4450_v32 = vadd.f32 %v4299_v12, %v1431_v22  ;;  %v4455_v33 = vadd.f32 1.0, %v4439_v27 }
  0xdd   : > { %v3063_v20 = vpack.c.bf16 %v2999_v13, %v2999_v13  ;;  %v1663_v30 = vmul.f32 1.442695, %v1595_v19  ;;  %3763 = vrcp.f32 %v4436_v25  ;;  %v4458_v34 = vadd.f32 1.0, %v4444_v31  ;;  %v1400_v2 = vld [vmem:[#allocation2 + $0x28] sm:$0xff] }
  0xde   : > { %3765 = vrcp.f32 %v4442_v29  ;;  %1334 = vst.msk [vmem:[#allocation2 + $0x30] sm:$0xff] %vm6514_vm3, %v1269_v26  ;;  %v1563_v40 = vand.u32 2147483647, %v4450_v32  ;;  %v2432_v42 = vand.u32 2147483648, %v4455_v33  ;;  %v2430_v53 = vand.u32 2147483647, %v4455_v33 }
  0xdf   : > { %3128 = vst.msk [vmem:[%s4431_s20] sm:$0xf] %vm6516_vm9, %v3063_v20  ;;  %3767 = vpow2.f32 %v1663_v30  ;;  %v1967_v45 = vand.u32 2147483648, %v4458_v34  ;;  %v1965_v56 = vand.u32 2147483647, %v4458_v34  ;;  %v4495_v51 = vpop.f32.mrf.mxu2  ;;  %vm2426_vm14 = vweird.f32 %v4455_v33 }
  0xe0   : > { %3769 = vrcp.f32 %v4455_v33  ;;  %v1627_v57 = vsub.f32 0.0, %v1563_v40  ;;  %v4500_v60 = vor.u32 1.1754944e-38, %v2432_v42  ;;  %vm1961_vm1 = vweird.f32 %v4458_v34 }
  0xe1   : > { %3771 = vrcp.f32 %v4458_v34  ;;  %v4507_v0 = vor.u32 1.1754944e-38, %v1967_v45  ;;  %vm4520_vm5 = vcmp.eq.f32.partialorder %v2430_v53, 8.507059e+37  ;;  %vm4530_vm7 = vcmp.eq.f32.partialorder %v1965_v56, 8.507059e+37  ;;  %v4569_v56 = vpop.f32.mrf.mxu0 }
  0xe2   : > { %v4460_v35 = vpop.eup %3761  ;;  %v1727_v16 = vmul.f32 1.442695, %v1627_v57  ;;  %v4538_v22 = vadd.f32 %v4299_v12, %v1400_v2 }
  0xe3   : > { %v4470_v43 = vpop.eup %3763  ;;  %v4476_v47 = vadd.f32 1.0, %v4460_v35  ;;  %v1432_v14 = vld [vmem:[#allocation2 + $0x128] sm:$0xff] }
  0xe4   : > { %v4478_v48 = vpop.eup %3765  ;;  %v1927_v49 = vmul.f32 %v4470_v43, %v4436_v25  ;;  %vm1932_vm0 = vweird.f32 %v4470_v43 }
  0xe5   : > { %v1942_v54 = vmul.f32 %v4478_v48, %v4442_v29  ;;  %3773 = vrcp.f32 %v4476_v47  ;;  %v4497_v58 = vpop.eup %3767  ;;  %v2445_v46 = vand.u32 2147483647, %v4476_v47  ;;  %v2447_v10 = vand.u32 2147483648, %v4476_v47  ;;  %vm1933_vm3 = vmor %vm1931_vm10, %vm1932_vm0  ;;  %v1401_v39 = vld [vmem:[#allocation2 + $0x30] sm:$0xff] }
  0xe6   : > { %v1928_v38 = vsub.f32 1.0, %v1927_v49  ;;  %v4502_v62 = vpop.eup %3769  ;;  %v4510_v1 = vadd.f32 1.0, %v4497_v58  ;;  %vm1947_vm6 = vweird.f32 %v4478_v48  ;;  %vm1786_vm10 = vcmp.ge.f32.partialorder %v4393_v28, 0.0 }
  0xe7   : > { %v1943_v63 = vsub.f32 1.0, %v1942_v54  ;;  %v4514_v4 = vpop.eup %3771  ;;  %v2422_v7 = vmul.f32 %v4502_v62, %v4455_v33  ;;  %vm2427_vm9 = vweird.f32 %v4502_v62  ;;  %vm1948_vm4 = vmor %vm1946_vm11, %vm1947_vm6  ;;  %vm4556_vm0 = vcmp.eq.f32.partialorder %v2445_v46, 8.507059e+37  ;;  %v4582_v50 = vpop.f32.mrf.mxu2 }
  0xe8   : > { %v1929_v6 = vmul.f32 %v4470_v43, %v1928_v38  ;;  %v1957_v13 = vmul.f32 %v4514_v4, %v4458_v34  ;;  %3775 = vrcp.f32 %v4510_v1  ;;  %vm1962_vm8 = vweird.f32 %v4514_v4  ;;  %v4595_v38 = vpop.f32.mrf.mxu1 }
  0xe9   : > { %v1944_v11 = vmul.f32 %v4478_v48, %v1943_v63  ;;  %v2423_v19 = vsub.f32 1.0, %v2422_v7  ;;  %v2448_v40 = vor.u32 1.1754944e-38, %v2447_v10  ;;  %v1980_v29 = vand.u32 2147483647, %v4510_v1  ;;  %v4605_v7 = vpop.f32.mrf.mxu3 }
  0xea   : > { %v1930_v17 = vadd.f32 %v4470_v43, %v1929_v6  ;;  %v1958_v30 = vsub.f32 1.0, %v1957_v13  ;;  %vm1818_vm11 = vcmp.ge.f32.partialorder %v4402_v44, 0.0  ;;  %3777 = vpow2.f32 %v1727_v16 }
  0xeb   : > { %v3774_v20 = vpop.eup %3773  ;;  %v1945_v26 = vadd.f32 %v4478_v48, %v1944_v11  ;;  %v2424_v37 = vmul.f32 %v4502_v62, %v2423_v19  ;;  %vm1976_vm6 = vweird.f32 %v4510_v1 }
  0xec   : > { %v1934_v36 = vsel %vm1933_vm3, %v4470_v43, %v1930_v17  ;;  %v2437_v25 = vmul.f32 %v3774_v20, %v4476_v47  ;;  %v1959_v43 = vmul.f32 %v4514_v4, %v1958_v30  ;;  %vm4576_vm3 = vmor %vm2426_vm14, %vm2427_vm9  ;;  %vm6532_vm14 = vweird.f32 %v4476_v47 }
  0xed   : > { %v1939_v41 = vsel %vm4482_vm12, %v1938_v52, %v1934_v36  ;;  %v1949_v42 = vsel %vm1948_vm4, %v4478_v48, %v1945_v26  ;;  %v2425_v53 = vadd.f32 %v4502_v62, %v2424_v37  ;;  %vm2442_vm12 = vweird.f32 %v3774_v20  ;;  %vm1963_vm9 = vmor %vm1961_vm1, %vm1962_vm8 }
  0xee   : > { %v2872_v45 = vmul.f32 %v4426_v18, %v1939_v41  ;;  %v1954_v49 = vsel %vm4489_vm13, %v1953_v59, %v1949_v42  ;;  %v2438_v54 = vsub.f32 1.0, %v2437_v25  ;;  %v1960_v18 = vadd.f32 %v4514_v4, %v1959_v43  ;;  %v4584_v52 = vpop.eup %3775  ;;  %v3667_v43 = vld [vmem:[%s4091_s28 + $0xd4] sm:$0xf] }
  0xef   : > { %v2873_v57 = vmul.f32 %v4433_v23, %v1954_v49  ;;  %v2429_v33 = vsel %vm4576_vm3, %v4502_v62, %v2425_v53  ;;  %v1532_v59 = vand.u32 2147483647, %v4538_v22  ;;  %vm6531_vm13 = vcmp.ge.f32.partialorder %v4384_v15, 0.0 }
  0xf0   : > { %v2936_v23 = vsel %vm1784_vm15, %v1939_v41, %v2872_v45  ;;  %v2439_v55 = vmul.f32 %v3774_v20, %v2438_v54  ;;  %v2434_v6 = vsel %vm4520_vm5, %v4500_v60, %v2429_v33  ;;  %v1964_v62 = vsel %vm1963_vm9, %v4514_v4, %v1960_v18  ;;  %vm2443_vm15 = vmor %vm6532_vm14, %vm2442_vm12  ;;  %v4621_v16 = vpop.eup %3777  ;;  %v3426_v45 = vld [vmem:[%s4091_s28 + $0xd8] sm:$0xf0]  ;;  %v1123_v54 = vpop.f32.mrf.mxu1  ;;  %v3546_v33 = vld [vmem:[%s4091_s28 + $0x1c8] sm:$0xf0] }
  0xf1   : > { %v3000_v63 = vmul.f32 %v2936_v23, %v4376_v8  ;;  %v2937_v2 = vsel %vm6531_vm13, %v1954_v49, %v2873_v57  ;;  %v2905_v46 = vmul.f32 %v4439_v27, %v2434_v6  ;;  %v1969_v8 = vsel %vm4530_vm7, %v4507_v0, %v1964_v62  ;;  %v4652_v49 = vpop.f32.mrf.mxu2  ;;  %v3697_v23 = vld [vmem:[%s4091_s28 + $0x1c4] sm:$0xf] }
  0xf2   : > { %v3001_v34 = vmul.f32 %v2937_v2, %v4384_v15  ;;  %v2440_v10 = vadd.f32 %v3774_v20, %v2439_v55  ;;  %v2874_v13 = vmul.f32 %v4444_v31, %v1969_v8  ;;  %v1972_v60 = vmul.f32 %v4584_v52, %v4510_v1  ;;  %v1203_v55 = vpop.f32.mrf.mxu3 }
  0xf3   : > { %v3064_v11 = vpack.c.bf16 %v3000_v63, %v3000_v63  ;;  %v1982_v15 = vand.u32 2147483648, %v4510_v1  ;;  %v2969_v27 = vsel %vm1817_vm2, %v2434_v6, %v2905_v46  ;;  %v1596_v0 = vsub.f32 0.0, %v1532_v59  ;;  %v375_v6 = vld [vmem:[#allocation2 + $0x130] sm:$0xff]  ;;  %v3416_v46 = vld [vmem:[%s4091_s28 + $0xc0] sm:$0xf] }
  0xf4   : > { %v3065_v4 = vpack.c.bf16 %v3001_v34, %v3001_v34  ;;  %v2444_v9 = vsel %vm2443_vm15, %v3774_v20, %v2440_v10  ;;  %vm6533_vm1 = vcmask 257024   ;;  %v3033_v31 = vmul.f32 %v2969_v27, %v4389_v24  ;;  %v3698_v27 = vld [vmem:[%s4091_s28 + $0x1c4] sm:$0xf0] }
  0xf5   : > { %3129 = vst.msk [vmem:[%s4431_s20 + $0x4] sm:$0xf] %vm6533_vm1, %v3064_v11  ;;  %v2938_v47 = vsel %vm1786_vm10, %v1969_v8, %v2874_v13  ;;  %v2449_v17 = vsel %vm4556_vm0, %v2448_v40, %v2444_v9  ;;  %v1973_v19 = vsub.f32 1.0, %v1972_v60  ;;  %vm6534_vm4 = vmmov %vm6533_vm1  ;;  %v4635_v30 = vadd.f32 1.0, %v4621_v16  ;;  %v376_v60 = vld [vmem:[#allocation2 + $0x138] sm:$0xff] }
  0xf6   : > { %3130 = vst.msk [vmem:[%s4431_s20 + $0x8] sm:$0xf] %vm6534_vm4, %v3065_v4  ;;  %v3002_v20 = vmul.f32 %v2938_v47, %v4393_v28  ;;  %v2906_v26 = vmul.f32 %v4460_v35, %v2449_v17  ;;  %v1665_v24 = vmul.f32 1.442695, %v1596_v0  ;;  %v3097_v36 = vpack.c.bf16 %v3033_v31, %v3033_v31  ;;  %v954_v35 = vpop.f32.mrf.mxu0  ;;  %vm6535_vm5 = vmmov %vm6533_vm1  ;;  %v3544_v4 = vld [vmem:[%s4091_s28 + $0x1c0] sm:$0xf] }
  0xf7   : > { %v1974_v37 = vmul.f32 %v4584_v52, %v1973_v19  ;;  %vm1977_vm2 = vweird.f32 %v4584_v52  ;;  %v4640_v25 = vadd.f32 %v4299_v12, %v1432_v14  ;;  %3779 = vrcp.f32 %v4635_v30  ;;  %vm6536_vm7 = vmmov %vm6533_vm1 }
  0xf8   : > { %v3066_v40 = vpack.c.bf16 %v3002_v20, %v3002_v20  ;;  %v2970_v28 = vsel %vm1818_vm11, %v2449_v17, %v2906_v26  ;;  %3162 = vst.msk [vmem:[%s4431_s20 + $0x88] sm:$0xf] %vm6535_vm5, %v3097_v36  ;;  %vm1978_vm8 = vmor %vm1976_vm6, %vm1977_vm2  ;;  %v1983_v53 = vor.u32 1.1754944e-38, %v1982_v15  ;;  %3781 = vpow2.f32 %v1665_v24  ;;  %v3666_v15 = vld [vmem:[%s4091_s28 + $0xc4] sm:$0xf0]  ;;  %v345_v17 = vld [vmem:[#allocation2 + $0x40] sm:$0xff] }
  0xf9   : > { %v3034_v41 = vmul.f32 %v2970_v28, %v4402_v44  ;;  %v1975_v42 = vadd.f32 %v4584_v52, %v1974_v37  ;;  %v1564_v44 = vand.u32 2147483647, %v4640_v25  ;;  %v4660_v57 = vadd.f32 %v4299_v12, %v1401_v39  ;;  %vm6537_vm3 = vmmov %vm6533_vm1  ;;  %v377_v39 = vld [vmem:[#allocation2 + $0x140] sm:$0xff]  ;;  %v1125_v28 = vpop.f32.mrf.mxu1 }
  0xfa   : > { %3131 = vst.msk [vmem:[%s4431_s20 + $0xc] sm:$0xf] %vm6536_vm7, %v3066_v40  ;;  %vm1981_vm10 = vcmp.eq.f32.partialorder %v1980_v29, 8.507059e+37  ;;  %vm1787_vm0 = vcmp.ge.f32.partialorder %v4416_v61, 0.0  ;;  %v1199_v1 = vadd.f32 %v4512_v3, %v4495_v51  ;;  %v1121_v29 = vadd.f32 %v4595_v38, %v4569_v56  ;;  %v1036_v40 = vpop.f32.mrf.mxu2 }
  0xfb   : > { %v3098_v48 = vpack.c.bf16 %v3034_v41, %v3034_v41  ;;  %v1979_v18 = vsel %vm1978_vm8, %v4584_v52, %v1975_v42  ;;  %v1628_v63 = vsub.f32 0.0, %v1564_v44  ;;  %v1533_v2 = vand.u32 2147483647, %v4660_v57  ;;  %v344_v52 = vld [vmem:[#allocation2 + $0x38] sm:$0xff]  ;;  %v346_v42 = vld [vmem:[#allocation2 + $0x48] sm:$0xff] }
  0xfc   : > { %v1984_v59 = vsel %vm1981_vm10, %v1983_v53, %v1979_v18  ;;  %v3429_v34 = vor.u32 %v3667_v43, %v3426_v45  ;;  %v3549_v13 = vor.u32 %v3697_v23, %v3546_v33  ;;  %v2462_v56 = vand.u32 2147483648, %v4635_v30  ;;  %v1205_v45 = vpop.f32.mrf.mxu3  ;;  %v3669_v23 = vld [vmem:[%s4091_s28 + $0xe4] sm:$0xf]  ;;  %v3699_v33 = vld [vmem:[%s4091_s28 + $0x1d4] sm:$0xf] }
  0xfd   : > { %3163 = vst.msk [vmem:[%s4431_s20 + $0x8c] sm:$0xf] %vm6537_vm3, %v3098_v48  ;;  %v2875_v62 = vmul.f32 %v4497_v58, %v1984_v59  ;;  %v4677_v8 = vpop.eup %3779  ;;  %v1729_v10 = vmul.f32 1.442695, %v1628_v63  ;;  %v1597_v11 = vsub.f32 0.0, %v1533_v2  ;;  %v1201_v58 = vadd.f32 %v4605_v7, %v4582_v50 }
  0xfe   : > { %v2452_v3 = vmul.f32 %v4677_v8, %v4635_v30  ;;  %v1301_v38 = vadd.f32 %v1199_v1, %v375_v6  ;;  %vm6538_vm11 = vcmask 56320   ;;  %v4690_v9 = vpop.eup %3781  ;;  %v1270_v7 = vadd.f32 %v1121_v29, %v344_v52  ;;  %v956_v24 = vpop.f32.mrf.mxu0  ;;  %v3434_v2 = vld [vmem:[%s4091_s28 + $0xe8] sm:$0xf0]  ;;  %v3554_v6 = vld [vmem:[%s4091_s28 + $0x1d8] sm:$0xf0] }
  0xff   : > { %v2939_v51 = vsel %vm1787_vm0, %v1984_v59, %v2875_v62  ;;  %3619 = vmatmul.msk.bf16.gmra.mxu1 %vm6538_vm11, %v3429_v34  ;;  %3783 = vpow2.f32 %v1729_v10  ;;  %v1667_v50 = vmul.f32 1.442695, %v1597_v11  ;;  %vm6539_vm12 = vmmov %vm6538_vm11  ;;  %v4695_v31 = vadd.f32 1.0, %v4690_v9 }
 0x100   : > { %v3003_v0 = vmul.f32 %v2939_v51, %v4416_v61  ;;  %3634 = vmatmul.msk.bf16.gmra.mxu3 %vm6539_vm12, %v3549_v13  ;;  %v2453_v14 = vsub.f32 1.0, %v2452_v3  ;;  %vm6540_vm9 = vcmask 261120   ;;  %v1302_v47 = vadd.f32 %v1201_v58, %v376_v60 }
 0x101   : > { %1366 = vst.msk [vmem:[#allocation2 + $0x130] sm:$0xff] %vm6540_vm9, %v1301_v38  ;;  %v1124_v19 = vadd.f32 %v1123_v54, %v954_v35  ;;  %3785 = vpow2.f32 %v1667_v50  ;;  %vm6541_vm13 = vmmov %vm6540_vm9  ;;  %v3417_v61 = vor.u32 %v3666_v15, %v3416_v46  ;;  %v3545_v26 = vor.u32 %v3698_v27, %v3544_v4  ;;  %v378_v54 = vld [vmem:[#allocation2 + $0x148] sm:$0xff] }
 0x102   : > { %v3067_v20 = vpack.c.bf16 %v3003_v0, %v3003_v0  ;;  %1335 = vst.msk [vmem:[#allocation2 + $0x38] sm:$0xff] %vm6541_vm13, %v1270_v7  ;;  %v2454_v36 = vmul.f32 %v4677_v8, %v2453_v14  ;;  %vm2457_vm14 = vweird.f32 %v4677_v8  ;;  %v2460_v37 = vand.u32 2147483647, %v4635_v30  ;;  %vm6542_vm15 = vmmov %vm6540_vm9 }
 0x103   : > { %3787 = vrcp.f32 %v4695_v31  ;;  %1367 = vst.msk [vmem:[#allocation2 + $0x138] sm:$0xff] %vm6542_vm15, %v1302_v47  ;;  %v1271_v35 = vadd.f32 %v1124_v19, %v345_v17  ;;  %993 = vmatmul.bf16.gmra.mxu0 %v3417_v61  ;;  %1073 = vmatmul.bf16.gmra.mxu2 %v3545_v26  ;;  %v1204_v41 = vadd.f32 %v1203_v55, %v4652_v49  ;;  %vm2456_vm4 = vweird.f32 %v4635_v30  ;;  %vm6545_vm5 = vmmov %vm6540_vm9 }
 0x104   : > { %3132 = vst.msk [vmem:[%s4431_s20 + $0x10] sm:$0xf] %vm6533_vm1, %v3067_v20  ;;  %v2455_v43 = vadd.f32 %v4677_v8, %v2454_v36  ;;  %v1126_v53 = vadd.f32 %v1125_v28, %v956_v24  ;;  %vm4713_vm2 = vmor %vm2456_vm4, %vm2457_vm14  ;;  %v2463_v18 = vor.u32 1.1754944e-38, %v2462_v56  ;;  %v1206_v30 = vadd.f32 %v1205_v45, %v1036_v40 }
 0x105   : > { %v4709_v44 = vpop.eup %3783  ;;  %1336 = vst.msk [vmem:[#allocation2 + $0x40] sm:$0xff] %vm6545_vm5, %v1271_v35  ;;  %v1303_v49 = vadd.f32 %v1204_v41, %v377_v39  ;;  %vm2461_vm6 = vcmp.eq.f32.partialorder %v2460_v37, 8.507059e+37  ;;  %vm1819_vm7 = vcmp.ge.f32.partialorder %v4450_v32, 0.0  ;;  %vm6546_vm8 = vmmov %vm6545_vm5  ;;  %v1997_v10 = vand.u32 2147483648, %v4695_v31  ;;  %v3668_v37 = vld [vmem:[%s4091_s28 + $0xd4] sm:$0xf0] }
 0x106   : > { %v2459_v55 = vsel %vm4713_vm2, %v4677_v8, %v2455_v43  ;;  %v4724_v59 = vadd.f32 1.0, %v4709_v44  ;;  %v1272_v63 = vadd.f32 %v1126_v53, %v346_v42  ;;  %v1304_v29 = vadd.f32 %v1206_v30, %v378_v54  ;;  %vm6547_vm10 = vmmov %vm6545_vm5 }
 0x107   : > { %v4728_v62 = vpop.eup %3785  ;;  %v2464_v1 = vsel %vm2461_vm6, %v2463_v18, %v2459_v55  ;;  %1368 = vst.msk [vmem:[#allocation2 + $0x140] sm:$0xff] %vm6546_vm8, %v1303_v49  ;;  %v1995_v8 = vand.u32 2147483647, %v4695_v31  ;;  %v3437_v58 = vor.u32 %v3669_v23, %v3434_v2  ;;  %v3557_v15 = vor.u32 %v3699_v33, %v3554_v6  ;;  %vm6548_vm0 = vmmov %vm6545_vm5 }
 0x108   : > { %v1433_v52 = vld [vmem:[#allocation2 + $0x130] sm:$0xff]  ;;  %v2907_v46 = vmul.f32 %v4621_v16, %v2464_v1  ;;  %3789 = vrcp.f32 %v4724_v59  ;;  %1337 = vst.msk [vmem:[#allocation2 + $0x48] sm:$0xff] %vm6547_vm10, %v1272_v63  ;;  %v4739_v60 = vadd.f32 1.0, %v4728_v62  ;;  %v2475_v51 = vand.u32 2147483647, %v4724_v59  ;;  %vm6552_vm15 = vmmov %vm6533_vm1 }
 0x109   : > { %v3788_v34 = vpop.eup %3787  ;;  %v1402_v11 = vld [vmem:[#allocation2 + $0x38] sm:$0xff]  ;;  %1369 = vst.msk [vmem:[#allocation2 + $0x148] sm:$0xff] %vm6548_vm0, %v1304_v29  ;;  %v4746_v3 = vadd.f32 %v4299_v12, %v1433_v52  ;;  %v2477_v27 = vand.u32 2147483648, %v4724_v59  ;;  %vm1788_vm3 = vcmp.ge.f32.partialorder %v4538_v22, 0.0  ;;  %vm1991_vm11 = vweird.f32 %v4695_v31 }
 0x10a   : > { %v1987_v13 = vmul.f32 %v3788_v34, %v4695_v31  ;;  %v2971_v16 = vsel %vm1819_vm7, %v2464_v1, %v2907_v46  ;;  %v4749_v56 = vadd.f32 %v4299_v12, %v1402_v11  ;;  %3791 = vrcp.f32 %v4739_v60  ;;  %v1434_v47 = vld [vmem:[#allocation2 + $0x138] sm:$0xff] }
 0x10b   : > { %v3035_v38 = vmul.f32 %v2971_v16, %v4450_v32  ;;  %v1565_v0 = vand.u32 2147483647, %v4746_v3  ;;  %vm1992_vm12 = vweird.f32 %v3788_v34  ;;  %vm4758_vm9 = vcmp.eq.f32.partialorder %v1995_v8, 8.507059e+37 }
 0x10c   : > { %v1988_v4 = vsub.f32 1.0, %v1987_v13  ;;  %v1534_v14 = vand.u32 2147483647, %v4749_v56  ;;  %v1403_v17 = vld [vmem:[#allocation2 + $0x40] sm:$0xff]  ;;  %v1998_v20 = vor.u32 1.1754944e-38, %v1997_v10  ;;  %vm2471_vm13 = vweird.f32 %v4724_v59  ;;  %vm1993_vm2 = vmor %vm1991_vm11, %vm1992_vm12 }
 0x10d   : > { %v3099_v50 = vpack.c.bf16 %v3035_v38, %v3035_v38  ;;  %v1629_v61 = vsub.f32 0.0, %v1565_v0  ;;  %vm6551_vm14 = vcmask 56320   ;;  %vm4767_vm1 = vcmp.eq.f32.partialorder %v2475_v51, 8.507059e+37  ;;  %v959_v0 = vpop.f32.mrf.mxu0 }
 0x10e   : > { %v1989_v7 = vmul.f32 %v3788_v34, %v1988_v4  ;;  %v3790_v32 = vpop.eup %3789  ;;  %v1435_v26 = vld [vmem:[#allocation2 + $0x140] sm:$0xff]  ;;  %v2478_v39 = vor.u32 1.1754944e-38, %v2477_v27  ;;  %v1598_v40 = vsub.f32 0.0, %v1534_v14  ;;  %vm6555_vm4 = vmmov %vm6551_vm14  ;;  %vm2006_vm6 = vweird.f32 %v4739_v60  ;;  %v1128_v14 = vpop.f32.mrf.mxu1 }
 0x10f   : > { %3620 = vmatmul.msk.bf16.gmra.mxu1 %vm6551_vm14, %v3437_v58  ;;  %3164 = vst.msk [vmem:[%s4431_s20 + $0x90] sm:$0xf] %vm6552_vm15, %v3099_v50  ;;  %v2467_v36 = vmul.f32 %v3790_v32, %v4724_v59  ;;  %v1404_v28 = vld [vmem:[#allocation2 + $0x48] sm:$0xff]  ;;  %vm2472_vm5 = vweird.f32 %v3790_v32  ;;  %v1731_v35 = vmul.f32 1.442695, %v1629_v61  ;;  %v4777_v41 = vadd.f32 %v4299_v12, %v1434_v47 }
 0x110   : > { %v1990_v24 = vadd.f32 %v3788_v34, %v1989_v7  ;;  %3635 = vmatmul.msk.bf16.gmra.mxu3 %vm6555_vm4, %v3557_v15  ;;  %v4780_v42 = vadd.f32 %v4299_v12, %v1403_v17  ;;  %v3792_v43 = vpop.eup %3791  ;;  %v1669_v54 = vmul.f32 1.442695, %v1598_v40  ;;  %v4783_v48 = vadd.f32 %v4299_v12, %v1435_v26  ;;  %vm2473_vm8 = vmor %vm2471_vm13, %vm2472_vm5 }
 0x111   : > { %v2468_v53 = vsub.f32 1.0, %v2467_v36  ;;  %vm1820_vm7 = vcmp.ge.f32.partialorder %v4640_v25, 0.0  ;;  %v2002_v18 = vmul.f32 %v3792_v43, %v4739_v60  ;;  %3793 = vpow2.f32 %v1731_v35  ;;  %v3424_v36 = vld [vmem:[%s4091_s28 + $0xd0] sm:$0xf] }
 0x112   : > { %v1994_v45 = vsel %vm1993_vm2, %v3788_v34, %v1990_v24  ;;  %v4790_v49 = vadd.f32 %v4299_v12, %v1404_v28  ;;  %3795 = vpow2.f32 %v1669_v54  ;;  %v1566_v30 = vand.u32 2147483647, %v4777_v41  ;;  %v347_v24 = vld [vmem:[#allocation2 + $0x50] sm:$0xff] }
 0x113   : > { %v1999_v31 = vsel %vm4758_vm9, %v1998_v20, %v1994_v45  ;;  %v2469_v33 = vmul.f32 %v3790_v32, %v2468_v53  ;;  %v2003_v55 = vsub.f32 1.0, %v2002_v18  ;;  %v2010_v63 = vand.u32 2147483647, %v4739_v60  ;;  %v4844_v45 = vpop.f32.mrf.mxu2 }
 0x114   : > { %v2876_v23 = vmul.f32 %v4690_v9, %v1999_v31  ;;  %v2012_v2 = vand.u32 2147483648, %v4739_v60  ;;  %v1535_v6 = vand.u32 2147483647, %v4780_v42  ;;  %v1630_v29 = vsub.f32 0.0, %v1566_v30 }
 0x115   : > { %v2470_v52 = vadd.f32 %v3790_v32, %v2469_v33  ;;  %v1567_v12 = vand.u32 2147483647, %v4783_v48  ;;  %v2004_v34 = vmul.f32 %v3792_v43, %v2003_v55  ;;  %vm2007_vm10 = vweird.f32 %v3792_v43  ;;  %v4856_v55 = vpop.f32.mrf.mxu3 }
 0x116   : > { %v2940_v1 = vsel %vm1788_vm3, %v1999_v31, %v2876_v23  ;;  %v1599_v46 = vsub.f32 0.0, %v1535_v6  ;;  %v1733_v10 = vmul.f32 1.442695, %v1630_v29  ;;  %v1536_v13 = vand.u32 2147483647, %v4790_v49  ;;  %vm2008_vm0 = vmor %vm2006_vm6, %vm2007_vm10  ;;  %v1436_v31 = vld [vmem:[#allocation2 + $0x148] sm:$0xff] }
 0x117   : > { %v3004_v9 = vmul.f32 %v2940_v1, %v4538_v22  ;;  %v2474_v8 = vsel %vm2473_vm8, %v3790_v32, %v2470_v52  ;;  %v1631_v11 = vsub.f32 0.0, %v1567_v12  ;;  %v4805_v58 = vpop.eup %3793  ;;  %v2005_v22 = vadd.f32 %v3792_v43, %v2004_v34  ;;  %vm6556_vm3 = vmmov %vm6552_vm15  ;;  %v4868_v52 = vpop.f32.mrf.mxu0 }
 0x118   : > { %v2479_v16 = vsel %vm4767_vm1, %v2478_v39, %v2474_v8  ;;  %v1671_v51 = vmul.f32 1.442695, %v1599_v46  ;;  %v4809_v38 = vpop.eup %3795  ;;  %v2013_v4 = vor.u32 1.1754944e-38, %v2012_v2  ;;  %v4815_v27 = vadd.f32 1.0, %v4805_v58  ;;  %vm6557_vm9 = vmmov %vm6556_vm3  ;;  %v3552_v46 = vld [vmem:[%s4091_s28 + $0x1d0] sm:$0xf] }
 0x119   : > { %v3068_v15 = vpack.c.bf16 %v3004_v9, %v3004_v9  ;;  %v2908_v59 = vmul.f32 %v4709_v44, %v2479_v16  ;;  %3797 = vpow2.f32 %v1733_v10  ;;  %v2009_v50 = vsel %vm2008_vm0, %v3792_v43, %v2005_v22  ;;  %vm6558_vm15 = vmmov %vm6556_vm3  ;;  %v4876_v9 = vld [vmem:[%s6512_s2] ss:$0 sm:$0xff]  ;;  %v3700_v8 = vld [vmem:[%s4091_s28 + $0x1d4] sm:$0xf0] }
 0x11a   : > { %vm2011_vm11 = vcmp.eq.f32.partialorder %v2010_v63, 8.507059e+37  ;;  %v4820_v7 = vadd.f32 1.0, %v4809_v38  ;;  %3799 = vpow2.f32 %v1671_v51  ;;  %v1735_v47 = vmul.f32 1.442695, %v1631_v11 }
 0x11b   : > { %3133 = vst.msk [vmem:[%s4431_s20 + $0x14] sm:$0xf] %vm6556_vm3, %v3068_v15  ;;  %v2972_v44 = vsel %vm1820_vm7, %v2479_v16, %v2908_v59  ;;  %v2014_v60 = vsel %vm2011_vm11, %v2013_v4, %v2009_v50  ;;  %3801 = vrcp.f32 %v4815_v27  ;;  %v1600_v19 = vsub.f32 0.0, %v1536_v13  ;;  %v4890_v16 = vpop.f32.mrf.mxu1 }
 0x11c   : > { %v3036_v17 = vmul.f32 %v2972_v44, %v4640_v25  ;;  %v2877_v32 = vmul.f32 %v4728_v62, %v2014_v60  ;;  %vm1789_vm12 = vcmp.ge.f32.partialorder %v4660_v57, 0.0  ;;  %3803 = vrcp.f32 %v4820_v7 }
 0x11d   : > { %v1129_v20 = vadd.f32 %v1128_v14, %v959_v0  ;;  %v2490_v25 = vand.u32 2147483647, %v4815_v27  ;;  %v2492_v62 = vand.u32 2147483648, %v4815_v27  ;;  %3805 = vpow2.f32 %v1735_v47 }
 0x11e   : > { %v3100_v61 = vpack.c.bf16 %v3036_v17, %v3036_v17  ;;  %v2941_v26 = vsel %vm1789_vm12, %v2014_v60, %v2877_v32  ;;  %vm2486_vm13 = vweird.f32 %v4815_v27  ;;  %v1673_v43 = vmul.f32 1.442695, %v1600_v19 }
 0x11f   : > { %v4831_v39 = vpop.eup %3797  ;;  %v3005_v40 = vmul.f32 %v2941_v26, %v4660_v57  ;;  %v1273_v18 = vadd.f32 %v1129_v20, %v347_v24  ;;  %v3425_v23 = vor.u32 %v3668_v37, %v3424_v36  ;;  %vm2021_vm14 = vweird.f32 %v4820_v7 }
 0x120   : > { %v4836_v28 = vpop.eup %3799  ;;  %3165 = vst.msk [vmem:[%s4431_s20 + $0x94] sm:$0xf] %vm6557_vm9, %v3100_v61  ;;  %v4842_v35 = vadd.f32 1.0, %v4831_v39  ;;  %v2025_v30 = vand.u32 2147483647, %v4820_v7  ;;  %vm4862_vm1 = vcmp.eq.f32.partialorder %v2490_v25, 8.507059e+37  ;;  %v4879_v34 = vadd.f32 %v4876_v9, %v1436_v31  ;;  %v4932_v25 = vpop.f32.mrf.mxu2 }
 0x121   : > { %v4846_v53 = vpop.eup %3801  ;;  %v3069_v57 = vpack.c.bf16 %v3005_v40, %v3005_v40  ;;  %v4849_v54 = vadd.f32 1.0, %v4836_v28  ;;  %v2493_v6 = vor.u32 1.1754944e-38, %v2492_v62  ;;  %v2027_v1 = vand.u32 2147483648, %v4820_v7  ;;  %998 = vmatmul.bf16.gmra.mxu0 %v3425_v23 }
 0x122   : > { %v2482_v33 = vmul.f32 %v4846_v53, %v4815_v27  ;;  %3807 = vrcp.f32 %v4842_v35  ;;  %v4858_v63 = vpop.eup %3803  ;;  %vm2487_vm4 = vweird.f32 %v4846_v53  ;;  %vm6561_vm2 = vcmask 261120  }
 0x123   : > { %3134 = vst.msk [vmem:[%s4431_s20 + $0x18] sm:$0xf] %vm6558_vm15, %v3069_v57  ;;  %3809 = vrcp.f32 %v4849_v54  ;;  %v2017_v12 = vmul.f32 %v4858_v63, %v4820_v7  ;;  %v4884_v10 = vpop.eup %3805  ;;  %vm1821_vm5 = vcmp.ge.f32.partialorder %v4746_v3, 0.0  ;;  %v2505_v11 = vand.u32 2147483647, %v4842_v35  ;;  %vm2488_vm3 = vmor %vm2486_vm13, %vm2487_vm4 }
 0x124   : > { %v2483_v29 = vsub.f32 1.0, %v2482_v33  ;;  %1338 = vst.msk [vmem:[#allocation2 + $0x50] sm:$0xff] %vm6561_vm2, %v1273_v18  ;;  %v2507_v13 = vand.u32 2147483648, %v4842_v35  ;;  %v2042_v15 = vand.u32 2147483648, %v4849_v54  ;;  %3811 = vpow2.f32 %v1673_v43 }
 0x125   : > { %v2018_v51 = vsub.f32 1.0, %v2017_v12  ;;  %v2040_v59 = vand.u32 2147483647, %v4849_v54  ;;  %v4895_v4 = vadd.f32 1.0, %v4884_v10  ;;  %vm1790_vm6 = vcmp.ge.f32.partialorder %v4749_v56, 0.0 }
 0x126   : > { %v2484_v22 = vmul.f32 %v4846_v53, %v2483_v29  ;;  %vm4898_vm7 = vcmp.eq.f32.partialorder %v2025_v30, 8.507059e+37  ;;  %v2028_v50 = vor.u32 1.1754944e-38, %v2027_v1  ;;  %vm2501_vm8 = vweird.f32 %v4842_v35  ;;  %v4950_v30 = vpop.f32.mrf.mxu3 }
 0x127   : > { %v3553_v44 = vor.u32 %v3700_v8, %v3552_v46  ;;  %v2019_v47 = vmul.f32 %v4858_v63, %v2018_v51  ;;  %vm2022_vm10 = vweird.f32 %v4858_v63  ;;  %vm2036_vm0 = vweird.f32 %v4849_v54 }
 0x128   : > { %v4903_v60 = vpop.eup %3807  ;;  %v2485_v14 = vadd.f32 %v4846_v53, %v2484_v22  ;;  %3813 = vrcp.f32 %v4895_v4  ;;  %vm4918_vm11 = vcmp.eq.f32.partialorder %v2505_v11, 8.507059e+37  ;;  %v2508_v20 = vor.u32 1.1754944e-38, %v2507_v13  ;;  %vm2023_vm9 = vmor %vm2021_vm14, %vm2022_vm10  ;;  %v4974_v22 = vpop.f32.mrf.mxu1 }
 0x129   : > { %v4910_v17 = vpop.eup %3809  ;;  %v2497_v32 = vmul.f32 %v4903_v60, %v4842_v35  ;;  %v2043_v61 = vor.u32 1.1754944e-38, %v2042_v15  ;;  %v2522_v26 = vand.u32 2147483648, %v4895_v4  ;;  %1078 = vmatmul.bf16.gmra.mxu2 %v3553_v44  ;;  %v2020_v36 = vadd.f32 %v4858_v63, %v2019_v47  ;;  %v3432_v15 = vld [vmem:[%s4091_s28 + $0xe0] sm:$0xf] }
 0x12a   : > { %v2489_v24 = vsel %vm2488_vm3, %v4846_v53, %v2485_v14  ;;  %v2032_v27 = vmul.f32 %v4910_v17, %v4849_v54  ;;  %vm4927_vm12 = vcmp.eq.f32.partialorder %v2040_v59, 8.507059e+37  ;;  %v1568_v40 = vand.u32 2147483647, %v4879_v34  ;;  %v4934_v62 = vpop.eup %3811 }
 0x12b   : > { %v2494_v43 = vsel %vm4862_vm1, %v2493_v6, %v2489_v24  ;;  %v2498_v53 = vsub.f32 1.0, %v2497_v32  ;;  %vm2502_vm13 = vweird.f32 %v4903_v60  ;;  %v2520_v57 = vand.u32 2147483647, %v4895_v4  ;;  %v4960_v6 = vpop.f32.mrf.mxu0 }
 0x12c   : > { %v2909_v31 = vmul.f32 %v4805_v58, %v2494_v43  ;;  %v2024_v18 = vsel %vm2023_vm9, %v4858_v63, %v2020_v36  ;;  %vm1822_vm15 = vcmp.ge.f32.partialorder %v4777_v41, 0.0  ;;  %v2033_v23 = vsub.f32 1.0, %v2032_v27  ;;  %v1405_v63 = vld [vmem:[#allocation2 + $0x50] sm:$0xff]  ;;  %v5008_v27 = vpop.f32.mrf.mxu2 }
 0x12d   : > { %v4948_v33 = vadd.f32 1.0, %v4934_v62  ;;  %v2029_v7 = vsel %vm4898_vm7, %v2028_v50, %v2024_v18  ;;  %v2499_v2 = vmul.f32 %v4903_v60, %v2498_v53  ;;  %vm1791_vm14 = vcmp.ge.f32.partialorder %v4780_v42, 0.0  ;;  %v3671_v18 = vld [vmem:[%s4091_s28 + $0xf4] sm:$0xf] }
 0x12e   : > { %vm2037_vm1 = vweird.f32 %v4910_v17  ;;  %vm2516_vm4 = vweird.f32 %v4895_v4  ;;  %v4958_v58 = vor.u32 1.1754944e-38, %v2522_v26  ;;  %v3814_v1 = vpop.eup %3813  ;;  %v2973_v29 = vsel %vm1821_vm5, %v2494_v43, %v2909_v31  ;;  %vm2503_vm5 = vmor %vm2501_vm8, %vm2502_vm13 }
 0x12f   : > { %v2878_v12 = vmul.f32 %v4809_v38, %v2029_v7  ;;  %v2034_v46 = vmul.f32 %v4910_v17, %v2033_v23  ;;  %3815 = vrcp.f32 %v4948_v33  ;;  %v3037_v8 = vmul.f32 %v2973_v29, %v4746_v3  ;;  %v3701_v23 = vld [vmem:[%s4091_s28 + $0x1e4] sm:$0xf]  ;;  %v379_v29 = vld [vmem:[#allocation2 + $0x150] sm:$0xff] }
 0x130   : > { %v2500_v11 = vadd.f32 %v4903_v60, %v2499_v2  ;;  %v2512_v13 = vmul.f32 %v3814_v1, %v4895_v4  ;;  %vm4970_vm2 = vcmp.eq.f32.partialorder %v2520_v57, 8.507059e+37  ;;  %v1632_v51 = vsub.f32 0.0, %v1568_v40  ;;  %v3442_v4 = vld [vmem:[%s4091_s28 + $0xf8] sm:$0xf0]  ;;  %v382_v57 = vld [vmem:[#allocation2 + $0x168] sm:$0xff] }
 0x131   : > { %v2942_v38 = vsel %vm1790_vm6, %v2029_v7, %v2878_v12  ;;  %v2035_v3 = vadd.f32 %v4910_v17, %v2034_v46  ;;  %v2055_v59 = vand.u32 2147483647, %v4948_v33  ;;  %v4985_v0 = vadd.f32 %v4876_v9, %v1405_v63  ;;  %vm2038_vm6 = vmor %vm2036_vm0, %vm2037_vm1  ;;  %v1213_v7 = vpop.f32.mrf.mxu3  ;;  %v3562_v12 = vld [vmem:[%s4091_s28 + $0x1e8] sm:$0xf0] }
 0x132   : > { %v3101_v50 = vpack.c.bf16 %v3037_v8, %v3037_v8  ;;  %v3006_v44 = vmul.f32 %v2942_v38, %v4749_v56  ;;  %v2504_v14 = vsel %vm2503_vm5, %v4903_v60, %v2500_v11  ;;  %v2513_v47 = vsub.f32 1.0, %v2512_v13 }
 0x133   : > { %v2509_v35 = vsel %vm4918_vm11, %v2508_v20, %v2504_v14  ;;  %v2039_v32 = vsel %vm2038_vm6, %v4910_v17, %v2035_v3  ;;  %vm1823_vm7 = vcmp.ge.f32.partialorder %v4783_v48, 0.0  ;;  %vm2517_vm8 = vweird.f32 %v3814_v1  ;;  %v966_v46 = vpop.f32.mrf.mxu0 }
 0x134   : > { %v2057_v26 = vand.u32 2147483648, %v4948_v33  ;;  %vm6570_vm10 = vcmask 257024   ;;  %v3070_v56 = vpack.c.bf16 %v3006_v44, %v3006_v44  ;;  %v2910_v60 = vmul.f32 %v4831_v39, %v2509_v35  ;;  %v380_v44 = vld [vmem:[#allocation2 + $0x158] sm:$0xff] }
 0x135   : > { %3166 = vst.msk [vmem:[%s4431_s20 + $0x98] sm:$0xf] %vm6570_vm10, %v3101_v50  ;;  %v2044_v54 = vsel %vm4927_vm12, %v2043_v61, %v2039_v32  ;;  %v2514_v24 = vmul.f32 %v3814_v1, %v2513_v47  ;;  %v5003_v36 = vpop.eup %3815  ;;  %vm2051_vm0 = vweird.f32 %v4948_v33  ;;  %v1737_v17 = vmul.f32 1.442695, %v1632_v51  ;;  %vm6571_vm3 = vmmov %vm6570_vm10  ;;  %v3560_v47 = vld [vmem:[%s4091_s28 + $0x1e0] sm:$0xf] }
 0x136   : > { %v2879_v19 = vmul.f32 %v4836_v28, %v2044_v54  ;;  %v1537_v20 = vand.u32 2147483647, %v4985_v0  ;;  %3135 = vst.msk [vmem:[%s4431_s20 + $0x1c] sm:$0xf] %vm6571_vm3, %v3070_v56  ;;  %v2974_v39 = vsel %vm1822_vm15, %v2509_v35, %v2910_v60  ;;  %v2047_v37 = vmul.f32 %v5003_v36, %v4948_v33  ;;  %vm5026_vm12 = vmor %vm2516_vm4, %vm2517_vm8  ;;  %v3702_v35 = vld [vmem:[%s4091_s28 + $0x1e4] sm:$0xf0] }
 0x137   : > { %v2515_v61 = vadd.f32 %v3814_v1, %v2514_v24  ;;  %vm5016_vm11 = vcmp.eq.f32.partialorder %v2055_v59, 8.507059e+37  ;;  %v2058_v40 = vor.u32 1.1754944e-38, %v2057_v26  ;;  %v3038_v43 = vmul.f32 %v2974_v39, %v4777_v41  ;;  %v1135_v59 = vpop.f32.mrf.mxu1  ;;  %vm6576_vm13 = vmmov %vm6571_vm3 }
 0x138   : > { %v2943_v53 = vsel %vm1791_vm14, %v2044_v54, %v2879_v19  ;;  %3817 = vpow2.f32 %v1737_v17  ;;  %v1601_v31 = vsub.f32 0.0, %v1537_v20  ;;  %v2048_v63 = vsub.f32 1.0, %v2047_v37  ;;  %vm6577_vm15 = vmmov %vm6571_vm3  ;;  %v381_v19 = vld [vmem:[#allocation2 + $0x160] sm:$0xff] }
 0x139   : > { %v3007_v2 = vmul.f32 %v2943_v53, %v4780_v42  ;;  %v2519_v41 = vsel %vm5026_vm12, %v3814_v1, %v2515_v61  ;;  %vm2052_vm9 = vweird.f32 %v5003_v36  ;;  %v3102_v8 = vpack.c.bf16 %v3038_v43, %v3038_v43  ;;  %v348_v1 = vld [vmem:[#allocation2 + $0x58] sm:$0xff]  ;;  %v350_v61 = vld [vmem:[#allocation2 + $0x68] sm:$0xff] }
 0x13a   : > { %v2524_v11 = vsel %vm4970_vm2, %v4958_v58, %v2519_v41  ;;  %v1675_v13 = vmul.f32 1.442695, %v1601_v31  ;;  %v1209_v42 = vadd.f32 %v4856_v55, %v4844_v45  ;;  %v2049_v3 = vmul.f32 %v5003_v36, %v2048_v63  ;;  %v3670_v58 = vld [vmem:[%s4091_s28 + $0xe4] sm:$0xf0]  ;;  %vm2053_vm14 = vmor %vm2051_vm0, %vm2052_vm9  ;;  %v5100_v41 = vld [vmem:[%s4091_s28 + $0x108] sm:$0xf0] }
 0x13b   : > { %v3071_v51 = vpack.c.bf16 %v3007_v2, %v3007_v2  ;;  %v2911_v38 = vmul.f32 %v4884_v10, %v2524_v11  ;;  %v1131_v50 = vadd.f32 %v4890_v16, %v4868_v52  ;;  %3167 = vst.msk [vmem:[%s4431_s20 + $0x9c] sm:$0xf] %vm6576_vm13, %v3102_v8  ;;  %v3445_v45 = vor.u32 %v3671_v18, %v3442_v4  ;;  %v349_v16 = vld [vmem:[#allocation2 + $0x60] sm:$0xff]  ;;  %v969_v31 = vpop.f32.mrf.mxu0 }
 0x13c   : > { %3819 = vpow2.f32 %v1675_v13  ;;  %v1305_v14 = vadd.f32 %v1209_v42, %v379_v29  ;;  %v3565_v55 = vor.u32 %v3701_v23, %v3562_v12  ;;  %v2050_v32 = vadd.f32 %v5003_v36, %v2049_v3  ;;  %v5097_v2 = vld [vmem:[%s4091_s28 + $0x104] sm:$0xf]  ;;  %v3703_v12 = vld [vmem:[%s4091_s28 + $0x1f4] sm:$0xf] }
 0x13d   : > { %3136 = vst.msk [vmem:[%s4431_s20 + $0x20] sm:$0xf] %vm6577_vm15, %v3071_v51  ;;  %v2975_v10 = vsel %vm1823_vm7, %v2524_v11, %v2911_v38  ;;  %v1274_v26 = vadd.f32 %v1131_v50, %v348_v1  ;;  %v1211_v52 = vadd.f32 %v4950_v30, %v4932_v25  ;;  %vm6578_vm1 = vcmask 261120   ;;  %vm6583_vm7 = vmmov %vm6571_vm3  ;;  %v351_v42 = vld [vmem:[#allocation2 + $0x70] sm:$0xff]  ;;  %v3672_v50 = vld [vmem:[%s4091_s28 + $0xf4] sm:$0xf0] }
 0x13e   : > { %v5060_v56 = vpop.eup %3817  ;;  %v3039_v60 = vmul.f32 %v2975_v10, %v4783_v48  ;;  %1370 = vst.msk [vmem:[#allocation2 + $0x150] sm:$0xff] %vm6578_vm1, %v1305_v14  ;;  %vm6579_vm4 = vcmask 56320   ;;  %v1134_v54 = vadd.f32 %v4974_v22, %v4960_v6  ;;  %v3433_v25 = vor.u32 %v3670_v58, %v3432_v15  ;;  %vm6581_vm5 = vmmov %vm6578_vm1  ;;  %v1046_v22 = vpop.f32.mrf.mxu2  ;;  %v3440_v51 = vld [vmem:[%s4091_s28 + $0xf0] sm:$0xf]  ;;  %v3704_v15 = vld [vmem:[%s4091_s28 + $0x1f4] sm:$0xf0] }
 0x13f   : > { %3621 = vmatmul.msk.bf16.gmra.mxu1 %vm6579_vm4, %v3445_v45  ;;  %vm6580_vm2 = vmmov %vm6579_vm4  ;;  %v2054_v30 = vsel %vm2053_vm14, %v5003_v36, %v2050_v32  ;;  %v5074_v24 = vadd.f32 1.0, %v5060_v56  ;;  %1339 = vst.msk [vmem:[#allocation2 + $0x58] sm:$0xff] %vm6581_vm5, %v1274_v26  ;;  %v1306_v48 = vadd.f32 %v1211_v52, %v380_v44  ;;  %v3561_v33 = vor.u32 %v3702_v35, %v3560_v47  ;;  %v1138_v4 = vpop.f32.mrf.mxu1  ;;  %v3568_v44 = vld [vmem:[%s4091_s28 + $0x1f0] sm:$0xf] }
 0x140   : > { %3636 = vmatmul.msk.bf16.gmra.mxu3 %vm6580_vm2, %v3565_v55  ;;  %v3103_v17 = vpack.c.bf16 %v3039_v60, %v3039_v60  ;;  %v2059_v20 = vsel %vm5016_vm11, %v2058_v40, %v2054_v30  ;;  %v1275_v39 = vadd.f32 %v1134_v54, %v349_v16  ;;  %1003 = vmatmul.bf16.gmra.mxu0 %v3433_v25  ;;  %vm6582_vm6 = vmmov %vm6578_vm1  ;;  %vm1792_vm8 = vcmp.ge.f32.partialorder %v4790_v49, 0.0  ;;  %v1215_v40 = vpop.f32.mrf.mxu3 }
 0x141   : > { %v1214_v6 = vadd.f32 %v1213_v7, %v5008_v27  ;;  %v2880_v36 = vmul.f32 %v4934_v62, %v2059_v20  ;;  %3821 = vrcp.f32 %v5074_v24  ;;  %1371 = vst.msk [vmem:[#allocation2 + $0x158] sm:$0xff] %vm6582_vm6, %v1306_v48  ;;  %1083 = vmatmul.bf16.gmra.mxu2 %v3561_v33  ;;  %v1136_v27 = vadd.f32 %v1135_v59, %v966_v46  ;;  %vm6584_vm10 = vmmov %vm6578_vm1 }
 0x142   : > { %v5083_v37 = vpop.eup %3819  ;;  %3168 = vst.msk [vmem:[%s4431_s20 + $0xa0] sm:$0xf] %vm6583_vm7, %v3103_v17  ;;  %v2535_v62 = vand.u32 2147483647, %v5074_v24  ;;  %v2537_v23 = vand.u32 2147483648, %v5074_v24  ;;  %vm6585_vm0 = vmmov %vm6578_vm1  ;;  %v1216_v63 = vadd.f32 %v1215_v40, %v1046_v22  ;;  %v1139_v1 = vadd.f32 %v1138_v4, %v969_v31 }
 0x143   : > { %v1307_v28 = vadd.f32 %v1214_v6, %v381_v19  ;;  %v2944_v43 = vsel %vm1792_vm8, %v2059_v20, %v2880_v36  ;;  %v5090_v53 = vadd.f32 1.0, %v5083_v37  ;;  %1340 = vst.msk [vmem:[#allocation2 + $0x60] sm:$0xff] %vm6584_vm10, %v1275_v39  ;;  %v1276_v7 = vadd.f32 %v1136_v27, %v350_v61  ;;  %vm6586_vm3 = vmmov %vm6585_vm0 }
 0x144   : > { %v3008_v18 = vmul.f32 %v2944_v43, %v4790_v49  ;;  %v3570_v49 = vld [vmem:[%s4091_s28 + $0x1f8] sm:$0xf0]  ;;  %v1308_v13 = vadd.f32 %v1216_v63, %v382_v57  ;;  %vm2531_vm11 = vweird.f32 %v5074_v24  ;;  %v3453_v59 = vor.u32 %v5097_v2, %v5100_v41  ;;  %vm6587_vm12 = vmmov %vm6583_vm7 }
 0x145   : > { %1372 = vst.msk [vmem:[#allocation2 + $0x160] sm:$0xff] %vm6585_vm0, %v1307_v28  ;;  %3823 = vrcp.f32 %v5090_v53  ;;  %v1437_v29 = vld [vmem:[#allocation2 + $0x150] sm:$0xff]  ;;  %vm5122_vm9 = vcmp.eq.f32.partialorder %v2535_v62, 8.507059e+37  ;;  %v2538_v45 = vor.u32 1.1754944e-38, %v2537_v23  ;;  %v3573_v35 = vor.u32 %v3703_v12, %v3570_v49  ;;  %vm6590_vm13 = vmmov %vm6585_vm0 }
 0x146   : > { %v3072_v46 = vpack.c.bf16 %v3008_v18, %v3008_v18  ;;  %v5106_v8 = vadd.f32 %v4876_v9, %v1437_v29  ;;  %v1406_v11 = vld [vmem:[#allocation2 + $0x58] sm:$0xff]  ;;  %1341 = vst.msk [vmem:[#allocation2 + $0x68] sm:$0xff] %vm6586_vm3, %v1276_v7  ;;  %v2070_v10 = vand.u32 2147483647, %v5090_v53  ;;  %v1277_v52 = vadd.f32 %v1139_v1, %v351_v42  ;;  %v1049_v48 = vpop.f32.mrf.mxu2  ;;  %vm6591_vm1 = vmmov %vm6585_vm0 }
 0x147   : > { %v3822_v38 = vpop.eup %3821  ;;  %v5112_v3 = vadd.f32 %v4876_v9, %v1406_v11  ;;  %1373 = vst.msk [vmem:[#allocation2 + $0x168] sm:$0xff] %vm6590_vm13, %v1308_v13  ;;  %v2072_v60 = vand.u32 2147483648, %v5090_v53  ;;  %v3441_v30 = vor.u32 %v3672_v50, %v3440_v51  ;;  %vm1824_vm15 = vcmp.ge.f32.partialorder %v4879_v34, 0.0  ;;  %vm6592_vm4 = vmmov %vm6580_vm2 }
 0x148   : > { %3137 = vst.msk [vmem:[%s4431_s20 + $0x24] sm:$0xf] %vm6587_vm12, %v3072_v46  ;;  %v2527_v58 = vmul.f32 %v3822_v38, %v5074_v24  ;;  %v1569_v55 = vand.u32 2147483647, %v5106_v8  ;;  %v1438_v47 = vld [vmem:[#allocation2 + $0x158] sm:$0xff]  ;;  %vm2532_vm14 = vweird.f32 %v3822_v38  ;;  %v1218_v61 = vpop.f32.mrf.mxu3  ;;  %v3569_v28 = vor.u32 %v3704_v15, %v3568_v44  ;;  %v383_v46 = vld [vmem:[#allocation2 + $0x170] sm:$0xff] }
 0x149   : > { %v1538_v32 = vand.u32 2147483647, %v5112_v3  ;;  %v5130_v26 = vadd.f32 %v4876_v9, %v1438_v47  ;;  %1342 = vst.msk [vmem:[#allocation2 + $0x70] sm:$0xff] %vm6591_vm1, %v1277_v52  ;;  %v1219_v62 = vadd.f32 %v1218_v61, %v1049_v48  ;;  %vm2533_vm5 = vmor %vm2531_vm11, %vm2532_vm14  ;;  %vm2066_vm7 = vweird.f32 %v5090_v53 }
 0x14a   : > { %v2528_v16 = vsub.f32 1.0, %v2527_v58  ;;  %v1633_v54 = vsub.f32 0.0, %v1569_v55  ;;  %v1407_v25 = vld [vmem:[#allocation2 + $0x60] sm:$0xff]  ;;  %vm2071_vm10 = vcmp.eq.f32.partialorder %v2070_v10, 8.507059e+37  ;;  %v2073_v1 = vor.u32 1.1754944e-38, %v2072_v60  ;;  %vm6593_vm11 = vmmov %vm6587_vm12 }
 0x14b   : > { %v3824_v33 = vpop.eup %3823  ;;  %v1602_v19 = vsub.f32 0.0, %v1538_v32  ;;  %v1570_v17 = vand.u32 2147483647, %v5130_v26  ;;  %v5137_v20 = vadd.f32 %v4876_v9, %v1407_v25  ;;  %v1309_v15 = vadd.f32 %v1219_v62, %v383_v46  ;;  %v5176_v32 = vpop.f32.mrf.mxu0  ;;  %vm6594_vm12 = vmmov %vm6593_vm11 }
 0x14c   : > { %v1439_v39 = vld [vmem:[#allocation2 + $0x160] sm:$0xff]  ;;  %v2529_v6 = vmul.f32 %v3822_v38, %v2528_v16  ;;  %v2062_v22 = vmul.f32 %v3824_v33, %v5090_v53  ;;  %v1739_v36 = vmul.f32 1.442695, %v1633_v54  ;;  %vm2067_vm6 = vweird.f32 %v3824_v33 }
 0x14d   : > { %v1677_v40 = vmul.f32 1.442695, %v1602_v19  ;;  %v1634_v27 = vsub.f32 0.0, %v1570_v17  ;;  %v1539_v43 = vand.u32 2147483647, %v5137_v20  ;;  %v5143_v18 = vadd.f32 %v4876_v9, %v1439_v39  ;;  %v1408_v23 = vld [vmem:[#allocation2 + $0x68] sm:$0xff]  ;;  %vm2068_vm8 = vmor %vm2066_vm7, %vm2067_vm6 }
 0x14e   : > { %v2530_v57 = vadd.f32 %v3822_v38, %v2529_v6  ;;  %v2063_v31 = vsub.f32 1.0, %v2062_v22  ;;  %3825 = vpow2.f32 %v1739_v36  ;;  %v5151_v41 = vadd.f32 %v4876_v9, %v1408_v23  ;;  %1374 = vst.msk [vmem:[#allocation2 + $0x170] sm:$0xff] %vm6585_vm0, %v1309_v15  ;;  %v5201_v22 = vpop.f32.mrf.mxu2 }
 0x14f   : > { %3622 = vmatmul.msk.bf16.gmra.mxu1 %vm6592_vm4, %v3453_v59  ;;  %3827 = vpow2.f32 %v1677_v40  ;;  %v1741_v7 = vmul.f32 1.442695, %v1634_v27  ;;  %v1603_v2 = vsub.f32 0.0, %v1539_v43  ;;  %v1571_v4 = vand.u32 2147483647, %v5143_v18 }
 0x150   : > { %3637 = vmatmul.msk.bf16.gmra.mxu3 %vm6580_vm2, %v3573_v35  ;;  %v2534_v63 = vsel %vm2533_vm5, %v3822_v38, %v2530_v57  ;;  %v2064_v29 = vmul.f32 %v3824_v33, %v2063_v31  ;;  %1008 = vmatmul.bf16.gmra.mxu0 %v3441_v30  ;;  %v1540_v24 = vand.u32 2147483647, %v5151_v41  ;;  %v5173_v35 = vpop.f32.mrf.mxu1  ;;  %vm1793_vm3 = vcmp.ge.f32.partialorder %v4985_v0, 0.0  ;;  %v1409_v19 = vld [vmem:[#allocation2 + $0x70] sm:$0xff]  ;;  %v5215_v40 = vpop.f32.mrf.mxu3 }
 0x151   : > { %v2539_v12 = vsel %vm5122_vm9, %v2538_v45, %v2534_v63  ;;  %3829 = vpow2.f32 %v1741_v7  ;;  %v1679_v49 = vmul.f32 1.442695, %v1603_v2  ;;  %1088 = vmatmul.bf16.gmra.mxu2 %v3569_v28  ;;  %v1635_v42 = vsub.f32 0.0, %v1571_v4  ;;  %v1440_v45 = vld [vmem:[#allocation2 + $0x168] sm:$0xff] }
 0x152   : > { %v2912_v11 = vmul.f32 %v5060_v56, %v2539_v12  ;;  %v2065_v13 = vadd.f32 %v3824_v33, %v2064_v29  ;;  %v1604_v51 = vsub.f32 0.0, %v1540_v24  ;;  %v5213_v28 = vadd.f32 %v4876_v9, %v1409_v19 }
 0x153   : > { %3831 = vpow2.f32 %v1679_v49  ;;  %v1743_v44 = vmul.f32 1.442695, %v1635_v42  ;;  %vm1825_vm1 = vcmp.ge.f32.partialorder %v5106_v8, 0.0  ;;  %vm1794_vm5 = vcmp.ge.f32.partialorder %v5112_v3, 0.0 }
 0x154   : > { %v5159_v38 = vpop.eup %3825  ;;  %v2976_v59 = vsel %vm1824_vm15, %v2539_v12, %v2912_v11  ;;  %v2069_v50 = vsel %vm2068_vm8, %v3824_v33, %v2065_v13  ;;  %v1681_v10 = vmul.f32 1.442695, %v1604_v51  ;;  %v5241_v13 = vpop.f32.mrf.mxu0 }
 0x155   : > { %v5163_v58 = vpop.eup %3827  ;;  %v3040_v56 = vmul.f32 %v2976_v59, %v4879_v34  ;;  %v2074_v14 = vsel %vm2071_vm10, %v2073_v1, %v2069_v50  ;;  %v5167_v53 = vadd.f32 1.0, %v5159_v38  ;;  %3833 = vpow2.f32 %v1743_v44 }
 0x156   : > { %v2881_v55 = vmul.f32 %v5083_v37, %v2074_v14  ;;  %v5171_v47 = vadd.f32 1.0, %v5163_v58  ;;  %v5184_v37 = vadd.f32 %v4876_v9, %v1440_v45 }
 0x157   : > { %v5178_v34 = vpop.eup %3829  ;;  %v3104_v52 = vpack.c.bf16 %v3040_v56, %v3040_v56  ;;  %3835 = vrcp.f32 %v5167_v53  ;;  %v2550_v25 = vand.u32 2147483647, %v5167_v53  ;;  %v2552_v30 = vand.u32 2147483648, %v5167_v53 }
 0x158   : > { %v2945_v16 = vsel %vm1793_vm3, %v2074_v14, %v2881_v55  ;;  %3837 = vrcp.f32 %v5171_v47  ;;  %v5194_v48 = vadd.f32 1.0, %v5178_v34  ;;  %v2085_v39 = vand.u32 2147483647, %v5171_v47  ;;  %v5239_v46 = vpop.f32.mrf.mxu1 }
 0x159   : > { %v5186_v60 = vpop.eup %3831  ;;  %3169 = vst.msk [vmem:[%s4431_s20 + $0xa4] sm:$0xf] %vm6593_vm11, %v3104_v52  ;;  %v3009_v54 = vmul.f32 %v2945_v16, %v4985_v0  ;;  %3839 = vpow2.f32 %v1681_v10  ;;  %v2087_v6 = vand.u32 2147483648, %v5171_v47  ;;  %v1572_v36 = vand.u32 2147483647, %v5184_v37 }
 0x15a   : > { %v5197_v33 = vadd.f32 1.0, %v5186_v60  ;;  %3841 = vrcp.f32 %v5194_v48  ;;  %vm2546_vm9 = vweird.f32 %v5167_v53  ;;  %vm2081_vm13 = vweird.f32 %v5171_v47 }
 0x15b   : > { %v3073_v17 = vpack.c.bf16 %v3009_v54, %v3009_v54  ;;  %v5203_v0 = vpop.eup %3833  ;;  %vm5220_vm15 = vcmp.eq.f32.partialorder %v2550_v25, 8.507059e+37  ;;  %v2553_v57 = vor.u32 1.1754944e-38, %v2552_v30  ;;  %v2567_v31 = vand.u32 2147483648, %v5194_v48 }
 0x15c   : > { %3843 = vrcp.f32 %v5197_v33  ;;  %vm5227_vm14 = vcmp.eq.f32.partialorder %v2085_v39, 8.507059e+37  ;;  %v2088_v2 = vor.u32 1.1754944e-38, %v2087_v6  ;;  %v2565_v63 = vand.u32 2147483647, %v5194_v48  ;;  %v5277_v39 = vpop.f32.mrf.mxu2 }
 0x15d   : > { %v3836_v61 = vpop.eup %3835  ;;  %3138 = vst.msk [vmem:[%s4431_s20 + $0x28] sm:$0xf] %vm6594_vm12, %v3073_v17  ;;  %v2102_v29 = vand.u32 2147483648, %v5197_v33  ;;  %v2100_v49 = vand.u32 2147483647, %v5197_v33  ;;  %v5237_v24 = vadd.f32 1.0, %v5203_v0  ;;  %vm2561_vm2 = vweird.f32 %v5194_v48 }
 0x15e   : > { %v5217_v27 = vpop.eup %3837  ;;  %v2542_v43 = vmul.f32 %v3836_v61, %v5167_v53  ;;  %v1636_v11 = vsub.f32 0.0, %v1572_v36  ;;  %vm2547_vm4 = vweird.f32 %v3836_v61  ;;  %v2568_v50 = vor.u32 1.1754944e-38, %v2567_v31 }
 0x15f   : > { %v2077_v23 = vmul.f32 %v5217_v27, %v5171_v47  ;;  %v5233_v4 = vpop.eup %3839  ;;  %vm2082_vm6 = vweird.f32 %v5217_v27  ;;  %vm2096_vm7 = vweird.f32 %v5197_v33  ;;  %3845 = vrcp.f32 %v5237_v24  ;;  %vm2548_vm0 = vmor %vm2546_vm9, %vm2547_vm4 }
 0x160   : > { %v2543_v12 = vsub.f32 1.0, %v2542_v43  ;;  %v5246_v1 = vadd.f32 1.0, %v5233_v4  ;;  %v5248_v51 = vpop.eup %3841  ;;  %vm5259_vm8 = vcmp.eq.f32.partialorder %v2565_v63, 8.507059e+37  ;;  %v2103_v45 = vor.u32 1.1754944e-38, %v2102_v29  ;;  %vm2083_vm3 = vmor %vm2081_vm13, %vm2082_vm6  ;;  %v5315_v7 = vpop.f32.mrf.mxu1 }
 0x161   : > { %v2078_v42 = vsub.f32 1.0, %v2077_v23  ;;  %v2557_v56 = vmul.f32 %v5248_v51, %v5194_v48  ;;  %v2582_v55 = vand.u32 2147483648, %v5237_v24  ;;  %vm5266_vm10 = vcmp.eq.f32.partialorder %v2100_v49, 8.507059e+37 }
 0x162   : > { %v2544_v59 = vmul.f32 %v3836_v61, %v2543_v12  ;;  %v5254_v44 = vpop.eup %3843  ;;  %v1745_v54 = vmul.f32 1.442695, %v1636_v11  ;;  %v1541_v25 = vand.u32 2147483647, %v5213_v28  ;;  %v2580_v17 = vand.u32 2147483647, %v5237_v24 }
 0x163   : > { %v2079_v15 = vmul.f32 %v5217_v27, %v2078_v42  ;;  %v2092_v52 = vmul.f32 %v5254_v44, %v5197_v33  ;;  %v2558_v19 = vsub.f32 1.0, %v2557_v56  ;;  %3847 = vrcp.f32 %v5246_v1 }
 0x164   : > { %v2545_v10 = vadd.f32 %v3836_v61, %v2544_v59  ;;  %vm1826_vm11 = vcmp.ge.f32.partialorder %v5130_v26, 0.0  ;;  %vm2562_vm12 = vweird.f32 %v5248_v51  ;;  %vm2097_vm9 = vweird.f32 %v5254_v44 }
 0x165   : > { %v2080_v30 = vadd.f32 %v5217_v27, %v2079_v15  ;;  %v2093_v53 = vsub.f32 1.0, %v2092_v52  ;;  %v2559_v31 = vmul.f32 %v5248_v51, %v2558_v19  ;;  %vm1795_vm4 = vcmp.ge.f32.partialorder %v5137_v20, 0.0  ;;  %v3846_v23 = vpop.eup %3845 }
 0x166   : > { %v2549_v6 = vsel %vm2548_vm0, %v3836_v61, %v2545_v10  ;;  %vm2576_vm0 = vweird.f32 %v5237_v24  ;;  %v2583_v47 = vor.u32 1.1754944e-38, %v2582_v55  ;;  %v5292_v61 = vpop.f32.mrf.mxu3  ;;  %v2572_v49 = vmul.f32 %v3846_v23, %v5237_v24 }
 0x167   : > { %v2554_v36 = vsel %vm5220_vm15, %v2553_v57, %v2549_v6  ;;  %v2084_v43 = vsel %vm2083_vm3, %v5217_v27, %v2080_v30  ;;  %v2094_v62 = vmul.f32 %v5254_v44, %v2093_v53  ;;  %v2115_v57 = vand.u32 2147483647, %v5246_v1  ;;  %vm2563_vm15 = vmor %vm2561_vm2, %vm2562_vm12  ;;  %v1441_v30 = vld [vmem:[#allocation2 + $0x170] sm:$0xff] }
 0x168   : > { %v2913_v63 = vmul.f32 %v5159_v38, %v2554_v36  ;;  %v2089_v29 = vsel %vm5227_vm14, %v2088_v2, %v2084_v43  ;;  %v2560_v12 = vadd.f32 %v5248_v51, %v2559_v31  ;;  %vm5302_vm13 = vcmp.eq.f32.partialorder %v2580_v17, 8.507059e+37  ;;  %v5317_v2 = vpop.f32.mrf.mxu0  ;;  %v1148_v11 = vpop.f32.mrf.mxu1 }
 0x169   : > { %v2882_v27 = vmul.f32 %v5163_v58, %v2089_v29  ;;  %v2117_v42 = vand.u32 2147483648, %v5246_v1  ;;  %v2095_v58 = vadd.f32 %v5254_v44, %v2094_v62  ;;  %vm2577_vm14 = vweird.f32 %v3846_v23  ;;  %v3848_v59 = vpop.eup %3847 }
 0x16a   : > { %v2977_v38 = vsel %vm1825_vm1, %v2554_v36, %v2913_v63  ;;  %vm2111_vm6 = vweird.f32 %v5246_v1  ;;  %3849 = vpow2.f32 %v1745_v54  ;;  %v2564_v55 = vsel %vm2563_vm15, %v5248_v51, %v2560_v12  ;;  %vm2098_vm1 = vmor %vm2096_vm7, %vm2097_vm9 }
 0x16b   : > { %v3041_v15 = vmul.f32 %v2977_v38, %v5106_v8  ;;  %v2946_v56 = vsel %vm1794_vm5, %v2089_v29, %v2882_v27  ;;  %v2573_v48 = vsub.f32 1.0, %v2572_v49  ;;  %v2569_v52 = vsel %vm5259_vm8, %v2568_v50, %v2564_v55  ;;  %vm2578_vm7 = vmor %vm2576_vm0, %vm2577_vm14 }
 0x16c   : > { %v3010_v10 = vmul.f32 %v2946_v56, %v5112_v3  ;;  %v2099_v54 = vsel %vm2098_vm1, %v5254_v44, %v2095_v58  ;;  %v2107_v8 = vmul.f32 %v3848_v59, %v5246_v1  ;;  %v2914_v51 = vmul.f32 %v5178_v34, %v2569_v52  ;;  %v5343_v34 = vpop.f32.mrf.mxu2 }
 0x16d   : > { %v3105_v19 = vpack.c.bf16 %v3041_v15, %v3041_v15  ;;  %v2104_v33 = vsel %vm5266_vm10, %v2103_v45, %v2099_v54  ;;  %v2574_v17 = vmul.f32 %v3846_v23, %v2573_v48  ;;  %v2118_v36 = vor.u32 1.1754944e-38, %v2117_v42 }
 0x16e   : > { %v3074_v6 = vpack.c.bf16 %v3010_v10, %v3010_v10  ;;  %v2883_v53 = vmul.f32 %v5186_v60, %v2104_v33  ;;  %v2108_v3 = vsub.f32 1.0, %v2107_v8  ;;  %vm6605_vm2 = vcmask 257024   ;;  %v1225_v62 = vpop.f32.mrf.mxu3  ;;  %v385_v10 = vld [vmem:[#allocation2 + $0x180] sm:$0xff] }
 0x16f   : > { %3170 = vst.msk [vmem:[%s4431_s20 + $0xa8] sm:$0xf] %vm6605_vm2, %v3105_v19  ;;  %v2978_v50 = vsel %vm1826_vm11, %v2569_v52, %v2914_v51  ;;  %v2575_v44 = vadd.f32 %v3846_v23, %v2574_v17  ;;  %v1605_v14 = vsub.f32 0.0, %v1541_v25  ;;  %v5341_v43 = vadd.f32 %v4876_v9, %v1441_v30  ;;  %vm6606_vm5 = vmmov %vm6605_vm2  ;;  %v354_v52 = vld [vmem:[#allocation2 + $0x88] sm:$0xff] }
 0x170   : > { %v5345_v16 = vpop.eup %3849  ;;  %3139 = vst.msk [vmem:[%s4431_s20 + $0x2c] sm:$0xf] %vm6606_vm5, %v3074_v6  ;;  %v3042_v60 = vmul.f32 %v2978_v50, %v5130_v26  ;;  %v2947_v45 = vsel %vm1795_vm4, %v2104_v33, %v2883_v53  ;;  %v2109_v31 = vmul.f32 %v3848_v59, %v2108_v3  ;;  %vm2112_vm8 = vweird.f32 %v3848_v59  ;;  %vm6607_vm3 = vmmov %vm6605_vm2  ;;  %v355_v6 = vld [vmem:[#allocation2 + $0x90] sm:$0xff] }
 0x171   : > { %v3011_v9 = vmul.f32 %v2947_v45, %v5137_v20  ;;  %v2579_v25 = vsel %vm2578_vm7, %v3846_v23, %v2575_v44  ;;  %v5357_v63 = vadd.f32 1.0, %v5345_v16  ;;  %v1683_v29 = vmul.f32 1.442695, %v1605_v14  ;;  %vm2113_vm10 = vmor %vm2111_vm6, %vm2112_vm8  ;;  %v352_v23 = vld [vmem:[#allocation2 + $0x78] sm:$0xff]  ;;  %v387_v3 = vld [vmem:[#allocation2 + $0x190] sm:$0xff]  ;;  %v1150_v45 = vpop.f32.mrf.mxu1 }
 0x172   : > { %v3106_v27 = vpack.c.bf16 %v3042_v60, %v3042_v60  ;;  %v2584_v26 = vsel %vm5302_vm13, %v2583_v47, %v2579_v25  ;;  %v2110_v12 = vadd.f32 %v3848_v59, %v2109_v31  ;;  %v1573_v24 = vand.u32 2147483647, %v5341_v43  ;;  %vm6608_vm9 = vmmov %vm6605_vm2 }
 0x173   : > { %v3075_v49 = vpack.c.bf16 %v3011_v9, %v3011_v9  ;;  %v2915_v42 = vmul.f32 %v5203_v0, %v2584_v26  ;;  %3851 = vrcp.f32 %v5357_v63  ;;  %v1141_v20 = vadd.f32 %v5173_v35, %v5176_v32  ;;  %v979_v0 = vpop.f32.mrf.mxu0  ;;  %v384_v32 = vld [vmem:[#allocation2 + $0x178] sm:$0xff]  ;;  %vm6610_vm13 = vmmov %vm6605_vm2 }
 0x174   : > { %3171 = vst.msk [vmem:[%s4431_s20 + $0xac] sm:$0xf] %vm6607_vm3, %v3106_v27  ;;  %vm1827_vm11 = vcmp.ge.f32.partialorder %v5143_v18, 0.0  ;;  %v2114_v47 = vsel %vm2113_vm10, %v3848_v59, %v2110_v12  ;;  %vm2116_vm12 = vcmp.eq.f32.partialorder %v2115_v57, 8.507059e+37  ;;  %3853 = vpow2.f32 %v1683_v29  ;;  %v353_v59 = vld [vmem:[#allocation2 + $0x80] sm:$0xff]  ;;  %v1059_v51 = vpop.f32.mrf.mxu2  ;;  %vm6613_vm6 = vmmov %vm6605_vm2 }
 0x175   : > { %3140 = vst.msk [vmem:[%s4431_s20 + $0x30] sm:$0xf] %vm6608_vm9, %v3075_v49  ;;  %v2979_v38 = vsel %vm1827_vm11, %v2584_v26, %v2915_v42  ;;  %v2119_v58 = vsel %vm2116_vm12, %v2118_v36, %v2114_v47  ;;  %v1637_v15 = vsub.f32 0.0, %v1573_v24  ;;  %vm1796_vm4 = vcmp.ge.f32.partialorder %v5151_v41, 0.0  ;;  %v356_v24 = vld [vmem:[#allocation2 + $0x98] sm:$0xff] }
 0x176   : > { %v3043_v56 = vmul.f32 %v2979_v38, %v5143_v18  ;;  %v2884_v35 = vmul.f32 %v5233_v4, %v2119_v58  ;;  %v1278_v1 = vadd.f32 %v1141_v20, %v352_v23  ;;  %v1221_v57 = vadd.f32 %v5215_v40, %v5201_v22  ;;  %v1228_v17 = vpop.f32.mrf.mxu3  ;;  %v5418_v20 = vld [vmem:[%s6512_s2] ss:$0 sm:$0xff] }
 0x177   : > { %v1747_v55 = vmul.f32 1.442695, %v1637_v15  ;;  %v1144_v48 = vadd.f32 %v5239_v46, %v5241_v13  ;;  %v1224_v18 = vadd.f32 %v5292_v61, %v5277_v39  ;;  %v1146_v4 = vadd.f32 %v5315_v7, %v5317_v2 }
 0x178   : > { %v3107_v54 = vpack.c.bf16 %v3043_v56, %v3043_v56  ;;  %v2948_v8 = vsel %vm1796_vm4, %v2119_v58, %v2884_v35  ;;  %vm6609_vm0 = vcmask 261120   ;;  %v1310_v22 = vadd.f32 %v1221_v57, %v384_v32 }
 0x179   : > { %v3852_v30 = vpop.eup %3851  ;;  %v3012_v19 = vmul.f32 %v2948_v8, %v5151_v41  ;;  %3855 = vpow2.f32 %v1747_v55  ;;  %1343 = vst.msk [vmem:[#allocation2 + $0x78] sm:$0xff] %vm6609_vm0, %v1278_v1  ;;  %v1279_v40 = vadd.f32 %v1144_v48, %v353_v59  ;;  %v1311_v39 = vadd.f32 %v1224_v18, %v385_v10  ;;  %vm6611_vm15 = vmmov %vm6609_vm0  ;;  %v386_v41 = vld [vmem:[#allocation2 + $0x188] sm:$0xff] }
 0x17a   : > { %v5388_v46 = vpop.eup %3853  ;;  %3172 = vst.msk [vmem:[%s4431_s20 + $0xb0] sm:$0xf] %vm6610_vm13, %v3107_v54  ;;  %v2587_v13 = vmul.f32 %v3852_v30, %v5357_v63  ;;  %v1280_v61 = vadd.f32 %v1146_v4, %v354_v52  ;;  %v1226_v2 = vadd.f32 %v1225_v62, %v5343_v34  ;;  %v1149_v53 = vadd.f32 %v1148_v11, %v979_v0  ;;  %vm6612_vm14 = vmmov %vm6609_vm0 }
 0x17b   : > { %v3076_v33 = vpack.c.bf16 %v3012_v19, %v3012_v19  ;;  %v5394_v7 = vadd.f32 1.0, %v5388_v46  ;;  %1375 = vst.msk [vmem:[#allocation2 + $0x178] sm:$0xff] %vm6611_vm15, %v1310_v22  ;;  %v1229_v50 = vadd.f32 %v1228_v17, %v1059_v51  ;;  %vm2592_vm1 = vweird.f32 %v3852_v30  ;;  %vm6614_vm2 = vmmov %vm6609_vm0  ;;  %v981_v25 = vpop.f32.mrf.mxu0 }
 0x17c   : > { %v2588_v36 = vsub.f32 1.0, %v2587_v13  ;;  %1344 = vst.msk [vmem:[#allocation2 + $0x80] sm:$0xff] %vm6612_vm14, %v1279_v40  ;;  %v2595_v44 = vand.u32 2147483647, %v5357_v63  ;;  %v2597_v14 = vand.u32 2147483648, %v5357_v63  ;;  %v1312_v34 = vadd.f32 %v1226_v2, %v386_v41  ;;  %vm6615_vm5 = vmmov %vm6609_vm0 }
 0x17d   : > { %3141 = vst.msk [vmem:[%s4431_s20 + $0x34] sm:$0xf] %vm6613_vm6, %v3076_v33  ;;  %3857 = vrcp.f32 %v5394_v7  ;;  %v1281_v31 = vadd.f32 %v1149_v53, %v355_v6  ;;  %v1313_v9 = vadd.f32 %v1229_v50, %v387_v3  ;;  %v1151_v62 = vadd.f32 %v1150_v45, %v981_v25  ;;  %vm6616_vm8 = vmmov %vm6609_vm0 }
 0x17e   : > { %v2589_v60 = vmul.f32 %v3852_v30, %v2588_v36  ;;  %1376 = vst.msk [vmem:[#allocation2 + $0x180] sm:$0xff] %vm6614_vm2, %v1311_v39  ;;  %vm2591_vm7 = vweird.f32 %v5357_v63  ;;  %v2598_v49 = vor.u32 1.1754944e-38, %v2597_v14  ;;  %v2130_v42 = vand.u32 2147483647, %v5394_v7  ;;  %vm6617_vm3 = vmmov %vm6609_vm0 }
 0x17f   : > { %v5405_v29 = vpop.eup %3855  ;;  %1345 = vst.msk [vmem:[#allocation2 + $0x88] sm:$0xff] %vm6615_vm5, %v1280_v61  ;;  %vm2593_vm10 = vmor %vm2591_vm7, %vm2592_vm1  ;;  %v1282_v63 = vadd.f32 %v1151_v62, %v356_v24  ;;  %vm2596_vm11 = vcmp.eq.f32.partialorder %v2595_v44, 8.507059e+37  ;;  %v2132_v11 = vand.u32 2147483648, %v5394_v7  ;;  %vm1828_vm4 = vcmp.ge.f32.partialorder %v5184_v37, 0.0 }
 0x180   : > { %v2590_v27 = vadd.f32 %v3852_v30, %v2589_v60  ;;  %v5410_v26 = vadd.f32 1.0, %v5405_v29  ;;  %v1410_v12 = vld [vmem:[#allocation2 + $0x78] sm:$0xff]  ;;  %1377 = vst.msk [vmem:[#allocation2 + $0x188] sm:$0xff] %vm6616_vm8, %v1312_v34  ;;  %vm6618_vm12 = vmmov %vm6609_vm0  ;;  %vm5433_vm13 = vcmp.eq.f32.partialorder %v2130_v42, 8.507059e+37  ;;  %vm1797_vm15 = vcmp.ge.f32.partialorder %v5213_v28, 0.0 }
 0x181   : > { %v5421_v47 = vadd.f32 %v5418_v20, %v1410_v12  ;;  %1346 = vst.msk [vmem:[#allocation2 + $0x90] sm:$0xff] %vm6617_vm3, %v1281_v31  ;;  %vm6619_vm9 = vmmov %vm6609_vm0  ;;  %vm2126_vm0 = vweird.f32 %v5394_v7  ;;  %v2133_v54 = vor.u32 1.1754944e-38, %v2132_v11  ;;  %vm6622_vm1 = vcmask 257024  }
 0x182   : > { %v2594_v23 = vsel %vm2593_vm10, %v3852_v30, %v2590_v27  ;;  %3859 = vrcp.f32 %v5410_v26  ;;  %v1442_v0 = vld [vmem:[#allocation2 + $0x178] sm:$0xff]  ;;  %1378 = vst.msk [vmem:[#allocation2 + $0x190] sm:$0xff] %vm6618_vm12, %v1313_v9  ;;  %vm2606_vm14 = vweird.f32 %v5410_v26  ;;  %v2610_v18 = vand.u32 2147483647, %v5410_v26  ;;  %vm6625_vm3 = vmmov %vm6622_vm1 }
 0x183   : > { %v3858_v38 = vpop.eup %3857  ;;  %v2599_v58 = vsel %vm2596_vm11, %v2598_v49, %v2594_v23  ;;  %v1542_v15 = vand.u32 2147483647, %v5421_v47  ;;  %v1411_v56 = vld [vmem:[#allocation2 + $0x80] sm:$0xff]  ;;  %1347 = vst.msk [vmem:[#allocation2 + $0x98] sm:$0xff] %vm6619_vm9, %v1282_v63  ;;  %v5438_v1 = vadd.f32 %v5418_v20, %v1442_v0  ;;  %v2612_v33 = vand.u32 2147483648, %v5410_v26  ;;  %vm6626_vm11 = vmmov %vm6622_vm1 }
 0x184   : > { %v2916_v35 = vmul.f32 %v5345_v16, %v2599_v58  ;;  %v2122_v32 = vmul.f32 %v3858_v38, %v5394_v7  ;;  %v5441_v57 = vadd.f32 %v5418_v20, %v1411_v56  ;;  %vm2127_vm6 = vweird.f32 %v3858_v38 }
 0x185   : > { %v1606_v55 = vsub.f32 0.0, %v1542_v15  ;;  %v1443_v48 = vld [vmem:[#allocation2 + $0x180] sm:$0xff]  ;;  %v1574_v30 = vand.u32 2147483647, %v5438_v1  ;;  %vm2128_vm2 = vmor %vm2126_vm0, %vm2127_vm6  ;;  %vm5459_vm5 = vcmp.eq.f32.partialorder %v2610_v18, 8.507059e+37  ;;  %v2613_v62 = vor.u32 1.1754944e-38, %v2612_v33  ;;  %v5511_v18 = vpop.f32.mrf.mxu2 }
 0x186   : > { %v2980_v10 = vsel %vm1828_vm4, %v2599_v58, %v2916_v35  ;;  %v2123_v52 = vsub.f32 1.0, %v2122_v32  ;;  %v5444_v16 = vadd.f32 %v5418_v20, %v1443_v48  ;;  %v1543_v40 = vand.u32 2147483647, %v5441_v57  ;;  %v1412_v13 = vld [vmem:[#allocation2 + $0x88] sm:$0xff] }
 0x187   : > { %v3044_v8 = vmul.f32 %v2980_v10, %v5184_v37  ;;  %v1685_v4 = vmul.f32 1.442695, %v1606_v55  ;;  %v1444_v39 = vld [vmem:[#allocation2 + $0x188] sm:$0xff]  ;;  %v1638_v2 = vsub.f32 0.0, %v1574_v30  ;;  %v5464_v36 = vadd.f32 %v5418_v20, %v1412_v13 }
 0x188   : > { %v3860_v19 = vpop.eup %3859  ;;  %v2124_v22 = vmul.f32 %v3858_v38, %v2123_v52  ;;  %v1575_v51 = vand.u32 2147483647, %v5444_v16  ;;  %v1607_v17 = vsub.f32 0.0, %v1543_v40  ;;  %v5467_v50 = vadd.f32 %v5418_v20, %v1444_v39  ;;  %v1413_v44 = vld [vmem:[#allocation2 + $0x90] sm:$0xff] }
 0x189   : > { %v3108_v37 = vpack.c.bf16 %v3044_v8, %v3044_v8  ;;  %v2602_v61 = vmul.f32 %v3860_v19, %v5410_v26  ;;  %3861 = vpow2.f32 %v1685_v4  ;;  %v1749_v60 = vmul.f32 1.442695, %v1638_v2  ;;  %v5509_v8 = vpop.f32.mrf.mxu3 }
 0x18a   : > { %v2125_v41 = vadd.f32 %v3858_v38, %v2124_v22  ;;  %v1639_v6 = vsub.f32 0.0, %v1575_v51  ;;  %v1687_v45 = vmul.f32 1.442695, %v1607_v17  ;;  %vm2607_vm7 = vweird.f32 %v3860_v19 }
 0x18b   : > { %3173 = vst.msk [vmem:[%s4431_s20 + $0xb4] sm:$0xf] %vm6622_vm1, %v3108_v37  ;;  %v2603_v53 = vsub.f32 1.0, %v2602_v61  ;;  %v1544_v9 = vand.u32 2147483647, %v5464_v36  ;;  %3863 = vpow2.f32 %v1749_v60  ;;  %v5477_v42 = vadd.f32 %v5418_v20, %v1413_v44  ;;  %vm2608_vm8 = vmor %vm2606_vm14, %vm2607_vm7 }
 0x18c   : > { %v2129_v14 = vsel %vm2128_vm2, %v3858_v38, %v2125_v41  ;;  %v1751_v34 = vmul.f32 1.442695, %v1639_v6  ;;  %v1576_v27 = vand.u32 2147483647, %v5467_v50  ;;  %3865 = vpow2.f32 %v1687_v45  ;;  %v5531_v41 = vpop.f32.mrf.mxu1 }
 0x18d   : > { %v2134_v7 = vsel %vm5433_vm13, %v2133_v54, %v2129_v14  ;;  %v2604_v31 = vmul.f32 %v3860_v19, %v2603_v53  ;;  %v1608_v49 = vsub.f32 0.0, %v1544_v9  ;;  %v1545_v58 = vand.u32 2147483647, %v5477_v42  ;;  %v1445_v54 = vld [vmem:[#allocation2 + $0x190] sm:$0xff] }
 0x18e   : > { %v2885_v25 = vmul.f32 %v5388_v46, %v2134_v7  ;;  %3867 = vpow2.f32 %v1751_v34  ;;  %v1640_v23 = vsub.f32 0.0, %v1576_v27  ;;  %vm1829_vm10 = vcmp.ge.f32.partialorder %v5341_v43, 0.0 }
 0x18f   : > { %v5474_v12 = vpop.eup %3861  ;;  %v2605_v24 = vadd.f32 %v3860_v19, %v2604_v31  ;;  %v1689_v38 = vmul.f32 1.442695, %v1608_v49  ;;  %v1609_v48 = vsub.f32 0.0, %v1545_v58  ;;  %v5534_v2 = vadd.f32 %v5418_v20, %v1445_v54 }
 0x190   : > { %v2949_v63 = vsel %vm1797_vm15, %v2134_v7, %v2885_v25  ;;  %v5484_v46 = vadd.f32 1.0, %v5474_v12  ;;  %v1753_v32 = vmul.f32 1.442695, %v1640_v23  ;;  %vm1798_vm9 = vcmp.ge.f32.partialorder %v5421_v47, 0.0 }
 0x191   : > { %v3013_v11 = vmul.f32 %v2949_v63, %v5213_v28  ;;  %v2609_v0 = vsel %vm2608_vm8, %v3860_v19, %v2605_v24  ;;  %v5492_v35 = vpop.eup %3863  ;;  %v1691_v39 = vmul.f32 1.442695, %v1609_v48  ;;  %vm1830_vm2 = vcmp.ge.f32.partialorder %v5438_v1, 0.0 }
 0x192   : > { %v2614_v15 = vsel %vm5459_vm5, %v2613_v62, %v2609_v0  ;;  %3869 = vrcp.f32 %v5484_v46  ;;  %v5495_v59 = vpop.eup %3865  ;;  %v5500_v55 = vadd.f32 1.0, %v5492_v35  ;;  %v2145_v19 = vand.u32 2147483647, %v5484_v46 }
 0x193   : > { %v3077_v56 = vpack.c.bf16 %v3013_v11, %v3013_v11  ;;  %v2917_v26 = vmul.f32 %v5405_v29, %v2614_v15  ;;  %3871 = vpow2.f32 %v1689_v38  ;;  %v5506_v29 = vadd.f32 1.0, %v5495_v59 }
 0x194   : > { %v5502_v10 = vpop.eup %3867  ;;  %3873 = vpow2.f32 %v1753_v32  ;;  %v2147_v22 = vand.u32 2147483648, %v5484_v46  ;;  %v2627_v13 = vand.u32 2147483648, %v5500_v55  ;;  %v2625_v37 = vand.u32 2147483647, %v5500_v55  ;;  %v5587_v32 = vpop.f32.mrf.mxu3 }
 0x195   : > { %3142 = vst.msk [vmem:[%s4431_s20 + $0x38] sm:$0xf] %vm6625_vm3, %v3077_v56  ;;  %v2981_v28 = vsel %vm1829_vm10, %v2614_v15, %v2917_v26  ;;  %3875 = vrcp.f32 %v5500_v55  ;;  %v5526_v61 = vadd.f32 1.0, %v5502_v10  ;;  %vm2141_vm12 = vweird.f32 %v5484_v46  ;;  %v1414_v26 = vld [vmem:[#allocation2 + $0x98] sm:$0xff] }
 0x196   : > { %v3045_v52 = vmul.f32 %v2981_v28, %v5341_v43  ;;  %3877 = vrcp.f32 %v5506_v29  ;;  %v5516_v43 = vpop.f32.mrf.mxu0  ;;  %v2160_v6 = vand.u32 2147483647, %v5506_v29  ;;  %v2162_v53 = vand.u32 2147483648, %v5506_v29  ;;  %v5589_v28 = vpop.f32.mrf.mxu2 }
 0x197   : > { %vm5542_vm4 = vcmp.eq.f32.partialorder %v2145_v19, 8.507059e+37  ;;  %v2148_v14 = vor.u32 1.1754944e-38, %v2147_v22  ;;  %vm2621_vm0 = vweird.f32 %v5500_v55  ;;  %3879 = vrcp.f32 %v5526_v61 }
 0x198   : > { %v3870_v4 = vpop.eup %3869  ;;  %v3109_v30 = vpack.c.bf16 %v3045_v52, %v3045_v52  ;;  %v2628_v34 = vor.u32 1.1754944e-38, %v2627_v13  ;;  %vm2156_vm15 = vweird.f32 %v5506_v29  ;;  %vm5556_vm14 = vcmp.eq.f32.partialorder %v2625_v37, 8.507059e+37 }
 0x199   : > { %v5518_v40 = vpop.eup %3871  ;;  %v2137_v51 = vmul.f32 %v3870_v4, %v5484_v46  ;;  %vm2142_vm13 = vweird.f32 %v3870_v4  ;;  %v2642_v25 = vand.u32 2147483648, %v5526_v61  ;;  %v1577_v62 = vand.u32 2147483647, %v5534_v2 }
 0x19a   : > { %3174 = vst.msk [vmem:[%s4431_s20 + $0xb8] sm:$0xf] %vm6626_vm11, %v3109_v30  ;;  %v5529_v33 = vadd.f32 1.0, %v5518_v40  ;;  %v5539_v3 = vpop.eup %3873  ;;  %vm5564_vm6 = vcmp.eq.f32.partialorder %v2160_v6, 8.507059e+37  ;;  %v2163_v63 = vor.u32 1.1754944e-38, %v2162_v53  ;;  %vm5572_vm1 = vmor %vm2141_vm12, %vm2142_vm13  ;;  %vm2636_vm8 = vweird.f32 %v5526_v61 }
 0x19b   : > { %v2138_v17 = vsub.f32 1.0, %v2137_v51  ;;  %v5548_v60 = vpop.eup %3875  ;;  %v2640_v23 = vand.u32 2147483647, %v5526_v61  ;;  %v5579_v15 = vadd.f32 1.0, %v5539_v3  ;;  %vm1799_vm10 = vcmp.ge.f32.partialorder %v5441_v57, 0.0 }
 0x19c   : > { %3881 = vrcp.f32 %v5529_v33  ;;  %v5552_v7 = vpop.eup %3877  ;;  %v2617_v31 = vmul.f32 %v5548_v60, %v5500_v55  ;;  %v2175_v38 = vand.u32 2147483647, %v5529_v33  ;;  %v2177_v58 = vand.u32 2147483648, %v5529_v33 }
 0x19d   : > { %v2139_v45 = vmul.f32 %v3870_v4, %v2138_v17  ;;  %3883 = vpow2.f32 %v1691_v39  ;;  %v2152_v24 = vmul.f32 %v5552_v7, %v5506_v29  ;;  %vm2622_vm5 = vweird.f32 %v5548_v60  ;;  %v3880_v48 = vpop.eup %3879 }
 0x19e   : > { %v2618_v0 = vsub.f32 1.0, %v2617_v31  ;;  %vm2157_vm7 = vweird.f32 %v5552_v7  ;;  %3885 = vrcp.f32 %v5579_v15  ;;  %v5597_v30 = vpop.f32.mrf.mxu0  ;;  %v2632_v13 = vmul.f32 %v3880_v48, %v5526_v61  ;;  %v1066_v61 = vpop.f32.mrf.mxu2 }
 0x19f   : > { %v2140_v27 = vadd.f32 %v3870_v4, %v2139_v45  ;;  %v2153_v46 = vsub.f32 1.0, %v2152_v24  ;;  %vm5602_vm11 = vcmp.eq.f32.partialorder %v2640_v23, 8.507059e+37  ;;  %v1641_v37 = vsub.f32 0.0, %v1577_v62 }
 0x1a0   : > { %v2619_v54 = vmul.f32 %v5548_v60, %v2618_v0  ;;  %vm5610_vm12 = vcmp.eq.f32.partialorder %v2175_v38, 8.507059e+37  ;;  %v5617_v45 = vadd.f32 %v5418_v20, %v1414_v26  ;;  %v2633_v62 = vsub.f32 1.0, %v2632_v13 }
 0x1a1   : > { %v2144_v56 = vsel %vm5572_vm1, %v3870_v4, %v2140_v27  ;;  %v2643_v4 = vor.u32 1.1754944e-38, %v2642_v25  ;;  %v2154_v51 = vmul.f32 %v5552_v7, %v2153_v46  ;;  %vm2637_vm13 = vweird.f32 %v3880_v48  ;;  %vm2158_vm1 = vmor %vm2156_vm15, %vm2157_vm7 }
 0x1a2   : > { %v2149_v52 = vsel %vm5542_vm4, %v2148_v14, %v2144_v56  ;;  %v3882_v19 = vpop.eup %3881  ;;  %v2620_v6 = vadd.f32 %v5548_v60, %v2619_v54  ;;  %v5614_v14 = vpop.f32.mrf.mxu1  ;;  %vm2623_vm4 = vmor %vm2621_vm0, %vm2622_vm5  ;;  %v2634_v0 = vmul.f32 %v3880_v48, %v2633_v62  ;;  %vm6639_vm0 = vcmask 257024  }
 0x1a3   : > { %v2886_v22 = vmul.f32 %v5474_v12, %v2149_v52  ;;  %v5606_v17 = vpop.eup %3883  ;;  %v2167_v53 = vmul.f32 %v3882_v19, %v5529_v33  ;;  %v2178_v12 = vor.u32 1.1754944e-38, %v2177_v58  ;;  %v2155_v25 = vadd.f32 %v5552_v7, %v2154_v51  ;;  %vm2638_vm15 = vmor %vm2636_vm8, %vm2637_vm13 }
 0x1a4   : > { %v2624_v24 = vsel %vm2623_vm4, %v5548_v60, %v2620_v6  ;;  %vm2172_vm3 = vweird.f32 %v3882_v19  ;;  %v3886_v38 = vpop.eup %3885  ;;  %v2635_v26 = vadd.f32 %v3880_v48, %v2634_v0  ;;  %v5651_v9 = vadd.f32 1.0, %v5606_v17  ;;  %vm6641_vm8 = vmmov %vm6639_vm0 }
 0x1a5   : > { %v2950_v31 = vsel %vm1798_vm9, %v2149_v52, %v2886_v22  ;;  %vm1831_vm9 = vcmp.ge.f32.partialorder %v5444_v16, 0.0  ;;  %v2168_v23 = vsub.f32 1.0, %v2167_v53  ;;  %v2629_v55 = vsel %vm5556_vm14, %v2628_v34, %v2624_v24  ;;  %v1235_v22 = vpop.f32.mrf.mxu3  ;;  %vm6643_vm4 = vmmov %vm6639_vm0 }
 0x1a6   : > { %v3014_v27 = vmul.f32 %v2950_v31, %v5421_v47  ;;  %v2159_v11 = vsel %vm2158_vm1, %v5552_v7, %v2155_v25  ;;  %v2655_v47 = vand.u32 2147483647, %v5579_v15  ;;  %v2918_v58 = vmul.f32 %v5492_v35, %v2629_v55  ;;  %vm6644_vm13 = vmmov %vm6639_vm0 }
 0x1a7   : > { %v2164_v29 = vsel %vm5564_vm6, %v2163_v63, %v2159_v11  ;;  %v2169_v56 = vmul.f32 %v3882_v19, %v2168_v23  ;;  %v2647_v52 = vmul.f32 %v3886_v38, %v5579_v15  ;;  %v2657_v34 = vand.u32 2147483648, %v5579_v15 }
 0x1a8   : > { %v3078_v60 = vpack.c.bf16 %v3014_v27, %v3014_v27  ;;  %v2887_v46 = vmul.f32 %v5495_v59, %v2164_v29  ;;  %v2982_v7 = vsel %vm1830_vm2, %v2629_v55, %v2918_v58  ;;  %vm2652_vm14 = vweird.f32 %v3886_v38 }
 0x1a9   : > { %v2170_v35 = vadd.f32 %v3882_v19, %v2169_v56  ;;  %v3046_v59 = vmul.f32 %v2982_v7, %v5438_v1  ;;  %v2639_v63 = vsel %vm2638_vm15, %v3880_v48, %v2635_v26  ;;  %vm6640_vm6 = vweird.f32 %v5529_v33  ;;  %v5663_v1 = vpop.f32.mrf.mxu0  ;;  %v357_v56 = vld [vmem:[#allocation2 + $0xa0] sm:$0xff] }
 0x1aa   : > { %3143 = vst.msk [vmem:[%s4431_s20 + $0x3c] sm:$0xf] %vm6639_vm0, %v3078_v60  ;;  %v2951_v49 = vsel %vm1799_vm10, %v2164_v29, %v2887_v46  ;;  %vm2173_vm5 = vmor %vm6640_vm6, %vm2172_vm3  ;;  %v2648_v54 = vsub.f32 1.0, %v2647_v52  ;;  %v2644_v13 = vsel %vm5602_vm11, %v2643_v4, %v2639_v63  ;;  %3887 = vrcp.f32 %v5651_v9  ;;  %v1158_v4 = vpop.f32.mrf.mxu1  ;;  %v388_v29 = vld [vmem:[#allocation2 + $0x198] sm:$0xff]  ;;  %v389_v46 = vld [vmem:[#allocation2 + $0x1a0] sm:$0xff] }
 0x1ab   : > { %v3015_v51 = vmul.f32 %v2951_v49, %v5441_v57  ;;  %v2174_v6 = vsel %vm2173_vm5, %v3882_v19, %v2170_v35  ;;  %v3110_v48 = vpack.c.bf16 %v3046_v59, %v3046_v59  ;;  %v2919_v53 = vmul.f32 %v5502_v10, %v2644_v13  ;;  %vm6642_vm3 = vmmov %vm6639_vm0  ;;  %v390_v49 = vld [vmem:[#allocation2 + $0x1a8] sm:$0xff] }
 0x1ac   : > { %v2179_v33 = vsel %vm5610_vm12, %v2178_v12, %v2174_v6  ;;  %v2649_v31 = vmul.f32 %v3886_v38, %v2648_v54  ;;  %vm1800_vm2 = vcmp.ge.f32.partialorder %v5464_v36, 0.0  ;;  %vm1832_vm7 = vcmp.ge.f32.partialorder %v5467_v50, 0.0 }
 0x1ad   : > { %v3079_v25 = vpack.c.bf16 %v3015_v51, %v3015_v51  ;;  %v2888_v57 = vmul.f32 %v5518_v40, %v2179_v33  ;;  %3175 = vst.msk [vmem:[%s4431_s20 + $0xbc] sm:$0xf] %vm6641_vm8, %v3110_v48  ;;  %v2983_v19 = vsel %vm1831_vm9, %v2644_v13, %v2919_v53  ;;  %vm2651_vm10 = vweird.f32 %v5579_v15  ;;  %v1238_v59 = vpop.f32.mrf.mxu3 }
 0x1ae   : > { %v2650_v39 = vadd.f32 %v3886_v38, %v2649_v31  ;;  %v1755_v10 = vmul.f32 1.442695, %v1641_v37  ;;  %v3047_v44 = vmul.f32 %v2983_v19, %v5444_v16  ;;  %vm2653_vm11 = vmor %vm2651_vm10, %vm2652_vm14  ;;  %v2658_v40 = vor.u32 1.1754944e-38, %v2657_v34 }
 0x1af   : > { %3144 = vst.msk [vmem:[%s4431_s20 + $0x40] sm:$0xf] %vm6642_vm3, %v3079_v25  ;;  %v2952_v12 = vsel %vm1800_vm2, %v2179_v33, %v2888_v57  ;;  %v1546_v62 = vand.u32 2147483647, %v5617_v45  ;;  %vm2656_vm12 = vcmp.eq.f32.partialorder %v2655_v47, 8.507059e+37  ;;  %v2192_v58 = vand.u32 2147483648, %v5651_v9  ;;  %vm6647_vm14 = vmmov %vm6642_vm3 }
 0x1b0   : > { %v3016_v27 = vmul.f32 %v2952_v12, %v5464_v36  ;;  %v2654_v24 = vsel %vm2653_vm11, %v3886_v38, %v2650_v39  ;;  %3889 = vpow2.f32 %v1755_v10  ;;  %v3888_v23 = vpop.eup %3887  ;;  %v3111_v55 = vpack.c.bf16 %v3047_v44, %v3047_v44  ;;  %v360_v33 = vld [vmem:[#allocation2 + $0xb8] sm:$0xff] }
 0x1b1   : > { %v2659_v15 = vsel %vm2656_vm12, %v2658_v40, %v2654_v24  ;;  %v2190_v37 = vand.u32 2147483647, %v5651_v9  ;;  %v1610_v11 = vsub.f32 0.0, %v1546_v62  ;;  %v2182_v60 = vmul.f32 %v3888_v23, %v5651_v9 }
 0x1b2   : > { %v3080_v16 = vpack.c.bf16 %v3016_v27, %v3016_v27  ;;  %v2920_v0 = vmul.f32 %v5539_v3, %v2659_v15  ;;  %3176 = vst.msk [vmem:[%s4431_s20 + $0xc0] sm:$0xf] %vm6643_vm4, %v3111_v55  ;;  %v1231_v47 = vadd.f32 %v5509_v8, %v5511_v18  ;;  %v1154_v38 = vadd.f32 %v5531_v41, %v5516_v43  ;;  %v358_v3 = vld [vmem:[#allocation2 + $0xa8] sm:$0xff]  ;;  %v1069_v8 = vpop.f32.mrf.mxu2 }
 0x1b3   : > { %v1693_v36 = vmul.f32 1.442695, %v1610_v11  ;;  %v1234_v26 = vadd.f32 %v5587_v32, %v5589_v28  ;;  %v2183_v34 = vsub.f32 1.0, %v2182_v60  ;;  %v1156_v7 = vadd.f32 %v5614_v14, %v5597_v30  ;;  %v991_v32 = vpop.f32.mrf.mxu0  ;;  %v1160_v14 = vpop.f32.mrf.mxu1  ;;  %v392_v60 = vld [vmem:[#allocation2 + $0x1b8] sm:$0xff] }
 0x1b4   : > { %3145 = vst.msk [vmem:[%s4431_s20 + $0x44] sm:$0xf] %vm6644_vm13, %v3080_v16  ;;  %v2984_v52 = vsel %vm1832_vm7, %v2659_v15, %v2920_v0  ;;  %v1236_v35 = vadd.f32 %v1235_v22, %v1066_v61  ;;  %v1314_v43 = vadd.f32 %v1231_v47, %v388_v29  ;;  %v1283_v41 = vadd.f32 %v1154_v38, %v357_v56  ;;  %v391_v61 = vld [vmem:[#allocation2 + $0x1b0] sm:$0xff] }
 0x1b5   : > { %v3048_v18 = vmul.f32 %v2984_v52, %v5467_v50  ;;  %3891 = vpow2.f32 %v1693_v36  ;;  %v2184_v63 = vmul.f32 %v3888_v23, %v2183_v34  ;;  %vm2187_vm1 = vweird.f32 %v3888_v23  ;;  %v359_v50 = vld [vmem:[#allocation2 + $0xb0] sm:$0xff] }
 0x1b6   : > { %v5701_v28 = vpop.eup %3889  ;;  %v1315_v54 = vadd.f32 %v1234_v26, %v389_v46  ;;  %v1284_v51 = vadd.f32 %v1156_v7, %v358_v3  ;;  %vm6645_vm9 = vcmask 261120   ;;  %v1159_v22 = vadd.f32 %v1158_v4, %v5663_v1 }
 0x1b7   : > { %v3112_v13 = vpack.c.bf16 %v3048_v18, %v3048_v18  ;;  %v5704_v30 = vadd.f32 1.0, %v5701_v28  ;;  %1379 = vst.msk [vmem:[#allocation2 + $0x198] sm:$0xff] %vm6645_vm9, %v1314_v43  ;;  %v1239_v6 = vadd.f32 %v1238_v59, %v1069_v8  ;;  %v2185_v48 = vadd.f32 %v3888_v23, %v2184_v63  ;;  %vm6646_vm15 = vmmov %vm6645_vm9 }
 0x1b8   : > { %vm2186_vm0 = vweird.f32 %v5651_v9  ;;  %1348 = vst.msk [vmem:[#allocation2 + $0xa0] sm:$0xff] %vm6646_vm15, %v1283_v41  ;;  %v1316_v53 = vadd.f32 %v1236_v35, %v390_v49  ;;  %v1161_v31 = vadd.f32 %v1160_v14, %v991_v32  ;;  %v2193_v25 = vor.u32 1.1754944e-38, %v2192_v58  ;;  %vm6648_vm2 = vmmov %vm6645_vm9 }
 0x1b9   : > { %3177 = vst.msk [vmem:[%s4431_s20 + $0xc4] sm:$0xf] %vm6647_vm14, %v3112_v13  ;;  %vm2188_vm6 = vmor %vm2186_vm0, %vm2187_vm1  ;;  %3893 = vrcp.f32 %v5704_v30  ;;  %vm2191_vm5 = vcmp.eq.f32.partialorder %v2190_v37, 8.507059e+37  ;;  %v1285_v1 = vadd.f32 %v1159_v22, %v359_v50  ;;  %v1317_v4 = vadd.f32 %v1239_v6, %v391_v61 }
 0x1ba   : > { %v2189_v57 = vsel %vm2188_vm6, %v3888_v23, %v2185_v48  ;;  %1380 = vst.msk [vmem:[#allocation2 + $0x1a0] sm:$0xff] %vm6648_vm2, %v1315_v54  ;;  %vm6649_vm7 = vmmov %vm6648_vm2  ;;  %v1286_v39 = vadd.f32 %v1161_v31, %v360_v33  ;;  %vm1801_vm10 = vcmp.ge.f32.partialorder %v5477_v42, 0.0  ;;  %v2670_v12 = vand.u32 2147483647, %v5704_v30  ;;  %v1071_v24 = vpop.f32.mrf.mxu2 }
 0x1bb   : > { %v5715_v19 = vpop.eup %3891  ;;  %v2194_v9 = vsel %vm2191_vm5, %v2193_v25, %v2189_v57  ;;  %1349 = vst.msk [vmem:[#allocation2 + $0xa8] sm:$0xff] %vm6649_vm7, %v1284_v51  ;;  %vm6650_vm8 = vmmov %vm6648_vm2  ;;  %v2672_v40 = vand.u32 2147483648, %v5704_v30  ;;  %vm2666_vm9 = vweird.f32 %v5704_v30  ;;  %vm1833_vm6 = vcmp.ge.f32.partialorder %v5534_v2, 0.0  ;;  %v994_v29 = vpop.f32.mrf.mxu0 }
 0x1bc   : > { %v2889_v10 = vmul.f32 %v5606_v17, %v2194_v9  ;;  %v5720_v44 = vadd.f32 1.0, %v5715_v19  ;;  %1381 = vst.msk [vmem:[#allocation2 + $0x1a8] sm:$0xff] %vm6650_vm8, %v1316_v53  ;;  %vm6651_vm3 = vmmov %vm6648_vm2  ;;  %v1240_v17 = vpop.f32.mrf.mxu3  ;;  %vm5738_vm4 = vcmp.eq.f32.partialorder %v2670_v12, 8.507059e+37  ;;  %vm1802_vm8 = vcmp.ge.f32.partialorder %v5617_v45, 0.0 }
 0x1bd   : > { %1350 = vst.msk [vmem:[#allocation2 + $0xb0] sm:$0xff] %vm6651_vm3, %v1285_v1  ;;  %vm6652_vm11 = vmmov %vm6648_vm2  ;;  %v1241_v11 = vadd.f32 %v1240_v17, %v1071_v24 }
 0x1be   : > { %v2953_v62 = vsel %vm1801_vm10, %v2194_v9, %v2889_v10  ;;  %3895 = vrcp.f32 %v5720_v44  ;;  %v1446_v27 = vld [vmem:[#allocation2 + $0x198] sm:$0xff]  ;;  %1382 = vst.msk [vmem:[#allocation2 + $0x1b0] sm:$0xff] %vm6652_vm11, %v1317_v4  ;;  %vm6653_vm12 = vmmov %vm6648_vm2  ;;  %v2205_v38 = vand.u32 2147483647, %v5720_v44  ;;  %v2207_v52 = vand.u32 2147483648, %v5720_v44 }
 0x1bf   : > { %v3894_v23 = vpop.eup %3893  ;;  %v3017_v55 = vmul.f32 %v2953_v62, %v5477_v42  ;;  %v5731_v15 = vadd.f32 %v5418_v20, %v1446_v27  ;;  %v1415_v37 = vld [vmem:[#allocation2 + $0xa0] sm:$0xff]  ;;  %1351 = vst.msk [vmem:[#allocation2 + $0xb8] sm:$0xff] %vm6653_vm12, %v1286_v39  ;;  %v2673_v42 = vor.u32 1.1754944e-38, %v2672_v40  ;;  %v1318_v35 = vadd.f32 %v1241_v11, %v392_v60  ;;  %vm6656_vm0 = vmmov %vm6648_vm2  ;;  %v1163_v60 = vpop.f32.mrf.mxu1 }
 0x1c0   : > { %v2662_v16 = vmul.f32 %v3894_v23, %v5704_v30  ;;  %v5736_v0 = vadd.f32 %v5418_v20, %v1415_v37  ;;  %vm2667_vm1 = vweird.f32 %v3894_v23  ;;  %vm2201_vm5 = vweird.f32 %v5720_v44  ;;  %vm6657_vm10 = vmmov %vm6644_vm13 }
 0x1c1   : > { %v3081_v58 = vpack.c.bf16 %v3017_v55, %v3017_v55  ;;  %v1578_v56 = vand.u32 2147483647, %v5731_v15  ;;  %v1447_v36 = vld [vmem:[#allocation2 + $0x1a0] sm:$0xff]  ;;  %1383 = vst.msk [vmem:[#allocation2 + $0x1b8] sm:$0xff] %vm6656_vm0, %v1318_v35  ;;  %vm2668_vm14 = vmor %vm2666_vm9, %vm2667_vm1  ;;  %v2208_v10 = vor.u32 1.1754944e-38, %v2207_v52  ;;  %vm2206_vm7 = vcmp.eq.f32.partialorder %v2205_v38, 8.507059e+37 }
 0x1c2   : > { %v2663_v47 = vsub.f32 1.0, %v2662_v16  ;;  %v1547_v46 = vand.u32 2147483647, %v5736_v0  ;;  %v5746_v26 = vadd.f32 %v5418_v20, %v1447_v36  ;;  %v1416_v3 = vld [vmem:[#allocation2 + $0xa8] sm:$0xff]  ;;  %vm6658_vm3 = vmmov %vm6657_vm10  ;;  %vm1834_vm1 = vcmp.ge.f32.partialorder %v5731_v15, 0.0 }
 0x1c3   : > { %3146 = vst.msk [vmem:[%s4431_s20 + $0x48] sm:$0xf] %vm6644_vm13, %v3081_v58  ;;  %v1642_v34 = vsub.f32 0.0, %v1578_v56  ;;  %v5752_v7 = vadd.f32 %v5418_v20, %v1416_v3  ;;  %v1448_v41 = vld [vmem:[#allocation2 + $0x1a8] sm:$0xff] }
 0x1c4   : > { %v3896_v59 = vpop.eup %3895  ;;  %v2664_v8 = vmul.f32 %v3894_v23, %v2663_v47  ;;  %v1611_v18 = vsub.f32 0.0, %v1547_v46  ;;  %v1579_v43 = vand.u32 2147483647, %v5746_v26  ;;  %v1417_v54 = vld [vmem:[#allocation2 + $0xb0] sm:$0xff]  ;;  %v5760_v61 = vadd.f32 %v5418_v20, %v1448_v41 }
 0x1c5   : > { %v2197_v49 = vmul.f32 %v3896_v59, %v5720_v44  ;;  %v1757_v32 = vmul.f32 1.442695, %v1642_v34  ;;  %v1548_v63 = vand.u32 2147483647, %v5752_v7  ;;  %vm2202_vm15 = vweird.f32 %v3896_v59  ;;  %v1449_v17 = vld [vmem:[#allocation2 + $0x1b0] sm:$0xff] }
 0x1c6   : > { %v2665_v51 = vadd.f32 %v3894_v23, %v2664_v8  ;;  %v1695_v13 = vmul.f32 1.442695, %v1611_v18  ;;  %v1643_v14 = vsub.f32 0.0, %v1579_v43  ;;  %v5763_v48 = vadd.f32 %v5418_v20, %v1417_v54  ;;  %vm2203_vm2 = vmor %vm2201_vm5, %vm2202_vm15  ;;  %v1418_v47 = vld [vmem:[#allocation2 + $0xb8] sm:$0xff] }
 0x1c7   : > { %v2198_v50 = vsub.f32 1.0, %v2197_v49  ;;  %3897 = vpow2.f32 %v1757_v32  ;;  %v1612_v22 = vsub.f32 0.0, %v1548_v63  ;;  %v1580_v25 = vand.u32 2147483647, %v5760_v61  ;;  %v5827_v63 = vpop.f32.mrf.mxu3 }
 0x1c8   : > { %v2669_v30 = vsel %vm2668_vm14, %v3894_v23, %v2665_v51  ;;  %3899 = vpow2.f32 %v1695_v13  ;;  %v1759_v6 = vmul.f32 1.442695, %v1643_v14  ;;  %v1549_v1 = vand.u32 2147483647, %v5763_v48  ;;  %v1450_v52 = vld [vmem:[#allocation2 + $0x1b8] sm:$0xff] }
 0x1c9   : > { %v2674_v53 = vsel %vm5738_vm4, %v2673_v42, %v2669_v30  ;;  %v2199_v33 = vmul.f32 %v3896_v59, %v2198_v50  ;;  %v1697_v31 = vmul.f32 1.442695, %v1612_v22  ;;  %v1644_v9 = vsub.f32 0.0, %v1580_v25 }
 0x1ca   : > { %v2921_v57 = vmul.f32 %v5701_v28, %v2674_v53  ;;  %3901 = vpow2.f32 %v1759_v6  ;;  %v1613_v12 = vsub.f32 0.0, %v1549_v1  ;;  %v5790_v58 = vadd.f32 %v5418_v20, %v1449_v17 }
 0x1cb   : > { %v2200_v4 = vadd.f32 %v3896_v59, %v2199_v33  ;;  %3903 = vpow2.f32 %v1697_v31  ;;  %v1761_v28 = vmul.f32 1.442695, %v1644_v9  ;;  %v5815_v43 = vadd.f32 %v5418_v20, %v1418_v47 }
 0x1cc   : > { %v2985_v39 = vsel %vm1833_vm6, %v2674_v53, %v2921_v57  ;;  %v1699_v55 = vmul.f32 1.442695, %v1613_v12  ;;  %v5817_v41 = vadd.f32 %v1163_v60, %v994_v29  ;;  %v5825_v32 = vadd.f32 %v5418_v20, %v1450_v52 }
 0x1cd   : > { %v5773_v40 = vpop.eup %3897  ;;  %v3049_v62 = vmul.f32 %v2985_v39, %v5534_v2  ;;  %v2204_v27 = vsel %vm2203_vm2, %v3896_v59, %v2200_v4  ;;  %3905 = vpow2.f32 %v1761_v28  ;;  %v1581_v59 = vand.u32 2147483647, %v5790_v58  ;;  %v5856_v39 = vpop.f32.mrf.mxu1 }
 0x1ce   : > { %v5776_v24 = vpop.eup %3899  ;;  %v2209_v23 = vsel %vm2206_vm7, %v2208_v10, %v2204_v27  ;;  %v5779_v44 = vadd.f32 1.0, %v5773_v40  ;;  %v5858_v10 = vpop.f32.mrf.mxu0  ;;  %vm1803_vm15 = vcmp.ge.f32.partialorder %v5736_v0, 0.0 }
 0x1cf   : > { %v3113_v37 = vpack.c.bf16 %v3049_v62, %v3049_v62  ;;  %v2890_v11 = vmul.f32 %v5715_v19, %v2209_v23  ;;  %v5783_v16 = vadd.f32 1.0, %v5776_v24  ;;  %v1645_v53 = vsub.f32 0.0, %v1581_v59 }
 0x1d0   : > { %v5785_v2 = vpop.eup %3901  ;;  %3907 = vrcp.f32 %v5779_v44  ;;  %v2685_v36 = vand.u32 2147483647, %v5779_v44  ;;  %v2687_v38 = vand.u32 2147483648, %v5779_v44  ;;  %vm2681_vm11 = vweird.f32 %v5779_v44 }
 0x1d1   : > { %v5792_v42 = vpop.eup %3903  ;;  %3178 = vst.msk [vmem:[%s4431_s20 + $0xc8] sm:$0xf] %vm6657_vm10, %v3113_v37  ;;  %v2954_v19 = vsel %vm1802_vm8, %v2209_v23, %v2890_v11  ;;  %3909 = vrcp.f32 %v5783_v16  ;;  %v5801_v46 = vadd.f32 1.0, %v5785_v2  ;;  %v2220_v35 = vand.u32 2147483647, %v5783_v16 }
 0x1d2   : > { %v3018_v56 = vmul.f32 %v2954_v19, %v5617_v45  ;;  %v5804_v3 = vadd.f32 1.0, %v5792_v42  ;;  %3911 = vpow2.f32 %v1699_v55  ;;  %v5808_v45 = vpop.f32.mrf.mxu2  ;;  %v2222_v18 = vand.u32 2147483648, %v5783_v16 }
 0x1d3   : > { %v5810_v8 = vpop.eup %3905  ;;  %3913 = vrcp.f32 %v5801_v46  ;;  %vm2216_vm12 = vweird.f32 %v5783_v16  ;;  %vm5832_vm4 = vcmp.eq.f32.partialorder %v2685_v36, 8.507059e+37  ;;  %v2688_v14 = vor.u32 1.1754944e-38, %v2687_v38 }
 0x1d4   : > { %v3082_v34 = vpack.c.bf16 %v3018_v56, %v3018_v56  ;;  %3915 = vrcp.f32 %v5804_v3  ;;  %v2702_v50 = vand.u32 2147483648, %v5801_v46  ;;  %vm5839_vm13 = vcmp.eq.f32.partialorder %v2220_v35, 8.507059e+37 }
 0x1d5   : > { %v2700_v20 = vand.u32 2147483647, %v5801_v46  ;;  %v2237_v6 = vand.u32 2147483648, %v5804_v3  ;;  %v2223_v25 = vor.u32 1.1754944e-38, %v2222_v18  ;;  %v2235_v57 = vand.u32 2147483647, %v5804_v3 }
 0x1d6   : > { %v3908_v49 = vpop.eup %3907  ;;  %3147 = vst.msk [vmem:[%s4431_s20 + $0x4c] sm:$0xf] %vm6658_vm3, %v3082_v34  ;;  %v5849_v1 = vadd.f32 1.0, %v5810_v8  ;;  %vm2696_vm0 = vweird.f32 %v5801_v46  ;;  %v2703_v27 = vor.u32 1.1754944e-38, %v2702_v50  ;;  %vm2231_vm6 = vweird.f32 %v5804_v3 }
 0x1d7   : > { %v5829_v54 = vpop.eup %3909  ;;  %v2677_v51 = vmul.f32 %v3908_v49, %v5779_v44  ;;  %vm2682_vm9 = vweird.f32 %v3908_v49  ;;  %vm5869_vm5 = vcmp.eq.f32.partialorder %v2700_v20, 8.507059e+37  ;;  %v2238_v37 = vor.u32 1.1754944e-38, %v2237_v6 }
 0x1d8   : > { %v2212_v22 = vmul.f32 %v5829_v54, %v5783_v16  ;;  %v5845_v33 = vpop.eup %3911  ;;  %vm2217_vm14 = vweird.f32 %v5829_v54  ;;  %3917 = vrcp.f32 %v5849_v1  ;;  %v1763_v11 = vmul.f32 1.442695, %v1645_v53  ;;  %vm2683_vm7 = vmor %vm2681_vm11, %vm2682_vm9  ;;  %v5901_v16 = vpop.f32.mrf.mxu3 }
 0x1d9   : > { %v2678_v31 = vsub.f32 1.0, %v2677_v51  ;;  %v5854_v9 = vadd.f32 1.0, %v5845_v33  ;;  %v5860_v12 = vpop.eup %3913  ;;  %vm5874_vm2 = vcmp.eq.f32.partialorder %v2235_v57, 8.507059e+37  ;;  %v2717_v56 = vand.u32 2147483648, %v5849_v1  ;;  %vm2218_vm8 = vmor %vm2216_vm12, %vm2217_vm14 }
 0x1da   : > { %v2213_v4 = vsub.f32 1.0, %v2212_v22  ;;  %v3916_v28 = vpop.eup %3915  ;;  %v2692_v23 = vmul.f32 %v5860_v12, %v5801_v46  ;;  %v1550_v36 = vand.u32 2147483647, %v5815_v43  ;;  %v2715_v52 = vand.u32 2147483647, %v5849_v1  ;;  %v5886_v34 = vpop.f32.mrf.mxu2 }
 0x1db   : > { %v2679_v62 = vmul.f32 %v3908_v49, %v2678_v31  ;;  %v2227_v29 = vmul.f32 %v3916_v28, %v5804_v3  ;;  %3919 = vrcp.f32 %v5854_v9  ;;  %vm1835_vm10 = vcmp.ge.f32.partialorder %v5746_v26, 0.0 }
 0x1dc   : > { %v2214_v17 = vmul.f32 %v5829_v54, %v2213_v4  ;;  %v2693_v38 = vsub.f32 1.0, %v2692_v23  ;;  %vm2697_vm3 = vweird.f32 %v5860_v12  ;;  %v1582_v59 = vand.u32 2147483647, %v5825_v32  ;;  %v5930_v23 = vpop.f32.mrf.mxu0 }
 0x1dd   : > { %v2680_v60 = vadd.f32 %v3908_v49, %v2679_v62  ;;  %v2228_v44 = vsub.f32 1.0, %v2227_v29  ;;  %vm1804_vm11 = vcmp.ge.f32.partialorder %v5752_v7, 0.0  ;;  %vm2232_vm9 = vweird.f32 %v3916_v28 }
 0x1de   : > { %v2215_v47 = vadd.f32 %v5829_v54, %v2214_v17  ;;  %v2694_v50 = vmul.f32 %v5860_v12, %v2693_v38  ;;  %v2718_v13 = vor.u32 1.1754944e-38, %v2717_v56  ;;  %vm5909_vm12 = vcmp.eq.f32.partialorder %v2715_v52, 8.507059e+37  ;;  %v5928_v17 = vpop.f32.mrf.mxu1 }
 0x1df   : > { %v2684_v35 = vsel %vm2683_vm7, %v3908_v49, %v2680_v60  ;;  %vm2711_vm7 = vweird.f32 %v5849_v1  ;;  %v3918_v49 = vpop.eup %3917  ;;  %v2229_v6 = vmul.f32 %v3916_v28, %v2228_v44  ;;  %v2250_v57 = vand.u32 2147483647, %v5854_v9 }
 0x1e0   : > { %v2689_v18 = vsel %vm5832_vm4, %v2688_v14, %v2684_v35  ;;  %v2219_v51 = vsel %vm2218_vm8, %v5829_v54, %v2215_v47  ;;  %v2695_v54 = vadd.f32 %v5860_v12, %v2694_v50  ;;  %v2707_v53 = vmul.f32 %v3918_v49, %v5849_v1  ;;  %vm2698_vm4 = vmor %vm2696_vm0, %vm2697_vm3  ;;  %v361_v1 = vld [vmem:[#allocation2 + $0xc0] sm:$0xff] }
 0x1e1   : > { %v2922_v22 = vmul.f32 %v5773_v40, %v2689_v18  ;;  %v2224_v20 = vsel %vm5839_vm13, %v2223_v25, %v2219_v51  ;;  %v2230_v30 = vadd.f32 %v3916_v28, %v2229_v6  ;;  %vm2712_vm13 = vweird.f32 %v3918_v49 }
 0x1e2   : > { %v2891_v14 = vmul.f32 %v5776_v24, %v2224_v20  ;;  %vm2246_vm14 = vweird.f32 %v5854_v9  ;;  %3921 = vpow2.f32 %v1763_v11  ;;  %v3920_v24 = vpop.eup %3919  ;;  %v2699_v62 = vsel %vm2698_vm4, %v5860_v12, %v2695_v54 }
 0x1e3   : > { %v2986_v40 = vsel %vm1834_vm1, %v2689_v18, %v2922_v22  ;;  %vm2233_vm1 = vmor %vm2231_vm6, %vm2232_vm9  ;;  %v2708_v46 = vsub.f32 1.0, %v2707_v53  ;;  %v2242_v29 = vmul.f32 %v3920_v24, %v5854_v9  ;;  %vm6669_vm0 = vcmask 257024   ;;  %v1079_v18 = vpop.f32.mrf.mxu2  ;;  %v1248_v22 = vpop.f32.mrf.mxu3 }
 0x1e4   : > { %v3050_v25 = vmul.f32 %v2986_v40, %v5731_v15  ;;  %v2955_v4 = vsel %vm1803_vm15, %v2224_v20, %v2891_v14  ;;  %v2704_v15 = vsel %vm5869_vm5, %v2703_v27, %v2699_v62  ;;  %v2234_v60 = vsel %vm2233_vm1, %v3916_v28, %v2230_v30  ;;  %vm6670_vm15 = vmmov %vm6669_vm0  ;;  %v362_v62 = vld [vmem:[#allocation2 + $0xc8] sm:$0xff] }
 0x1e5   : > { %v3019_v11 = vmul.f32 %v2955_v4, %v5736_v0  ;;  %v2923_v56 = vmul.f32 %v5785_v2, %v2704_v15  ;;  %v2239_v3 = vsel %vm5874_vm2, %v2238_v37, %v2234_v60  ;;  %v2709_v47 = vmul.f32 %v3918_v49, %v2708_v46  ;;  %vm2713_vm6 = vmor %vm2711_vm7, %vm2712_vm13  ;;  %v393_v4 = vld [vmem:[#allocation2 + $0x1c0] sm:$0xff] }
 0x1e6   : > { %v3114_v12 = vpack.c.bf16 %v3050_v25, %v3050_v25  ;;  %v2892_v52 = vmul.f32 %v5792_v42, %v2239_v3  ;;  %v2243_v35 = vsub.f32 1.0, %v2242_v29  ;;  %v2252_v0 = vand.u32 2147483648, %v5854_v9  ;;  %vm6671_vm8 = vmmov %vm6669_vm0  ;;  %v1170_v40 = vpop.f32.mrf.mxu1  ;;  %v1001_v9 = vpop.f32.mrf.mxu0 }
 0x1e7   : > { %v3083_v38 = vpack.c.bf16 %v3019_v11, %v3019_v11  ;;  %v2987_v27 = vsel %vm1835_vm10, %v2704_v15, %v2923_v56  ;;  %v2710_v28 = vadd.f32 %v3918_v49, %v2709_v47  ;;  %v1614_v55 = vsub.f32 0.0, %v1550_v36  ;;  %v363_v15 = vld [vmem:[#allocation2 + $0xd0] sm:$0xff] }
 0x1e8   : > { %3179 = vst.msk [vmem:[%s4431_s20 + $0xcc] sm:$0xf] %vm6669_vm0, %v3114_v12  ;;  %v1646_v44 = vsub.f32 0.0, %v1582_v59  ;;  %v5945_v2 = vpop.eup %3921  ;;  %v3051_v37 = vmul.f32 %v2987_v27, %v5746_v26  ;;  %v2956_v42 = vsel %vm1804_vm11, %v2239_v3, %v2892_v52  ;;  %v2244_v19 = vmul.f32 %v3920_v24, %v2243_v35  ;;  %vm6672_vm11 = vmmov %vm6669_vm0 }
 0x1e9   : > { %3148 = vst.msk [vmem:[%s4431_s20 + $0x50] sm:$0xf] %vm6670_vm15, %v3083_v38  ;;  %vm2247_vm5 = vweird.f32 %v3920_v24  ;;  %v3020_v36 = vmul.f32 %v2956_v42, %v5752_v7  ;;  %v2714_v59 = vsel %vm2713_vm6, %v3918_v49, %v2710_v28  ;;  %v5957_v51 = vadd.f32 1.0, %v5945_v2 }
 0x1ea   : > { %v1701_v50 = vmul.f32 1.442695, %v1614_v55  ;;  %v3115_v26 = vpack.c.bf16 %v3051_v37, %v3051_v37  ;;  %v2719_v20 = vsel %vm5909_vm12, %v2718_v13, %v2714_v59  ;;  %v2245_v6 = vadd.f32 %v3920_v24, %v2244_v19  ;;  %vm2248_vm2 = vmor %vm2246_vm14, %vm2247_vm5  ;;  %v396_v37 = vld [vmem:[#allocation2 + $0x1d8] sm:$0xff] }
 0x1eb   : > { %v1765_v14 = vmul.f32 1.442695, %v1646_v44  ;;  %v3084_v54 = vpack.c.bf16 %v3020_v36, %v3020_v36  ;;  %v2924_v53 = vmul.f32 %v5810_v8, %v2719_v20  ;;  %v2253_v7 = vor.u32 1.1754944e-38, %v2252_v0  ;;  %vm6674_vm12 = vmmov %vm6669_vm0  ;;  %v1250_v52 = vpop.f32.mrf.mxu3  ;;  %v6011_v36 = vld [vmem:[%s6512_s2] ss:$0 sm:$0xff] }
 0x1ec   : > { %3923 = vrcp.f32 %v5957_v51  ;;  %3180 = vst.msk [vmem:[%s4431_s20 + $0xd0] sm:$0xf] %vm6671_vm8, %v3115_v26  ;;  %vm1836_vm10 = vcmp.ge.f32.partialorder %v5760_v61, 0.0  ;;  %v2249_v49 = vsel %vm2248_vm2, %v3920_v24, %v2245_v6  ;;  %vm2251_vm3 = vcmp.eq.f32.partialorder %v2250_v57, 8.507059e+37  ;;  %vm6677_vm14 = vmmov %vm6669_vm0 }
 0x1ed   : > { %3925 = vpow2.f32 %v1701_v50  ;;  %3149 = vst.msk [vmem:[%s4431_s20 + $0x54] sm:$0xf] %vm6672_vm11, %v3084_v54  ;;  %v2988_v13 = vsel %vm1836_vm10, %v2719_v20, %v2924_v53  ;;  %v2254_v31 = vsel %vm2251_vm3, %v2253_v7, %v2249_v49  ;;  %v1287_v8 = vadd.f32 %v5817_v41, %v361_v1  ;;  %v394_v41 = vld [vmem:[#allocation2 + $0x1c8] sm:$0xff]  ;;  %v365_v54 = vld [vmem:[#allocation2 + $0xe0] sm:$0xff] }
 0x1ee   : > { %3927 = vpow2.f32 %v1765_v14  ;;  %v3052_v30 = vmul.f32 %v2988_v13, %v5760_v61  ;;  %vm1805_vm9 = vcmp.ge.f32.partialorder %v5763_v48, 0.0  ;;  %v2893_v25 = vmul.f32 %v5845_v33, %v2254_v31  ;;  %v1173_v50 = vpop.f32.mrf.mxu1 }
 0x1ef   : > { %vm6673_vm7 = vcmask 261120   ;;  %v1244_v57 = vadd.f32 %v5827_v63, %v5808_v45  ;;  %v1166_v24 = vadd.f32 %v5856_v39, %v5858_v10  ;;  %v1246_v46 = vadd.f32 %v5901_v16, %v5886_v34  ;;  %v395_v63 = vld [vmem:[#allocation2 + $0x1d0] sm:$0xff]  ;;  %v1081_v39 = vpop.f32.mrf.mxu2 }
 0x1f0   : > { %1352 = vst.msk [vmem:[#allocation2 + $0xc0] sm:$0xff] %vm6673_vm7, %v1287_v8  ;;  %v1169_v61 = vadd.f32 %v5928_v17, %v5930_v23  ;;  %v3116_v11 = vpack.c.bf16 %v3052_v30, %v3052_v30  ;;  %v2957_v33 = vsel %vm1805_vm9, %v2254_v31, %v2893_v25  ;;  %v1249_v60 = vadd.f32 %v1248_v22, %v1079_v18  ;;  %v364_v17 = vld [vmem:[#allocation2 + $0xd8] sm:$0xff]  ;;  %vm6675_vm4 = vmmov %vm6673_vm7  ;;  %v1004_v22 = vpop.f32.mrf.mxu0 }
 0x1f1   : > { %v3021_v12 = vmul.f32 %v2957_v33, %v5763_v48  ;;  %v1319_v56 = vadd.f32 %v1244_v57, %v393_v4  ;;  %v1288_v45 = vadd.f32 %v1166_v24, %v362_v62  ;;  %v1171_v3 = vadd.f32 %v1170_v40, %v1001_v9  ;;  %vm6676_vm13 = vmmov %vm6675_vm4 }
 0x1f2   : > { %v3924_v29 = vpop.eup %3923  ;;  %3181 = vst.msk [vmem:[%s4431_s20 + $0xd4] sm:$0xf] %vm6674_vm12, %v3116_v11  ;;  %v1320_v16 = vadd.f32 %v1246_v46, %v394_v41  ;;  %v1289_v48 = vadd.f32 %v1169_v61, %v363_v15  ;;  %v1321_v27 = vadd.f32 %v1249_v60, %v395_v63  ;;  %v1251_v28 = vadd.f32 %v1250_v52, %v1081_v39  ;;  %vm6678_vm0 = vmmov %vm6675_vm4 }
 0x1f3   : > { %v5984_v10 = vpop.eup %3925  ;;  %v2722_v34 = vmul.f32 %v3924_v29, %v5957_v51  ;;  %v3085_v47 = vpack.c.bf16 %v3021_v12, %v3021_v12  ;;  %1384 = vst.msk [vmem:[#allocation2 + $0x1c0] sm:$0xff] %vm6675_vm4, %v1319_v56  ;;  %v2730_v55 = vand.u32 2147483647, %v5957_v51  ;;  %v2732_v44 = vand.u32 2147483648, %v5957_v51  ;;  %vm6679_vm5 = vmmov %vm6678_vm0 }
 0x1f4   : > { %v5989_v23 = vpop.eup %3927  ;;  %v5992_v38 = vadd.f32 1.0, %v5984_v10  ;;  %1353 = vst.msk [vmem:[#allocation2 + $0xc8] sm:$0xff] %vm6676_vm13, %v1288_v45  ;;  %v1290_v18 = vadd.f32 %v1171_v3, %v364_v17  ;;  %vm2727_vm1 = vweird.f32 %v3924_v29  ;;  %vm1837_vm15 = vcmp.ge.f32.partialorder %v5790_v58, 0.0  ;;  %vm6680_vm2 = vmmov %vm6678_vm0 }
 0x1f5   : > { %v2723_v35 = vsub.f32 1.0, %v2722_v34  ;;  %v5996_v0 = vadd.f32 1.0, %v5989_v23  ;;  %3150 = vst.msk [vmem:[%s4431_s20 + $0x58] sm:$0xf] %vm6677_vm14, %v3085_v47  ;;  %vm2726_vm6 = vweird.f32 %v5957_v51  ;;  %v1322_v6 = vadd.f32 %v1251_v28, %v396_v37  ;;  %vm6681_vm3 = vmmov %vm6678_vm0 }
 0x1f6   : > { %3929 = vrcp.f32 %v5992_v38  ;;  %1385 = vst.msk [vmem:[#allocation2 + $0x1c8] sm:$0xff] %vm6678_vm0, %v1320_v16  ;;  %v2265_v20 = vand.u32 2147483647, %v5992_v38  ;;  %v1174_v14 = vadd.f32 %v1173_v50, %v1004_v22  ;;  %vm2728_vm8 = vmor %vm2726_vm6, %vm2727_vm1  ;;  %vm2731_vm10 = vcmp.eq.f32.partialorder %v2730_v55, 8.507059e+37  ;;  %v6053_v52 = vpop.f32.mrf.mxu1 }
 0x1f7   : > { %v2724_v42 = vmul.f32 %v3924_v29, %v2723_v35  ;;  %3931 = vrcp.f32 %v5996_v0  ;;  %v1419_v19 = vld [vmem:[#allocation2 + $0xc0] sm:$0xff]  ;;  %1354 = vst.msk [vmem:[#allocation2 + $0xd0] sm:$0xff] %vm6679_vm5, %v1289_v48  ;;  %v2733_v51 = vor.u32 1.1754944e-38, %v2732_v44  ;;  %vm2261_vm11 = vweird.f32 %v5992_v38  ;;  %vm6682_vm9 = vmmov %vm6678_vm0 }
 0x1f8   : > { %v6014_v59 = vadd.f32 %v6011_v36, %v1419_v19  ;;  %1386 = vst.msk [vmem:[#allocation2 + $0x1d0] sm:$0xff] %vm6680_vm2, %v1321_v27  ;;  %v2267_v7 = vand.u32 2147483648, %v5992_v38  ;;  %v1291_v13 = vadd.f32 %v1174_v14, %v365_v54  ;;  %vm2741_vm7 = vweird.f32 %v5996_v0  ;;  %vm6685_vm4 = vmmov %vm6678_vm0 }
 0x1f9   : > { %v2725_v26 = vadd.f32 %v3924_v29, %v2724_v42  ;;  %1355 = vst.msk [vmem:[#allocation2 + $0xd8] sm:$0xff] %vm6681_vm3, %v1290_v18  ;;  %v2745_v40 = vand.u32 2147483647, %v5996_v0  ;;  %vm6032_vm12 = vcmp.eq.f32.partialorder %v2265_v20, 8.507059e+37  ;;  %v2747_v61 = vand.u32 2147483648, %v5996_v0 }
 0x1fa   : > { %v1551_v1 = vand.u32 2147483647, %v6014_v59  ;;  %v1451_v49 = vld [vmem:[#allocation2 + $0x1c0] sm:$0xff]  ;;  %1387 = vst.msk [vmem:[#allocation2 + $0x1d8] sm:$0xff] %vm6682_vm9, %v1322_v6  ;;  %v2268_v27 = vor.u32 1.1754944e-38, %v2267_v7  ;;  %vm6686_vm1 = vcmask 257024  }
 0x1fb   : > { %v2729_v53 = vsel %vm2728_vm8, %v3924_v29, %v2725_v26  ;;  %v6028_v30 = vadd.f32 %v6011_v36, %v1451_v49  ;;  %v1420_v25 = vld [vmem:[#allocation2 + $0xc8] sm:$0xff]  ;;  %1356 = vst.msk [vmem:[#allocation2 + $0xe0] sm:$0xff] %vm6685_vm4, %v1291_v13  ;;  %v2748_v18 = vor.u32 1.1754944e-38, %v2747_v61  ;;  %vm2746_vm6 = vcmp.eq.f32.partialorder %v2745_v40, 8.507059e+37  ;;  %vm6687_vm8 = vmmov %vm6686_vm1 }
 0x1fc   : > { %v3930_v31 = vpop.eup %3929  ;;  %v2734_v8 = vsel %vm2731_vm10, %v2733_v51, %v2729_v53  ;;  %v1615_v9 = vsub.f32 0.0, %v1551_v1  ;;  %v6037_v41 = vadd.f32 %v6011_v36, %v1420_v25  ;;  %vm1806_vm5 = vcmp.ge.f32.partialorder %v5815_v43, 0.0  ;;  %vm6688_vm10 = vmmov %vm6686_vm1 }
 0x1fd   : > { %v3932_v4 = vpop.eup %3931  ;;  %v2925_v62 = vmul.f32 %v5945_v2, %v2734_v8  ;;  %v2257_v57 = vmul.f32 %v3930_v31, %v5992_v38  ;;  %v1583_v33 = vand.u32 2147483647, %v6028_v30  ;;  %v1452_v15 = vld [vmem:[#allocation2 + $0x1c8] sm:$0xff]  ;;  %vm2262_vm13 = vweird.f32 %v3930_v31 }
 0x1fe   : > { %v2737_v46 = vmul.f32 %v3932_v4, %v5996_v0  ;;  %v1703_v11 = vmul.f32 1.442695, %v1615_v9  ;;  %v1552_v29 = vand.u32 2147483647, %v6037_v41  ;;  %v1421_v12 = vld [vmem:[#allocation2 + $0xd0] sm:$0xff]  ;;  %vm2742_vm14 = vweird.f32 %v3932_v4  ;;  %vm2263_vm0 = vmor %vm2261_vm11, %vm2262_vm13 }
 0x1ff   : > { %v2989_v2 = vsel %vm1837_vm15, %v2734_v8, %v2925_v62  ;;  %v2258_v60 = vsub.f32 1.0, %v2257_v57  ;;  %v1647_v63 = vsub.f32 0.0, %v1583_v33  ;;  %v6048_v34 = vadd.f32 %v6011_v36, %v1452_v15  ;;  %v1453_v35 = vld [vmem:[#allocation2 + $0x1d0] sm:$0xff]  ;;  %vm2743_vm15 = vmor %vm2741_vm7, %vm2742_vm14 }
 0x200   : > { %v3053_v56 = vmul.f32 %v2989_v2, %v5790_v58  ;;  %v2738_v45 = vsub.f32 1.0, %v2737_v46  ;;  %3933 = vpow2.f32 %v1703_v11  ;;  %v1616_v39 = vsub.f32 0.0, %v1552_v29  ;;  %v1422_v62 = vld [vmem:[#allocation2 + $0xd8] sm:$0xff] }
 0x201   : > { %v2259_v3 = vmul.f32 %v3930_v31, %v2258_v60  ;;  %v1767_v47 = vmul.f32 1.442695, %v1647_v63  ;;  %v6051_v48 = vadd.f32 %v6011_v36, %v1421_v12  ;;  %v1584_v55 = vand.u32 2147483647, %v6048_v34  ;;  %v1454_v24 = vld [vmem:[#allocation2 + $0x1d8] sm:$0xff] }
 0x202   : > { %v3117_v16 = vpack.c.bf16 %v3053_v56, %v3053_v56  ;;  %v2739_v17 = vmul.f32 %v3932_v4, %v2738_v45  ;;  %v1705_v28 = vmul.f32 1.442695, %v1616_v39  ;;  %v6066_v50 = vadd.f32 %v6011_v36, %v1453_v35 }
 0x203   : > { %v2260_v58 = vadd.f32 %v3930_v31, %v2259_v3  ;;  %3935 = vpow2.f32 %v1767_v47  ;;  %v1553_v37 = vand.u32 2147483647, %v6051_v48  ;;  %v1648_v19 = vsub.f32 0.0, %v1584_v55 }
 0x204   : > { %3182 = vst.msk [vmem:[%s4431_s20 + $0xd8] sm:$0xf] %vm6686_vm1, %v3117_v16  ;;  %v2740_v44 = vadd.f32 %v3932_v4, %v2739_v17  ;;  %3937 = vpow2.f32 %v1705_v28  ;;  %v1585_v53 = vand.u32 2147483647, %v6066_v50  ;;  %vm1838_vm2 = vcmp.ge.f32.partialorder %v5825_v32, 0.0 }
 0x205   : > { %v2264_v42 = vsel %vm2263_vm0, %v3930_v31, %v2260_v58  ;;  %v1617_v20 = vsub.f32 0.0, %v1553_v37  ;;  %v1769_v0 = vmul.f32 1.442695, %v1648_v19  ;;  %v6106_v33 = vadd.f32 %v6011_v36, %v1422_v62 }
 0x206   : > { %v6068_v22 = vpop.eup %3933  ;;  %v2269_v38 = vsel %vm6032_vm12, %v2268_v27, %v2264_v42  ;;  %v2744_v26 = vsel %vm2743_vm15, %v3932_v4, %v2740_v44  ;;  %v1649_v4 = vsub.f32 0.0, %v1585_v53  ;;  %v6124_v3 = vadd.f32 %v6011_v36, %v1454_v24 }
 0x207   : > { %v2894_v6 = vmul.f32 %v5984_v10, %v2269_v38  ;;  %v2749_v14 = vsel %vm2746_vm6, %v2748_v18, %v2744_v26  ;;  %v6074_v51 = vadd.f32 1.0, %v6068_v22  ;;  %v1707_v54 = vmul.f32 1.442695, %v1617_v20 }
 0x208   : > { %v2926_v1 = vmul.f32 %v5989_v23, %v2749_v14  ;;  %v1771_v11 = vmul.f32 1.442695, %v1649_v4  ;;  %vm1807_vm7 = vcmp.ge.f32.partialorder %v6014_v59, 0.0  ;;  %v1554_v18 = vand.u32 2147483647, %v6106_v33 }
 0x209   : > { %v2958_v7 = vsel %vm1806_vm5, %v2269_v38, %v2894_v6  ;;  %3939 = vrcp.f32 %v6074_v51  ;;  %v6081_v49 = vpop.eup %3935  ;;  %v2280_v9 = vand.u32 2147483647, %v6074_v51  ;;  %vm2276_vm3 = vweird.f32 %v6074_v51 }
 0x20a   : > { %v3022_v10 = vmul.f32 %v2958_v7, %v5815_v43  ;;  %v2990_v13 = vsel %vm1838_vm2, %v2749_v14, %v2926_v1  ;;  %3941 = vpow2.f32 %v1769_v0  ;;  %v6084_v31 = vpop.eup %3937  ;;  %v6088_v23 = vadd.f32 1.0, %v6081_v49  ;;  %v6094_v43 = vpop.f32.mrf.mxu1 }
 0x20b   : > { %v3054_v8 = vmul.f32 %v2990_v13, %v5825_v32  ;;  %3943 = vpow2.f32 %v1707_v54  ;;  %v6092_v25 = vadd.f32 1.0, %v6084_v31  ;;  %v2282_v32 = vand.u32 2147483648, %v6074_v51 }
 0x20c   : > { %v3086_v40 = vpack.c.bf16 %v3022_v10, %v3022_v10  ;;  %3945 = vrcp.f32 %v6088_v23  ;;  %v2762_v61 = vand.u32 2147483648, %v6088_v23  ;;  %vm6111_vm11 = vcmp.eq.f32.partialorder %v2280_v9, 8.507059e+37 }
 0x20d   : > { %v3118_v57 = vpack.c.bf16 %v3054_v8, %v3054_v8  ;;  %3947 = vrcp.f32 %v6092_v25  ;;  %v2760_v29 = vand.u32 2147483647, %v6088_v23  ;;  %v2295_v12 = vand.u32 2147483647, %v6092_v25 }
 0x20e   : > { %3151 = vst.msk [vmem:[%s4431_s20 + $0x5c] sm:$0xf] %vm6687_vm8, %v3086_v40  ;;  %v2297_v45 = vand.u32 2147483648, %v6092_v25  ;;  %3949 = vpow2.f32 %v1771_v11  ;;  %v2283_v16 = vor.u32 1.1754944e-38, %v2282_v32  ;;  %vm2756_vm9 = vweird.f32 %v6088_v23  ;;  %v6174_v11 = vpop.f32.mrf.mxu2 }
 0x20f   : > { %v3940_v46 = vpop.eup %3939  ;;  %3183 = vst.msk [vmem:[%s4431_s20 + $0xdc] sm:$0xf] %vm6688_vm10, %v3118_v57  ;;  %v2763_v35 = vor.u32 1.1754944e-38, %v2762_v61  ;;  %vm2291_vm4 = vweird.f32 %v6092_v25  ;;  %vm6135_vm13 = vcmp.eq.f32.partialorder %v2760_v29, 8.507059e+37  ;;  %vm6142_vm14 = vcmp.eq.f32.partialorder %v2295_v12, 8.507059e+37 }
 0x210   : > { %v6108_v15 = vpop.eup %3941  ;;  %v2272_v2 = vmul.f32 %v3940_v46, %v6074_v51  ;;  %vm2277_vm12 = vweird.f32 %v3940_v46  ;;  %v2298_v19 = vor.u32 1.1754944e-38, %v2297_v45  ;;  %v1586_v38 = vand.u32 2147483647, %v6124_v3 }
 0x211   : > { %v6117_v56 = vpop.eup %3943  ;;  %v6121_v63 = vadd.f32 1.0, %v6108_v15  ;;  %vm2278_vm0 = vmor %vm2276_vm3, %vm2277_vm12  ;;  %vm1839_vm15 = vcmp.ge.f32.partialorder %v6028_v30, 0.0  ;;  %vm1808_vm5 = vcmp.ge.f32.partialorder %v6037_v41, 0.0  ;;  %v1618_v8 = vsub.f32 0.0, %v1554_v18 }
 0x212   : > { %v2273_v39 = vsub.f32 1.0, %v2272_v2  ;;  %v6128_v17 = vadd.f32 1.0, %v6117_v56  ;;  %v3946_v47 = vpop.eup %3945  ;;  %v6148_v14 = vpop.f32.mrf.mxu1  ;;  %v1650_v61 = vsub.f32 0.0, %v1586_v38 }
 0x213   : > { %3951 = vrcp.f32 %v6121_v63  ;;  %v2777_v58 = vand.u32 2147483648, %v6121_v63  ;;  %v3948_v27 = vpop.eup %3947  ;;  %v2752_v55 = vmul.f32 %v3946_v47, %v6088_v23  ;;  %vm2757_vm1 = vweird.f32 %v3946_v47 }
 0x214   : > { %v2274_v28 = vmul.f32 %v3940_v46, %v2273_v39  ;;  %3953 = vrcp.f32 %v6128_v17  ;;  %v2287_v37 = vmul.f32 %v3948_v27, %v6092_v25  ;;  %v2775_v6 = vand.u32 2147483647, %v6121_v63  ;;  %v6150_v0 = vpop.eup %3949  ;;  %vm2758_vm3 = vmor %vm2756_vm9, %vm2757_vm1 }
 0x215   : > { %v2753_v20 = vsub.f32 1.0, %v2752_v55  ;;  %vm2292_vm6 = vweird.f32 %v3948_v27  ;;  %v6156_v54 = vor.u32 1.1754944e-38, %v2777_v58  ;;  %v2310_v53 = vand.u32 2147483647, %v6128_v17 }
 0x216   : > { %v2275_v26 = vadd.f32 %v3940_v46, %v2274_v28  ;;  %v2288_v1 = vsub.f32 1.0, %v2287_v37  ;;  %vm2771_vm2 = vweird.f32 %v6121_v63  ;;  %v6162_v13 = vadd.f32 1.0, %v6150_v0  ;;  %vm2293_vm12 = vmor %vm2291_vm4, %vm2292_vm6 }
 0x217   : > { %v2754_v10 = vmul.f32 %v3946_v47, %v2753_v20  ;;  %vm2306_vm8 = vweird.f32 %v6128_v17  ;;  %v2312_v4 = vand.u32 2147483648, %v6128_v17  ;;  %vm6170_vm10 = vcmp.eq.f32.partialorder %v2775_v6, 8.507059e+37 }
 0x218   : > { %v2279_v7 = vsel %vm2278_vm0, %v3940_v46, %v2275_v26  ;;  %v2289_v9 = vmul.f32 %v3948_v27, %v2288_v1  ;;  %3955 = vrcp.f32 %v6162_v13  ;;  %v1709_v39 = vmul.f32 1.442695, %v1618_v8 }
 0x219   : > { %v3952_v51 = vpop.eup %3951  ;;  %v2284_v40 = vsel %vm6111_vm11, %v2283_v16, %v2279_v7  ;;  %v2755_v32 = vadd.f32 %v3946_v47, %v2754_v10  ;;  %vm6180_vm11 = vcmp.eq.f32.partialorder %v2310_v53, 8.507059e+37  ;;  %v1253_v16 = vpop.f32.mrf.mxu3  ;;  %vm1840_vm9 = vcmp.ge.f32.partialorder %v6048_v34, 0.0  ;;  %v1423_v10 = vld [vmem:[#allocation2 + $0xe0] sm:$0xff] }
 0x21a   : > { %v3954_v62 = vpop.eup %3953  ;;  %v2895_v57 = vmul.f32 %v6068_v22, %v2284_v40  ;;  %v2767_v24 = vmul.f32 %v3952_v51, %v6121_v63  ;;  %v2290_v2 = vadd.f32 %v3948_v27, %v2289_v9  ;;  %v1006_v22 = vpop.f32.mrf.mxu0  ;;  %vm1809_vm4 = vcmp.ge.f32.partialorder %v6051_v48, 0.0 }
 0x21b   : > { %v2302_v60 = vmul.f32 %v3954_v62, %v6128_v17  ;;  %v2759_v45 = vsel %vm2758_vm3, %v3946_v47, %v2755_v32  ;;  %vm2307_vm1 = vweird.f32 %v3954_v62  ;;  %v2313_v44 = vor.u32 1.1754944e-38, %v2312_v4  ;;  %v1183_v20 = vpop.f32.mrf.mxu1 }
 0x21c   : > { %v2959_v12 = vsel %vm1807_vm7, %v2284_v40, %v2895_v57  ;;  %v2768_v23 = vsub.f32 1.0, %v2767_v24  ;;  %v2764_v28 = vsel %vm6135_vm13, %v2763_v35, %v2759_v45  ;;  %v2294_v55 = vsel %vm2293_vm12, %v3948_v27, %v2290_v2  ;;  %vm2308_vm0 = vmor %vm2306_vm8, %vm2307_vm1  ;;  %v1086_v57 = vpop.f32.mrf.mxu2 }
 0x21d   : > { %v3023_v58 = vmul.f32 %v2959_v12, %v6014_v59  ;;  %v2303_v18 = vsub.f32 1.0, %v2302_v60  ;;  %v2927_v37 = vmul.f32 %v6081_v49, %v2764_v28  ;;  %v2299_v47 = vsel %vm6142_vm14, %v2298_v19, %v2294_v55 }
 0x21e   : > { %v2769_v25 = vmul.f32 %v3952_v51, %v2768_v23  ;;  %vm2772_vm7 = vweird.f32 %v3952_v51  ;;  %v2896_v59 = vmul.f32 %v6084_v31, %v2299_v47  ;;  %3957 = vpow2.f32 %v1709_v39  ;;  %v3956_v49 = vpop.eup %3955 }
 0x21f   : > { %v3087_v38 = vpack.c.bf16 %v3023_v58, %v3023_v58  ;;  %v2304_v26 = vmul.f32 %v3954_v62, %v2303_v18  ;;  %v2991_v35 = vsel %vm1839_vm15, %v2764_v28, %v2927_v37  ;;  %vm6699_vm13 = vcmask 257024   ;;  %vm2773_vm14 = vmor %vm2771_vm2, %vm2772_vm7 }
 0x220   : > { %v2770_v27 = vadd.f32 %v3952_v51, %v2769_v25  ;;  %v3055_v42 = vmul.f32 %v2991_v35, %v6028_v30  ;;  %v2960_v19 = vsel %vm1808_vm5, %v2299_v47, %v2896_v59  ;;  %v2790_v6 = vand.u32 2147483647, %v6162_v13  ;;  %vm6700_vm15 = vmmov %vm6699_vm13  ;;  %v398_v35 = vld [vmem:[#allocation2 + $0x1e8] sm:$0xff] }
 0x221   : > { %3152 = vst.msk [vmem:[%s4431_s20 + $0x60] sm:$0xf] %vm6699_vm13, %v3087_v38  ;;  %v2305_v31 = vadd.f32 %v3954_v62, %v2304_v26  ;;  %v3024_v1 = vmul.f32 %v2960_v19, %v6037_v41  ;;  %v2782_v30 = vmul.f32 %v3956_v49, %v6162_v13  ;;  %v2792_v7 = vand.u32 2147483648, %v6162_v13  ;;  %vm6701_vm5 = vmmov %vm6699_vm13  ;;  %v1255_v60 = vpop.f32.mrf.mxu3 }
 0x222   : > { %v2774_v53 = vsel %vm2773_vm14, %v3952_v51, %v2770_v27  ;;  %v3119_v8 = vpack.c.bf16 %v3055_v42, %v3055_v42  ;;  %v1773_v9 = vmul.f32 1.442695, %v1650_v61  ;;  %vm2787_vm6 = vweird.f32 %v3956_v49  ;;  %vm6709_vm14 = vmmov %vm6701_vm5 }
 0x223   : > { %v2779_v63 = vsel %vm6170_vm10, %v6156_v54, %v2774_v53  ;;  %v2309_v40 = vsel %vm2308_vm0, %v3954_v62, %v2305_v31  ;;  %v3088_v4 = vpack.c.bf16 %v3024_v1, %v3024_v1  ;;  %v2783_v51 = vsub.f32 1.0, %v2782_v30  ;;  %v397_v54 = vld [vmem:[#allocation2 + $0x1e0] sm:$0xff]  ;;  %v1009_v62 = vpop.f32.mrf.mxu0  ;;  %v1185_v18 = vpop.f32.mrf.mxu1 }
 0x224   : > { %v2928_v41 = vmul.f32 %v6108_v15, %v2779_v63  ;;  %v2314_v17 = vsel %vm6180_vm11, %v2313_v44, %v2309_v40  ;;  %3184 = vst.msk [vmem:[%s4431_s20 + $0xe0] sm:$0xf] %vm6700_vm15, %v3119_v8  ;;  %3959 = vpow2.f32 %v1773_v9  ;;  %v6226_v24 = vadd.f32 %v6011_v36, %v1423_v10  ;;  %v6228_v46 = vpop.eup %3957  ;;  %vm6703_vm11 = vmmov %vm6701_vm5  ;;  %v399_v10 = vld [vmem:[#allocation2 + $0x1f0] sm:$0xff] }
 0x225   : > { %v2897_v32 = vmul.f32 %v6117_v56, %v2314_v17  ;;  %3153 = vst.msk [vmem:[%s4431_s20 + $0x64] sm:$0xf] %vm6701_vm5, %v3088_v4  ;;  %v2784_v61 = vmul.f32 %v3956_v49, %v2783_v51  ;;  %v1254_v2 = vadd.f32 %v1253_v16, %v6174_v11  ;;  %v1176_v56 = vadd.f32 %v6053_v52, %v1006_v22  ;;  %v366_v16 = vld [vmem:[#allocation2 + $0xe8] sm:$0xff] }
 0x226   : > { %v2992_v15 = vsel %vm1840_vm9, %v2779_v63, %v2928_v41  ;;  %v6240_v45 = vadd.f32 1.0, %v6228_v46  ;;  %v1555_v23 = vand.u32 2147483647, %v6226_v24  ;;  %vm2786_vm2 = vweird.f32 %v6162_v13  ;;  %vm6704_vm9 = vmmov %vm6701_vm5 }
 0x227   : > { %v3056_v29 = vmul.f32 %v2992_v15, %v6048_v34  ;;  %v2961_v12 = vsel %vm1809_vm4, %v2314_v17, %v2897_v32  ;;  %v2785_v58 = vadd.f32 %v3956_v49, %v2784_v61  ;;  %v1323_v11 = vadd.f32 %v1254_v2, %v397_v54  ;;  %vm2788_vm8 = vmor %vm2786_vm2, %vm2787_vm6 }
 0x228   : > { %v3025_v39 = vmul.f32 %v2961_v12, %v6051_v48  ;;  %v2793_v34 = vor.u32 1.1754944e-38, %v2792_v7  ;;  %3961 = vrcp.f32 %v6240_v45  ;;  %vm2791_vm10 = vcmp.eq.f32.partialorder %v2790_v6, 8.507059e+37  ;;  %v369_v48 = vld [vmem:[#allocation2 + $0x100] sm:$0xff] }
 0x229   : > { %v3120_v28 = vpack.c.bf16 %v3056_v29, %v3056_v29  ;;  %v2789_v22 = vsel %vm2788_vm8, %v3956_v49, %v2785_v58  ;;  %v1619_v55 = vsub.f32 0.0, %v1555_v23  ;;  %vm6702_vm3 = vcmask 261120   ;;  %v367_v49 = vld [vmem:[#allocation2 + $0xf0] sm:$0xff]  ;;  %v1258_v7 = vpop.f32.mrf.mxu3 }
 0x22a   : > { %v3089_v52 = vpack.c.bf16 %v3025_v39, %v3025_v39  ;;  %1388 = vst.msk [vmem:[#allocation2 + $0x1e0] sm:$0xff] %vm6702_vm3, %v1323_v11  ;;  %v6248_v37 = vpop.eup %3959  ;;  %vm1841_vm12 = vcmp.ge.f32.partialorder %v6066_v50, 0.0  ;;  %v2794_v13 = vsel %vm2791_vm10, %v2793_v34, %v2789_v22  ;;  %v1292_v47 = vadd.f32 %v1176_v56, %v366_v16  ;;  %vm6705_vm7 = vmmov %vm6702_vm3 }
 0x22b   : > { %3185 = vst.msk [vmem:[%s4431_s20 + $0xe4] sm:$0xf] %vm6703_vm11, %v3120_v28  ;;  %v1184_v25 = vadd.f32 %v1183_v20, %v4286_v5  ;;  %v2929_v38 = vmul.f32 %v6150_v0, %v2794_v13  ;;  %v6258_v59 = vadd.f32 1.0, %v6248_v37  ;;  %v1711_v26 = vmul.f32 1.442695, %v1619_v55  ;;  %v370_v5 = vld [vmem:[#allocation2 + $0x108] sm:$0xff]  ;;  %v1089_v20 = vpop.f32.mrf.mxu2  ;;  %vm6706_vm4 = vmmov %vm6702_vm3  ;;  %v1011_v53 = vpop.f32.mrf.mxu0 }
 0x22c   : > { %3154 = vst.msk [vmem:[%s4431_s20 + $0x68] sm:$0xf] %vm6704_vm9, %v3089_v52  ;;  %v1256_v44 = vadd.f32 %v1255_v60, %v1086_v57  ;;  %v1179_v42 = vadd.f32 %v6094_v43, %v1009_v62  ;;  %v1186_v19 = vadd.f32 %v1185_v18, %v4322_v21  ;;  %v2327_v8 = vand.u32 2147483648, %v6240_v45  ;;  %vm6707_vm1 = vmmov %vm6702_vm3 }
 0x22d   : > { %1357 = vst.msk [vmem:[#allocation2 + $0xe8] sm:$0xff] %vm6705_vm7, %v1292_v47  ;;  %v1295_v27 = vadd.f32 %v1184_v25, %v369_v48  ;;  %v2993_v31 = vsel %vm1841_vm12, %v2794_v13, %v2929_v38  ;;  %3963 = vrcp.f32 %v6258_v59  ;;  %v1259_v9 = vadd.f32 %v1258_v7, %v1089_v20  ;;  %vm6708_vm13 = vmmov %vm6707_vm1 }
 0x22e   : > { %v3962_v0 = vpop.eup %3961  ;;  %v3057_v6 = vmul.f32 %v2993_v31, %v6066_v50  ;;  %3965 = vpow2.f32 %v1711_v26  ;;  %v1324_v1 = vadd.f32 %v1256_v44, %v398_v35  ;;  %v1293_v43 = vadd.f32 %v1179_v42, %v367_v49  ;;  %v368_v50 = vld [vmem:[#allocation2 + $0xf8] sm:$0xff]  ;;  %vm6710_vm15 = vmmov %vm6707_vm1 }
 0x22f   : > { %1360 = vst.msk [vmem:[#allocation2 + $0x100] sm:$0xff] %vm6706_vm4, %v1295_v27  ;;  %v2317_v30 = vmul.f32 %v3962_v0, %v6240_v45  ;;  %v1296_v40 = vadd.f32 %v1186_v19, %v370_v5  ;;  %v1181_v17 = vadd.f32 %v6148_v14, %v1011_v53  ;;  %v2325_v51 = vand.u32 2147483647, %v6240_v45  ;;  %vm6711_vm5 = vmmov %vm6707_vm1 }
 0x230   : > { %v3121_v21 = vpack.c.bf16 %v3057_v6, %v3057_v6  ;;  %1389 = vst.msk [vmem:[#allocation2 + $0x1e8] sm:$0xff] %vm6707_vm1, %v1324_v1  ;;  %v1325_v57 = vadd.f32 %v1259_v9, %v399_v10  ;;  %vm2322_vm0 = vweird.f32 %v3962_v0  ;;  %vm2321_vm6 = vweird.f32 %v6240_v45  ;;  %vm6712_vm2 = vmmov %vm6707_vm1 }
 0x231   : > { %v1455_v63 = vld [vmem:[#allocation2 + $0x1e0] sm:$0xff]  ;;  %v2318_v4 = vsub.f32 1.0, %v2317_v30  ;;  %1358 = vst.msk [vmem:[#allocation2 + $0xf0] sm:$0xff] %vm6708_vm13, %v1293_v43  ;;  %v1294_v61 = vadd.f32 %v1181_v17, %v368_v50  ;;  %v2328_v60 = vor.u32 1.1754944e-38, %v2327_v8  ;;  %v2805_v12 = vand.u32 2147483647, %v6258_v59  ;;  %vm2323_vm8 = vmor %vm2321_vm6, %vm2322_vm0 }
 0x232   : > { %v6270_v41 = vadd.f32 %v6011_v36, %v1455_v63  ;;  %3186 = vst.msk [vmem:[%s4431_s20 + $0xe8] sm:$0xf] %vm6709_vm14, %v3121_v21  ;;  %v2807_v11 = vand.u32 2147483648, %v6258_v59  ;;  %vm1810_vm10 = vcmp.ge.f32.partialorder %v6106_v33, 0.0  ;;  %vm2326_vm3 = vcmp.eq.f32.partialorder %v2325_v51, 8.507059e+37  ;;  %vm6713_vm1 = vmmov %vm6709_vm14 }
 0x233   : > { %v3964_v32 = vpop.eup %3963  ;;  %v2319_v54 = vmul.f32 %v3962_v0, %v2318_v4  ;;  %1361 = vst.msk [vmem:[#allocation2 + $0x108] sm:$0xff] %vm6710_vm15, %v1296_v40  ;;  %vm2801_vm12 = vweird.f32 %v6258_v59  ;;  %vm2806_vm9 = vcmp.eq.f32.partialorder %v2805_v12, 8.507059e+37  ;;  %vm1842_vm4 = vcmp.ge.f32.partialorder %v6124_v3, 0.0  ;;  %vm6714_vm0 = vmmov %vm6713_vm1 }
 0x234   : > { %v1587_v62 = vand.u32 2147483647, %v6270_v41  ;;  %v1424_v15 = vld [vmem:[#allocation2 + $0xe8] sm:$0xff]  ;;  %v6279_v2 = vpop.eup %3965  ;;  %v2797_v14 = vmul.f32 %v3964_v32, %v6258_v59  ;;  %1390 = vst.msk [vmem:[#allocation2 + $0x1f0] sm:$0xff] %vm6711_vm5, %v1325_v57  ;;  %vm2802_vm11 = vweird.f32 %v3964_v32  ;;  %v2808_v26 = vor.u32 1.1754944e-38, %v2807_v11 }
 0x235   : > { %v6284_v56 = vadd.f32 %v6011_v36, %v1424_v15  ;;  %v2320_v29 = vadd.f32 %v3962_v0, %v2319_v54  ;;  %v6289_v23 = vadd.f32 1.0, %v6279_v2  ;;  %1359 = vst.msk [vmem:[#allocation2 + $0xf8] sm:$0xff] %vm6712_vm2, %v1294_v61  ;;  %vm2803_vm7 = vmor %vm2801_vm12, %vm2802_vm11  ;;  %vm1811_vm5 = vcmp.ge.f32.partialorder %v6226_v24, 0.0 }
 0x236   : > { %v1651_v39 = vsub.f32 0.0, %v1587_v62  ;;  %v1427_v58 = vld [vmem:[#allocation2 + $0x100] sm:$0xff]  ;;  %v2798_v45 = vsub.f32 1.0, %v2797_v14 }
 0x237   : > { %v1556_v16 = vand.u32 2147483647, %v6284_v56  ;;  %v6296_v28 = vadd.f32 %v6011_v36, %v1427_v58  ;;  %v2324_v34 = vsel %vm2323_vm8, %v3962_v0, %v2320_v29  ;;  %3967 = vrcp.f32 %v6289_v23  ;;  %v1456_v48 = vld [vmem:[#allocation2 + $0x1e8] sm:$0xff] }
 0x238   : > { %v2329_v52 = vsel %vm2326_vm3, %v2328_v60, %v2324_v34  ;;  %v2799_v22 = vmul.f32 %v3964_v32, %v2798_v45  ;;  %v1775_v55 = vmul.f32 1.442695, %v1651_v39  ;;  %v1425_v25 = vld [vmem:[#allocation2 + $0xf0] sm:$0xff]  ;;  %v6306_v42 = vadd.f32 %v6011_v36, %v1456_v48 }
 0x239   : > { %v2898_v18 = vmul.f32 %v6228_v46, %v2329_v52  ;;  %v1620_v13 = vsub.f32 0.0, %v1556_v16  ;;  %v1559_v47 = vand.u32 2147483647, %v6296_v28  ;;  %v6310_v19 = vadd.f32 %v6011_v36, %v1425_v25 }
 0x23a   : > { %v2800_v38 = vadd.f32 %v3964_v32, %v2799_v22  ;;  %3969 = vpow2.f32 %v1775_v55  ;;  %v1428_v35 = vld [vmem:[#allocation2 + $0x108] sm:$0xff]  ;;  %v1588_v6 = vand.u32 2147483647, %v6306_v42  ;;  %v2342_v8 = vand.u32 2147483648, %v6289_v23 }
 0x23b   : > { %v2962_v27 = vsel %vm1810_vm10, %v2329_v52, %v2898_v18  ;;  %v1713_v44 = vmul.f32 1.442695, %v1620_v13  ;;  %v1623_v49 = vsub.f32 0.0, %v1559_v47  ;;  %v6313_v31 = vadd.f32 %v6011_v36, %v1428_v35  ;;  %v1457_v29 = vld [vmem:[#allocation2 + $0x1f0] sm:$0xff] }
 0x23c   : > { %v3026_v46 = vmul.f32 %v2962_v27, %v6106_v33  ;;  %v2804_v59 = vsel %vm2803_vm7, %v3964_v32, %v2800_v38  ;;  %v1652_v33 = vsub.f32 0.0, %v1588_v6  ;;  %v1557_v7 = vand.u32 2147483647, %v6310_v19  ;;  %v1426_v39 = vld [vmem:[#allocation2 + $0xf8] sm:$0xff] }
 0x23d   : > { %v3968_v5 = vpop.eup %3967  ;;  %v2809_v20 = vsel %vm2806_vm9, %v2808_v26, %v2804_v59  ;;  %3971 = vpow2.f32 %v1713_v44  ;;  %v1719_v0 = vmul.f32 1.442695, %v1623_v49  ;;  %v1560_v63 = vand.u32 2147483647, %v6313_v31  ;;  %vm6719_vm9 = vmmov %vm6714_vm0 }
 0x23e   : > { %v3090_v1 = vpack.c.bf16 %v3026_v46, %v3026_v46  ;;  %v2930_v53 = vmul.f32 %v6248_v37, %v2809_v20  ;;  %v2332_v30 = vmul.f32 %v3968_v5, %v6289_v23  ;;  %v1777_v9 = vmul.f32 1.442695, %v1652_v33  ;;  %v1260_v33 = vpop.f32.mrf.mxu3 }
 0x23f   : > { %3973 = vpow2.f32 %v1719_v0  ;;  %v1621_v50 = vsub.f32 0.0, %v1557_v7  ;;  %vm2337_vm13 = vweird.f32 %v3968_v5  ;;  %v2340_v17 = vand.u32 2147483647, %v6289_v23 }
 0x240   : > { %v6320_v43 = vpop.eup %3969  ;;  %3155 = vst.msk [vmem:[%s4431_s20 + $0x6c] sm:$0xf] %vm6713_vm1, %v3090_v1  ;;  %v2994_v10 = vsel %vm1842_vm4, %v2809_v20, %v2930_v53  ;;  %v2333_v21 = vsub.f32 1.0, %v2332_v30  ;;  %vm2336_vm14 = vweird.f32 %v6289_v23  ;;  %v1624_v54 = vsub.f32 0.0, %v1560_v63 }
 0x241   : > { %v3058_v37 = vmul.f32 %v2994_v10, %v6124_v3  ;;  %v6328_v40 = vadd.f32 1.0, %v6320_v43  ;;  %vm2338_vm15 = vmor %vm2336_vm14, %vm2337_vm13  ;;  %v2343_v15 = vor.u32 1.1754944e-38, %v2342_v8  ;;  %v1715_v61 = vmul.f32 1.442695, %v1621_v50 }
 0x242   : > { %v2334_v4 = vmul.f32 %v3968_v5, %v2333_v21  ;;  %vm2341_vm6 = vcmp.eq.f32.partialorder %v2340_v17, 8.507059e+37  ;;  %v1721_v11 = vmul.f32 1.442695, %v1624_v54  ;;  %v6354_v52 = vadd.f32 %v6011_v36, %v1457_v29 }
 0x243   : > { %v6331_v51 = vpop.eup %3971  ;;  %v3122_v57 = vpack.c.bf16 %v3058_v37, %v3058_v37  ;;  %3975 = vrcp.f32 %v6328_v40  ;;  %v2820_v14 = vand.u32 2147483647, %v6328_v40  ;;  %v2822_v45 = vand.u32 2147483648, %v6328_v40 }
 0x244   : > { %v2335_v32 = vadd.f32 %v3968_v5, %v2334_v4  ;;  %v6336_v3 = vadd.f32 1.0, %v6331_v51  ;;  %3977 = vpow2.f32 %v1777_v9  ;;  %vm2816_vm2 = vweird.f32 %v6328_v40 }
 0x245   : > { %v6338_v62 = vpop.eup %3973  ;;  %3187 = vst.msk [vmem:[%s4431_s20 + $0xec] sm:$0xf] %vm6714_vm0, %v3122_v57  ;;  %vm6359_vm8 = vcmp.eq.f32.partialorder %v2820_v14, 8.507059e+37  ;;  %v6364_v18 = vadd.f32 %v6011_v36, %v1426_v39  ;;  %v2823_v35 = vor.u32 1.1754944e-38, %v2822_v45  ;;  %vm1843_vm3 = vcmp.ge.f32.partialorder %v6270_v41, 0.0 }
 0x246   : > { %v2339_v60 = vsel %vm2338_vm15, %v3968_v5, %v2335_v32  ;;  %3979 = vrcp.f32 %v6336_v3  ;;  %v6346_v23 = vadd.f32 1.0, %v6338_v62  ;;  %v2355_v34 = vand.u32 2147483647, %v6336_v3 }
 0x247   : > { %v2344_v12 = vsel %vm2341_vm6, %v2343_v15, %v2339_v60  ;;  %3981 = vpow2.f32 %v1715_v61  ;;  %v2357_v47 = vand.u32 2147483648, %v6336_v3  ;;  %vm2351_vm10 = vweird.f32 %v6336_v3 }
 0x248   : > { %v2899_v58 = vmul.f32 %v6279_v2, %v2344_v12  ;;  %3983 = vrcp.f32 %v6346_v23  ;;  %v2400_v27 = vand.u32 2147483647, %v6346_v23  ;;  %vm6375_vm11 = vcmp.eq.f32.partialorder %v2355_v34, 8.507059e+37 }
 0x249   : > { %v3976_v16 = vpop.eup %3975  ;;  %3985 = vpow2.f32 %v1721_v11  ;;  %v1589_v49 = vand.u32 2147483647, %v6354_v52  ;;  %v2402_v5 = vand.u32 2147483648, %v6346_v23  ;;  %v2358_v6 = vor.u32 1.1754944e-38, %v2357_v47 }
 0x24a   : > { %v6356_v22 = vpop.eup %3977  ;;  %v2963_v55 = vsel %vm1811_vm5, %v2344_v12, %v2899_v58  ;;  %v2812_v48 = vmul.f32 %v3976_v16, %v6328_v40  ;;  %vm2817_vm12 = vweird.f32 %v3976_v16  ;;  %vm2396_vm7 = vweird.f32 %v6346_v23 }
 0x24b   : > { %v3027_v13 = vmul.f32 %v2963_v55, %v6226_v24  ;;  %v6369_v25 = vadd.f32 1.0, %v6356_v22  ;;  %vm1812_vm4 = vcmp.ge.f32.partialorder %v6284_v56, 0.0  ;;  %vm6392_vm13 = vcmp.eq.f32.partialorder %v2400_v27, 8.507059e+37  ;;  %vm2818_vm14 = vmor %vm2816_vm2, %vm2817_vm12 }
 0x24c   : > { %v3980_v38 = vpop.eup %3979  ;;  %v2813_v26 = vsub.f32 1.0, %v2812_v48  ;;  %v1558_v7 = vand.u32 2147483647, %v6364_v18  ;;  %v2403_v50 = vor.u32 1.1754944e-38, %v2402_v5  ;;  %v1653_v4 = vsub.f32 0.0, %v1589_v49 }
 0x24d   : > { %v3091_v44 = vpack.c.bf16 %v3027_v13, %v3027_v13  ;;  %v2347_v36 = vmul.f32 %v3980_v38, %v6336_v3  ;;  %v6380_v46 = vpop.eup %3981  ;;  %3987 = vrcp.f32 %v6369_v25  ;;  %vm2352_vm1 = vweird.f32 %v3980_v38 }
 0x24e   : > { %v2814_v59 = vmul.f32 %v3976_v16, %v2813_v26  ;;  %v3984_v20 = vpop.eup %3983  ;;  %v6388_v1 = vadd.f32 1.0, %v6380_v46  ;;  %v2835_v8 = vand.u32 2147483647, %v6369_v25  ;;  %v2837_v63 = vand.u32 2147483648, %v6369_v25  ;;  %vm2353_vm6 = vmor %vm2351_vm10, %vm2352_vm1 }
 0x24f   : > { %3156 = vst.msk [vmem:[%s4431_s20 + $0x70] sm:$0xf] %vm6719_vm9, %v3091_v44  ;;  %v2348_v0 = vsub.f32 1.0, %v2347_v36  ;;  %v2392_v30 = vmul.f32 %v3984_v20, %v6346_v23  ;;  %v6397_v10 = vpop.eup %3985  ;;  %vm1815_vm0 = vcmp.ge.f32.partialorder %v6296_v28, 0.0  ;;  %vm2831_vm15 = vweird.f32 %v6369_v25 }
 0x250   : > { %v2815_v53 = vadd.f32 %v3976_v16, %v2814_v59  ;;  %3989 = vrcp.f32 %v6388_v1  ;;  %v6410_v40 = vadd.f32 1.0, %v6397_v10  ;;  %vm2397_vm5 = vweird.f32 %v3984_v20  ;;  %v1091_v59 = vpop.f32.mrf.mxu2 }
 0x251   : > { %v2349_v21 = vmul.f32 %v3980_v38, %v2348_v0  ;;  %v2393_v9 = vsub.f32 1.0, %v2392_v30  ;;  %v1622_v61 = vsub.f32 0.0, %v1558_v7  ;;  %vm6417_vm2 = vcmp.eq.f32.partialorder %v2835_v8, 8.507059e+37  ;;  %vm2398_vm10 = vmor %vm2396_vm7, %vm2397_vm5  ;;  %v400_v7 = vld [vmem:[#allocation2 + $0x1f8] sm:$0xff] }
 0x252   : > { %v2819_v37 = vsel %vm2818_vm14, %v3976_v16, %v2815_v53  ;;  %v2838_v12 = vor.u32 1.1754944e-38, %v2837_v63  ;;  %3991 = vrcp.f32 %v6410_v40  ;;  %v1779_v34 = vmul.f32 1.442695, %v1653_v4 }
 0x253   : > { %v2824_v17 = vsel %vm6359_vm8, %v2823_v35, %v2819_v37  ;;  %v2350_v57 = vadd.f32 %v3980_v38, %v2349_v21  ;;  %v3988_v32 = vpop.eup %3987  ;;  %v2394_v15 = vmul.f32 %v3984_v20, %v2393_v9  ;;  %vm2366_vm8 = vweird.f32 %v6388_v1 }
 0x254   : > { %v2931_v54 = vmul.f32 %v6320_v43, %v2824_v17  ;;  %v2827_v14 = vmul.f32 %v3988_v32, %v6369_v25  ;;  %vm2832_vm12 = vweird.f32 %v3988_v32  ;;  %v2372_v2 = vand.u32 2147483648, %v6388_v1 }
 0x255   : > { %v2354_v60 = vsel %vm2353_vm6, %v3980_v38, %v2350_v57  ;;  %v2395_v39 = vadd.f32 %v3984_v20, %v2394_v15  ;;  %v2370_v35 = vand.u32 2147483647, %v6388_v1  ;;  %3993 = vpow2.f32 %v1779_v34  ;;  %vm2833_vm7 = vmor %vm2831_vm15, %vm2832_vm12 }
 0x256   : > { %v2995_v43 = vsel %vm1843_vm3, %v2824_v17, %v2931_v54  ;;  %v2359_v3 = vsel %vm6375_vm11, %v2358_v6, %v2354_v60  ;;  %v3990_v58 = vpop.eup %3989  ;;  %v2828_v16 = vsub.f32 1.0, %v2827_v14  ;;  %vm1844_vm3 = vcmp.ge.f32.partialorder %v6306_v42, 0.0  ;;  %vm6724_vm11 = vmmov %vm6719_vm9 }
 0x257   : > { %v3059_v45 = vmul.f32 %v2995_v43, %v6270_v41  ;;  %v2900_v11 = vmul.f32 %v6331_v51, %v2359_v3  ;;  %v2399_v55 = vsel %vm2398_vm10, %v3984_v20, %v2395_v39  ;;  %v2362_v48 = vmul.f32 %v3990_v58, %v6388_v1 }
 0x258   : > { %v2404_v51 = vsel %vm6392_vm13, %v2403_v50, %v2399_v55  ;;  %v2829_v23 = vmul.f32 %v3988_v32, %v2828_v16  ;;  %v3992_v27 = vpop.eup %3991  ;;  %vm2367_vm9 = vweird.f32 %v3990_v58  ;;  %v1717_v36 = vmul.f32 1.442695, %v1622_v61  ;;  %v4008_v16 = vld [vmem:[%s6512_s2] ss:$0 sm:$0xff] }
 0x259   : > { %v3123_v13 = vpack.c.bf16 %v3059_v45, %v3059_v45  ;;  %v2964_v41 = vsel %vm1812_vm4, %v2359_v3, %v2900_v11  ;;  %v2903_v38 = vmul.f32 %v6338_v62, %v2404_v51  ;;  %v2363_v26 = vsub.f32 1.0, %v2362_v48  ;;  %vm6725_vm4 = vmmov %vm6724_vm11 }
 0x25a   : > { %v3028_v47 = vmul.f32 %v2964_v41, %v6284_v56  ;;  %v2830_v44 = vadd.f32 %v3988_v32, %v2829_v23  ;;  %v2407_v62 = vmul.f32 %v3992_v27, %v6410_v40  ;;  %v2373_v0 = vor.u32 1.1754944e-38, %v2372_v2  ;;  %vm2368_vm1 = vmor %vm2366_vm8, %vm2367_vm9 }
 0x25b   : > { %3188 = vst.msk [vmem:[%s4431_s20 + $0xf0] sm:$0xf] %vm6724_vm11, %v3123_v13  ;;  %v2967_v49 = vsel %vm1815_vm0, %v2404_v51, %v2903_v38  ;;  %v2364_v56 = vmul.f32 %v3990_v58, %v2363_v26  ;;  %3995 = vpow2.f32 %v1717_v36  ;;  %v2415_v25 = vand.u32 2147483647, %v6410_v40  ;;  %v3994_v50 = vpop.eup %3993  ;;  %vm6726_vm0 = vmmov %vm6725_vm4 }
 0x25c   : > { %v3092_v24 = vpack.c.bf16 %v3028_v47, %v3028_v47  ;;  %v3031_v5 = vmul.f32 %v2967_v49, %v6296_v28  ;;  %v2834_v20 = vsel %vm2833_vm7, %v3988_v32, %v2830_v44  ;;  %v2408_v30 = vsub.f32 1.0, %v2407_v62  ;;  %vm6728_vm10 = vmmov %vm6726_vm0 }
 0x25d   : > { %v2839_v6 = vsel %vm6417_vm2, %v2838_v12, %v2834_v20  ;;  %v2365_v53 = vadd.f32 %v3990_v58, %v2364_v56  ;;  %v2417_v28 = vand.u32 2147483648, %v6410_v40  ;;  %v1261_v63 = vadd.f32 %v1260_v33, %v1091_v59  ;;  %vm6729_vm12 = vmmov %vm6726_vm0 }
 0x25e   : > { %3157 = vst.msk [vmem:[%s4431_s20 + $0x74] sm:$0xf] %vm6725_vm4, %v3092_v24  ;;  %v3095_v21 = vpack.c.bf16 %v3031_v5, %v3031_v5  ;;  %v2932_v8 = vmul.f32 %v6356_v22, %v2839_v6  ;;  %vm2371_vm13 = vcmp.eq.f32.partialorder %v2370_v35, 8.507059e+37  ;;  %v2409_v9 = vmul.f32 %v3992_v27, %v2408_v30  ;;  %vm6730_vm11 = vmmov %vm6726_vm0 }
 0x25f   : > { %v2369_v37 = vsel %vm2368_vm1, %v3990_v58, %v2365_v53  ;;  %vm2412_vm14 = vweird.f32 %v3992_v27  ;;  %vm2411_vm15 = vweird.f32 %v6410_v40  ;;  %v1326_v22 = vadd.f32 %v1261_v63, %v400_v7 }
 0x260   : > { %3160 = vst.msk [vmem:[%s4431_s20 + $0x80] sm:$0xf] %vm6726_vm0, %v3095_v21  ;;  %v2996_v4 = vsel %vm1844_vm3, %v2839_v6, %v2932_v8  ;;  %v2374_v17 = vsel %vm2371_vm13, %v2373_v0, %v2369_v37  ;;  %v2410_v32 = vadd.f32 %v3992_v27, %v2409_v9  ;;  %v1909_v54 = vadd.f32 1.0, %v3994_v50  ;;  %vm2413_vm5 = vmor %vm2411_vm15, %vm2412_vm14 }
 0x261   : > { %v3060_v1 = vmul.f32 %v2996_v4, %v6306_v42  ;;  %v2901_v57 = vmul.f32 %v6380_v46, %v2374_v17  ;;  %v6467_v15 = vpop.eup %3995  ;;  %vm1813_vm6 = vcmp.ge.f32.partialorder %v6310_v19, 0.0  ;;  %vm2416_vm2 = vcmp.eq.f32.partialorder %v2415_v25, 8.507059e+37 }
 0x262   : > { %v2418_v61 = vor.u32 1.1754944e-38, %v2417_v28  ;;  %vm6727_vm8 = vcmask 261120   ;;  %v2414_v14 = vsel %vm2413_vm5, %v3992_v27, %v2410_v32  ;;  %3997 = vrcp.f32 %v1909_v54 }
 0x263   : > { %1391 = vst.msk [vmem:[#allocation2 + $0x1f8] sm:$0xff] %vm6727_vm8, %v1326_v22  ;;  %v3124_v60 = vpack.c.bf16 %v3060_v1, %v3060_v1  ;;  %v2965_v40 = vsel %vm1813_vm6, %v2374_v17, %v2901_v57  ;;  %v1878_v12 = vadd.f32 1.0, %v6467_v15  ;;  %vm1816_vm3 = vcmp.ge.f32.partialorder %v6313_v31, 0.0 }
 0x264   : > { %v3029_v42 = vmul.f32 %v2965_v40, %v6310_v19  ;;  %v2419_v29 = vsel %vm2416_vm2, %v2418_v61, %v2414_v14  ;;  %v2850_v48 = vand.u32 2147483647, %v1909_v54  ;;  %v2852_v2 = vand.u32 2147483648, %v1909_v54  ;;  %vm6731_vm2 = vmmov %vm6728_vm10 }
 0x265   : > { %3189 = vst.msk [vmem:[%s4431_s20 + $0xf4] sm:$0xf] %vm6728_vm10, %v3124_v60  ;;  %v2904_v46 = vmul.f32 %v6397_v10, %v2419_v29  ;;  %3999 = vrcp.f32 %v1878_v12  ;;  %vm2846_vm7 = vweird.f32 %v1909_v54  ;;  %v2387_v26 = vand.u32 2147483648, %v1878_v12  ;;  %vm6732_vm8 = vmmov %vm6731_vm2 }
 0x266   : > { %v3093_v43 = vpack.c.bf16 %v3029_v42, %v3029_v42  ;;  %vm2851_vm1 = vcmp.eq.f32.partialorder %v2850_v48, 8.507059e+37  ;;  %v2853_v38 = vor.u32 1.1754944e-38, %v2852_v2  ;;  %v2385_v36 = vand.u32 2147483647, %v1878_v12 }
 0x267   : > { %v2968_v3 = vsel %vm1816_vm3, %v2419_v29, %v2904_v46  ;;  %vm2381_vm14 = vweird.f32 %v1878_v12  ;;  %vm1845_vm0 = vcmp.ge.f32.partialorder %v6354_v52, 0.0  ;;  %v2388_v62 = vor.u32 1.1754944e-38, %v2387_v26 }
 0x268   : > { %3158 = vst.msk [vmem:[%s4431_s20 + $0x78] sm:$0xf] %vm6729_vm12, %v3093_v43  ;;  %v3032_v39 = vmul.f32 %v2968_v3, %v6313_v31  ;;  %v3998_v58 = vpop.eup %3997  ;;  %vm2386_vm6 = vcmp.eq.f32.partialorder %v2385_v36, 8.507059e+37  ;;  %vm1814_vm5 = vcmp.ge.f32.partialorder %v6364_v18, 0.0 }
 0x269   : > { %v2842_v11 = vmul.f32 %v3998_v58, %v1909_v54  ;;  %vm2847_vm9 = vweird.f32 %v3998_v58 }
 0x26a   : > { %v1458_v45 = vld [vmem:[#allocation2 + $0x1f8] sm:$0xff]  ;;  %v3096_v19 = vpack.c.bf16 %v3032_v39, %v3032_v39  ;;  %vm2848_vm4 = vmor %vm2846_vm7, %vm2847_vm9 }
 0x26b   : > { %v6483_v10 = vadd.f32 %v4008_v16, %v1458_v45  ;;  %v2843_v34 = vsub.f32 1.0, %v2842_v11  ;;  %v4000_v55 = vpop.eup %3999  ;;  %vm6733_vm7 = vmmov %vm6731_vm2 }
 0x26c   : > { %3161 = vst.msk [vmem:[%s4431_s20 + $0x84] sm:$0xf] %vm6730_vm11, %v3096_v19  ;;  %v2377_v31 = vmul.f32 %v4000_v55, %v1878_v12  ;;  %vm2382_vm13 = vweird.f32 %v4000_v55 }
 0x26d   : > { %v1590_v13 = vand.u32 2147483647, %v6483_v10  ;;  %v2844_v41 = vmul.f32 %v3998_v58, %v2843_v34  ;;  %vm2383_vm15 = vmor %vm2381_vm14, %vm2382_vm13  ;;  %vm1846_vm9 = vcmp.ge.f32.partialorder %v6483_v10, 0.0 }
 0x26e   : > { %v2378_v47 = vsub.f32 1.0, %v2377_v31 }
 0x26f   : > { %v1654_v51 = vsub.f32 0.0, %v1590_v13  ;;  %v2845_v23 = vadd.f32 %v3998_v58, %v2844_v41 }
 0x270   : > { %v2379_v44 = vmul.f32 %v4000_v55, %v2378_v47 }
 0x271   : > { %v1781_v35 = vmul.f32 1.442695, %v1654_v51  ;;  %v2849_v27 = vsel %vm2848_vm4, %v3998_v58, %v2845_v23 }
 0x272   : > { %v2854_v24 = vsel %vm2851_vm1, %v2853_v38, %v2849_v27  ;;  %v2380_v56 = vadd.f32 %v4000_v55, %v2379_v44 }
 0x273   : > { %4001 = vpow2.f32 %v1781_v35  ;;  %v2933_v49 = vmul.f32 %v3994_v50, %v2854_v24 }
 0x274   : > { %v2384_v5 = vsel %vm2383_vm15, %v4000_v55, %v2380_v56 }
 0x275   : > { %v2997_v59 = vsel %vm1845_vm0, %v2854_v24, %v2933_v49  ;;  %v2389_v0 = vsel %vm2386_vm6, %v2388_v62, %v2384_v5 }
 0x276   : > { %v3061_v20 = vmul.f32 %v2997_v59, %v6354_v52  ;;  %v2902_v6 = vmul.f32 %v6467_v15, %v2389_v0 }
 0x278   : > { %v3125_v30 = vpack.c.bf16 %v3061_v20, %v3061_v20  ;;  %v2966_v25 = vsel %vm1814_vm5, %v2389_v0, %v2902_v6 }
 0x279   : > { %v4002_v53 = vpop.eup %4001  ;;  %v3030_v7 = vmul.f32 %v2966_v25, %v6364_v18 }
 0x27a   : > { %v1910_v33 = vadd.f32 1.0, %v4002_v53  ;;  %3190 = vst.msk [vmem:[%s4431_s20 + $0xf8] sm:$0xf] %vm6731_vm2, %v3125_v30 }
 0x27b   : > { %v3094_v21 = vpack.c.bf16 %v3030_v7, %v3030_v7 }
 0x27c   : > { %4003 = vrcp.f32 %v1910_v33  ;;  %v2867_v63 = vand.u32 2147483648, %v1910_v33  ;;  %v2865_v9 = vand.u32 2147483647, %v1910_v33  ;;  %vm2861_vm3 = vweird.f32 %v1910_v33 }
 0x27d   : > { %3159 = vst.msk [vmem:[%s4431_s20 + $0x7c] sm:$0xf] %vm6732_vm8, %v3094_v21 }
 0x27e   : > { %v2868_v4 = vor.u32 1.1754944e-38, %v2867_v63  ;;  %vm2866_vm11 = vcmp.eq.f32.partialorder %v2865_v9, 8.507059e+37 }
 0x282   : > { %v4004_v8 = vpop.eup %4003 }
 0x283   : > { %v2857_v28 = vmul.f32 %v4004_v8, %v1910_v33  ;;  %vm2862_vm10 = vweird.f32 %v4004_v8 }
 0x284   : > { %vm2863_vm12 = vmor %vm2861_vm3, %vm2862_vm10 }
 0x285   : > { %v2858_v52 = vsub.f32 1.0, %v2857_v28 }
 0x287   : > { %v2859_v37 = vmul.f32 %v4004_v8, %v2858_v52 }
 0x289   : > { %v2860_v50 = vadd.f32 %v4004_v8, %v2859_v37 }
 0x28b   : > { %v2864_v17 = vsel %vm2863_vm12, %v4004_v8, %v2860_v50 }
 0x28c   : > { %v2869_v22 = vsel %vm2866_vm11, %v2868_v4, %v2864_v17 }
 0x28d   : > { %v2934_v18 = vmul.f32 %v4002_v53, %v2869_v22 }
 0x28f   : > { %v2998_v1 = vsel %vm1846_vm9, %v2869_v22, %v2934_v18 }
 0x290   : > { %v3062_v57 = vmul.f32 %v2998_v1, %v6483_v10 }
 0x292   : > { %v3126_v32 = vpack.c.bf16 %v3062_v57, %v3062_v57 }
 0x294   : > { %3191 = vst.msk [vmem:[%s4431_s20 + $0xfc] sm:$0xf] %vm6733_vm7, %v3126_v32 }
 0x295 PF: > { %s13_s14 = sadd.s32 1, %s4031_s14   ;;  %s6734_s12 = smov %s4027_s13 }
 0x296   : > { %p10_p5 = scmp.ge.s32.totalorder %s13_s14, 4   ;;  %s6735_s13 = smov %s6737_s15 }
 0x298   :  { %12 = sbr.rel (!%p10_p5) target bundleno = 2 (0x2), region = 76 }

</bundles_post_ra>
